<compile_context>
chip_gen: v6e
topology: v6e:2x2x1
jax: 0.10.0
libtpu: 0.0.40
codegen_flags: <defaults>
</compile_context>

<pallas_src>
import jax
import jax.numpy as jnp
from jax.experimental import pallas as pl
from jax.experimental.pallas import tpu as pltpu


# ----------------------------------------------------------------------------
# Fused kernel: all four conv+ELU layers for one sample per grid step.
# ----------------------------------------------------------------------------
def _elu(y):
    # ELU(alpha=1): y if y > 0 else exp(y) - 1 (exp arg clamped for safety).
    return jnp.where(y > 0.0, y, jnp.exp(jnp.minimum(y, 0.0)) - 1.0)


def _conv_elu_layer(a, gh_ref, u_ref, b_ref):
    """One Conv2d + ELU on the 2-D activation A[h, c*W_in + w].

    gh_ref: (k, H_out, H_in)           constant 0/1 row gather per tap kh
    u_ref : (k, Cin*W_in, Cout*W_out)  conv weights pre-scattered over (kw, wo)
    b_ref : (1, Cout*W_out)            bias repeated over wo
    returns (H_out, Cout*W_out)
    """
    k = gh_ref.shape[0]
    acc = None
    for kh in range(k):
        rows = jnp.dot(gh_ref[kh], a, preferred_element_type=jnp.float32)
        part = jnp.dot(rows, u_ref[kh], preferred_element_type=jnp.float32)
        acc = part if acc is None else acc + part
    return _elu(acc + b_ref[...])


def _encoder_kernel(x_ref,
                    gh1, u1, b1, gh2, u2, b2, gh3, u3, b3, gh4, u4, b4,
                    o_ref):
    a = x_ref[0]                          # (64, 64)   A0[h, w]  (Cin = 1)
    a = _conv_elu_layer(a, gh1, u1, b1)   # (32, 8*32)
    a = _conv_elu_layer(a, gh2, u2, b2)   # (16, 16*16)
    a = _conv_elu_layer(a, gh3, u3, b3)   # (8, 32*8)
    a = _conv_elu_layer(a, gh4, u4, b4)   # (1, hidden)
    o_ref[0] = a


# ----------------------------------------------------------------------------
# Parameters: PyTorch-style init + one-time preparation into kernel layout.
# ----------------------------------------------------------------------------
_LAYER_CFG = (("conv1", 2, 1), ("conv2", 2, 1), ("conv3", 2, 1), ("conv4", 1, 0))


def _init_conv(key, cout, cin, k):
    kw, kb = jax.random.split(key)
    fan_in = cin * k * k
    bound = 1.0 / jnp.sqrt(jnp.float32(fan_in))
    w = jax.random.uniform(kw, (cout, cin, k, k), jnp.float32, -bound, bound)
    b = jax.random.uniform(kb, (cout,), jnp.float32, -bound, bound)
    return w, b


def make_encoder_small_params(key, hidden_size):
    """Raw PyTorch-layout Conv2d parameters: (Cout, Cin, k, k) / (Cout,)."""
    D = 8
    final_dim = hidden_size              # predict_cubeA_state=False
    k1, k2, k3, k4 = jax.random.split(key, 4)
    return {
        "conv1": _init_conv(k1, D, 1, 4),
        "conv2": _init_conv(k2, 2 * D, D, 4),
        "conv3": _init_conv(k3, 4 * D, 2 * D, 4),
        "conv4": _init_conv(k4, final_dim, 4 * D, 8),
    }


def _build_row_gather(h_in, h_out, k, stride, pad):
    """gh[kh, ho, hi] = 1 iff hi == stride*ho + kh - pad (pad rows -> all-zero)."""
    hi = jnp.arange(h_in)
    ho = jnp.arange(h_out)
    kh = jnp.arange(k)
    target = stride * ho[None, :, None] + kh[:, None, None] - pad    # (k, h_out, 1)
    return (hi[None, None, :] == target).astype(jnp.float32)         # (k, h_out, h_in)


def _build_col_weights(w, w_in, w_out, stride, pad):
    """u[kh, ci*W_in + wi, co*W_out + wo] = w[co, ci, kh, wi - (stride*wo - pad)], else 0."""
    cout, cin, k, _ = w.shape
    wi = jnp.arange(w_in)
    wo = jnp.arange(w_out)
    kw = wi[:, None] - (stride * wo[None, :] - pad)                  # (w_in, w_out)
    valid = (kw >= 0) & (kw < k)
    wg = w[:, :, :, jnp.clip(kw, 0, k - 1)]                          # (cout, cin, k, w_in, w_out)
    wg = jnp.where(valid[None, None, None], wg, 0.0)
    wg = jnp.transpose(wg, (2, 1, 3, 0, 4))                          # (k, cin, w_in, cout, w_out)
    return wg.reshape(k, cin * w_in, cout * w_out)


def prepare_encoder_kernel_params(raw_params, input_hw=64):
    """Pre-scatter each Conv2d into (row-gather, col-weight, repeated-bias) once."""
    layers = []
    h = input_hw
    for name, stride, pad in _LAYER_CFG:
        w, b = raw_params[name]
        cout, cin, k, _ = w.shape
        h_out = (h + 2 * pad - k) // stride + 1
        gh = _build_row_gather(h, h_out, k, stride, pad)
        u = _build_col_weights(w, h, h_out, stride, pad)
        brep = jnp.repeat(b, h_out).reshape(1, cout * h_out)
        layers.append((gh, u, brep))
        h = h_out
    assert h == 1, "Encoder_small needs a 64x64 input (conv4 is 8x8 / s1 / p0)."
    return layers


# ----------------------------------------------------------------------------
# Forward pass: one pallas_call for the whole network.
# ----------------------------------------------------------------------------
@jax.jit
def encoder_small_forward(kernel_params, x):
    # TODO(synk): vae=False / predict_cubeA_state=False (module defaults); the
    # mu/log_var heads, reparameterize() and PosQuatPredictor branches are not
    # constructed and thus not part of this forward.
    B, cin, H, W = x.shape
    assert cin == 1 and H == W
    x2 = x.reshape(B, H, W)

    flat_consts = []
    in_specs = [pl.BlockSpec((1, H, W), lambda b: (b, 0, 0))]
    for gh, u, brep in kernel_params:
        for arr in (gh, u, brep):
            flat_consts.append(arr)
            in_specs.append(pl.BlockSpec(arr.shape, lambda b, n=arr.ndim: (0,) * n))
    hidden = kernel_params[-1][2].shape[1]

    out = pl.pallas_call(
        _encoder_kernel,
        out_shape=jax.ShapeDtypeStruct((B, 1, hidden), jnp.float32),
        grid=(B,),
        in_specs=in_specs,
        out_specs=pl.BlockSpec((1, 1, hidden), lambda b: (b, 0, 0)),
        compiler_params=pltpu.CompilerParams(
            dimension_semantics=("parallel",)),
    )(x2, *flat_consts)
    return out.reshape(B, hidden)


# ----------------------------------------------------------------------------
# Plain-JAX (XLA) reference of the PyTorch forward, for validation only.
# ----------------------------------------------------------------------------
def encoder_small_reference(raw_params, x):
    def conv(v, w, b, stride, pad):
        y = jax.lax.conv_general_dilated(
            v, w, window_strides=(stride, stride),
            padding=((pad, pad), (pad, pad)),
            dimension_numbers=("NCHW", "OIHW", "NCHW"),
            precision=jax.lax.Precision.HIGHEST)
        return y + b.reshape(1, -1, 1, 1)

    v = x
    for name, stride, pad in _LAYER_CFG:
        v = _elu(conv(v, *raw_params[name], stride, pad))
    return v.reshape(v.shape[0], -1)


if __name__ == "__main__":
    key = jax.random.PRNGKey(0)
    kp, kx = jax.random.split(key)

    hidden_size = 32
    batch = 2
    # conv4 (k=8, s=1, p=0) requires a 64x64 input so conv3's output is 8x8
    # and conv4 produces a 1x1 spatial map, as in the rl_games usage.
    x = jax.random.normal(kx, (batch, 1, 64, 64), dtype=jnp.float32)

    raw_params = make_encoder_small_params(kp, hidden_size)
    kernel_params = prepare_encoder_kernel_params(raw_params, input_hw=64)

    z = encoder_small_forward(kernel_params, x)
    z = jax.block_until_ready(z)

    assert z.shape == (batch, hidden_size), z.shape
    assert bool(jnp.all(jnp.isfinite(z)))

    z_ref = encoder_small_reference(raw_params, x)
    err = float(jnp.max(jnp.abs(z - z_ref)))
    assert err < 1e-2, f"mismatch vs XLA reference: {err}"
    print("KERNEL_OK")
</pallas_src>

<mosaic_0001>
module attributes {stable_mosaic.version = 11 : i64} {
  func.func @_encoder_kernel(%arg0: i32, %arg1: memref<1x64x64xf32, #tpu.memory_space<vmem>>, %arg2: memref<4x32x64xf32, #tpu.memory_space<vmem>>, %arg3: memref<4x64x256xf32, #tpu.memory_space<vmem>>, %arg4: memref<1x256xf32, #tpu.memory_space<vmem>>, %arg5: memref<4x16x32xf32, #tpu.memory_space<vmem>>, %arg6: memref<4x256x256xf32, #tpu.memory_space<vmem>>, %arg7: memref<1x256xf32, #tpu.memory_space<vmem>>, %arg8: memref<4x8x16xf32, #tpu.memory_space<vmem>>, %arg9: memref<4x256x256xf32, #tpu.memory_space<vmem>>, %arg10: memref<1x256xf32, #tpu.memory_space<vmem>>, %arg11: memref<8x1x8xf32, #tpu.memory_space<vmem>>, %arg12: memref<8x256x32xf32, #tpu.memory_space<vmem>>, %arg13: memref<1x32xf32, #tpu.memory_space<vmem>>, %arg14: memref<1x1x32xf32, #tpu.memory_space<vmem>>) attributes {dimension_semantics = [#tpu.dimension_semantics<parallel>], iteration_bounds = array<i64: 2>, scalar_prefetch = 0 : i64, scratch_operands = 0 : i64, tpu.core_type = #tpu.core_type<tc>, window_params = [{transform_indices = @transform_0, window_bounds = array<i64: 1, 64, 64>}, {pipeline_mode = #tpu.pipeline_mode<synchronous>, transform_indices = @transform_1, window_bounds = array<i64: 4, 32, 64>}, {pipeline_mode = #tpu.pipeline_mode<synchronous>, transform_indices = @transform_2, window_bounds = array<i64: 4, 64, 256>}, {pipeline_mode = #tpu.pipeline_mode<synchronous>, transform_indices = @transform_3, window_bounds = array<i64: 1, 256>}, {pipeline_mode = #tpu.pipeline_mode<synchronous>, transform_indices = @transform_4, window_bounds = array<i64: 4, 16, 32>}, {pipeline_mode = #tpu.pipeline_mode<synchronous>, transform_indices = @transform_5, window_bounds = array<i64: 4, 256, 256>}, {pipeline_mode = #tpu.pipeline_mode<synchronous>, transform_indices = @transform_6, window_bounds = array<i64: 1, 256>}, {pipeline_mode = #tpu.pipeline_mode<synchronous>, transform_indices = @transform_7, window_bounds = array<i64: 4, 8, 16>}, {pipeline_mode = #tpu.pipeline_mode<synchronous>, transform_indices = @transform_8, window_bounds = array<i64: 4, 256, 256>}, {pipeline_mode = #tpu.pipeline_mode<synchronous>, transform_indices = @transform_9, window_bounds = array<i64: 1, 256>}, {pipeline_mode = #tpu.pipeline_mode<synchronous>, transform_indices = @transform_10, window_bounds = array<i64: 8, 1, 8>}, {pipeline_mode = #tpu.pipeline_mode<synchronous>, transform_indices = @transform_11, window_bounds = array<i64: 8, 256, 32>}, {pipeline_mode = #tpu.pipeline_mode<synchronous>, transform_indices = @transform_12, window_bounds = array<i64: 1, 32>}, {transform_indices = @transform_13, window_bounds = array<i64: 1, 1, 32>}]} {
    %c0 = arith.constant 0 : index
    %c0_0 = arith.constant 0 : index
    %c0_1 = arith.constant 0 : index
    %0 = vector.load %arg1[%c0, %c0_0, %c0_1] : memref<1x64x64xf32, #tpu.memory_space<vmem>>, vector<1x64x64xf32>
    %1 = vector.shape_cast %0 : vector<1x64x64xf32> to vector<64x64xf32>
    %c0_2 = arith.constant 0 : index
    %c0_3 = arith.constant 0 : index
    %c0_4 = arith.constant 0 : index
    %2 = vector.load %arg2[%c0_2, %c0_3, %c0_4] : memref<4x32x64xf32, #tpu.memory_space<vmem>>, vector<1x32x64xf32>
    %3 = vector.shape_cast %2 : vector<1x32x64xf32> to vector<32x64xf32>
    %cst = arith.constant dense<0.000000e+00> : vector<32x64xf32>
    %4 = tpu.matmul %3, %1, %cst {dimension_numbers = #tpu.dot_dimension_numbers<[1], [0], [0], [1], [0, 0, 1, 1], [], []>} : vector<32x64xf32>, vector<64x64xf32>, vector<32x64xf32> -> vector<32x64xf32>
    %c0_5 = arith.constant 0 : index
    %c0_6 = arith.constant 0 : index
    %c0_7 = arith.constant 0 : index
    %5 = vector.load %arg3[%c0_5, %c0_6, %c0_7] : memref<4x64x256xf32, #tpu.memory_space<vmem>>, vector<1x64x256xf32>
    %6 = vector.shape_cast %5 : vector<1x64x256xf32> to vector<64x256xf32>
    %cst_8 = arith.constant dense<0.000000e+00> : vector<32x256xf32>
    %7 = tpu.matmul %4, %6, %cst_8 {dimension_numbers = #tpu.dot_dimension_numbers<[1], [0], [0], [1], [0, 0, 1, 1], [], []>} : vector<32x64xf32>, vector<64x256xf32>, vector<32x256xf32> -> vector<32x256xf32>
    %c1 = arith.constant 1 : index
    %c0_9 = arith.constant 0 : index
    %c0_10 = arith.constant 0 : index
    %8 = vector.load %arg2[%c1, %c0_9, %c0_10] : memref<4x32x64xf32, #tpu.memory_space<vmem>>, vector<1x32x64xf32>
    %9 = vector.shape_cast %8 : vector<1x32x64xf32> to vector<32x64xf32>
    %cst_11 = arith.constant dense<0.000000e+00> : vector<32x64xf32>
    %10 = tpu.matmul %9, %1, %cst_11 {dimension_numbers = #tpu.dot_dimension_numbers<[1], [0], [0], [1], [0, 0, 1, 1], [], []>} : vector<32x64xf32>, vector<64x64xf32>, vector<32x64xf32> -> vector<32x64xf32>
    %c1_12 = arith.constant 1 : index
    %c0_13 = arith.constant 0 : index
    %c0_14 = arith.constant 0 : index
    %11 = vector.load %arg3[%c1_12, %c0_13, %c0_14] : memref<4x64x256xf32, #tpu.memory_space<vmem>>, vector<1x64x256xf32>
    %12 = vector.shape_cast %11 : vector<1x64x256xf32> to vector<64x256xf32>
    %cst_15 = arith.constant dense<0.000000e+00> : vector<32x256xf32>
    %13 = tpu.matmul %10, %12, %cst_15 {dimension_numbers = #tpu.dot_dimension_numbers<[1], [0], [0], [1], [0, 0, 1, 1], [], []>} : vector<32x64xf32>, vector<64x256xf32>, vector<32x256xf32> -> vector<32x256xf32>
    %14 = arith.addf %7, %13 : vector<32x256xf32>
    %c2 = arith.constant 2 : index
    %c0_16 = arith.constant 0 : index
    %c0_17 = arith.constant 0 : index
    %15 = vector.load %arg2[%c2, %c0_16, %c0_17] : memref<4x32x64xf32, #tpu.memory_space<vmem>>, vector<1x32x64xf32>
    %16 = vector.shape_cast %15 : vector<1x32x64xf32> to vector<32x64xf32>
    %cst_18 = arith.constant dense<0.000000e+00> : vector<32x64xf32>
    %17 = tpu.matmul %16, %1, %cst_18 {dimension_numbers = #tpu.dot_dimension_numbers<[1], [0], [0], [1], [0, 0, 1, 1], [], []>} : vector<32x64xf32>, vector<64x64xf32>, vector<32x64xf32> -> vector<32x64xf32>
    %c2_19 = arith.constant 2 : index
    %c0_20 = arith.constant 0 : index
    %c0_21 = arith.constant 0 : index
    %18 = vector.load %arg3[%c2_19, %c0_20, %c0_21] : memref<4x64x256xf32, #tpu.memory_space<vmem>>, vector<1x64x256xf32>
    %19 = vector.shape_cast %18 : vector<1x64x256xf32> to vector<64x256xf32>
    %cst_22 = arith.constant dense<0.000000e+00> : vector<32x256xf32>
    %20 = tpu.matmul %17, %19, %cst_22 {dimension_numbers = #tpu.dot_dimension_numbers<[1], [0], [0], [1], [0, 0, 1, 1], [], []>} : vector<32x64xf32>, vector<64x256xf32>, vector<32x256xf32> -> vector<32x256xf32>
    %21 = arith.addf %14, %20 : vector<32x256xf32>
    %c3 = arith.constant 3 : index
    %c0_23 = arith.constant 0 : index
    %c0_24 = arith.constant 0 : index
    %22 = vector.load %arg2[%c3, %c0_23, %c0_24] : memref<4x32x64xf32, #tpu.memory_space<vmem>>, vector<1x32x64xf32>
    %23 = vector.shape_cast %22 : vector<1x32x64xf32> to vector<32x64xf32>
    %cst_25 = arith.constant dense<0.000000e+00> : vector<32x64xf32>
    %24 = tpu.matmul %23, %1, %cst_25 {dimension_numbers = #tpu.dot_dimension_numbers<[1], [0], [0], [1], [0, 0, 1, 1], [], []>} : vector<32x64xf32>, vector<64x64xf32>, vector<32x64xf32> -> vector<32x64xf32>
    %c3_26 = arith.constant 3 : index
    %c0_27 = arith.constant 0 : index
    %c0_28 = arith.constant 0 : index
    %25 = vector.load %arg3[%c3_26, %c0_27, %c0_28] : memref<4x64x256xf32, #tpu.memory_space<vmem>>, vector<1x64x256xf32>
    %26 = vector.shape_cast %25 : vector<1x64x256xf32> to vector<64x256xf32>
    %cst_29 = arith.constant dense<0.000000e+00> : vector<32x256xf32>
    %27 = tpu.matmul %24, %26, %cst_29 {dimension_numbers = #tpu.dot_dimension_numbers<[1], [0], [0], [1], [0, 0, 1, 1], [], []>} : vector<32x64xf32>, vector<64x256xf32>, vector<32x256xf32> -> vector<32x256xf32>
    %28 = arith.addf %21, %27 : vector<32x256xf32>
    %c0_30 = arith.constant 0 : index
    %c0_31 = arith.constant 0 : index
    %29 = vector.load %arg4[%c0_30, %c0_31] : memref<1x256xf32, #tpu.memory_space<vmem>>, vector<1x256xf32>
    %30 = vector.broadcast %29 : vector<1x256xf32> to vector<32x256xf32>
    %31 = arith.addf %28, %30 : vector<32x256xf32>
    %cst_32 = arith.constant 0.000000e+00 : f32
    %32 = vector.broadcast %cst_32 : f32 to vector<32x256xf32>
    %33 = arith.cmpf ogt, %31, %32 : vector<32x256xf32>
    %cst_33 = arith.constant 0.000000e+00 : f32
    %34 = vector.broadcast %cst_33 : f32 to vector<32x256xf32>
    %35 = arith.minimumf %31, %34 : vector<32x256xf32>
    %36 = math.exp %35 : vector<32x256xf32>
    %cst_34 = arith.constant 1.000000e+00 : f32
    %37 = vector.broadcast %cst_34 : f32 to vector<32x256xf32>
    %38 = arith.subf %36, %37 : vector<32x256xf32>
    %39 = arith.select %33, %31, %38 : vector<32x256xi1>, vector<32x256xf32>
    %c0_35 = arith.constant 0 : index
    %c0_36 = arith.constant 0 : index
    %c0_37 = arith.constant 0 : index
    %40 = vector.load %arg5[%c0_35, %c0_36, %c0_37] : memref<4x16x32xf32, #tpu.memory_space<vmem>>, vector<1x16x32xf32>
    %41 = vector.shape_cast %40 : vector<1x16x32xf32> to vector<16x32xf32>
    %cst_38 = arith.constant dense<0.000000e+00> : vector<16x256xf32>
    %42 = tpu.matmul %41, %39, %cst_38 {dimension_numbers = #tpu.dot_dimension_numbers<[1], [0], [0], [1], [0, 0, 1, 1], [], []>} : vector<16x32xf32>, vector<32x256xf32>, vector<16x256xf32> -> vector<16x256xf32>
    %c0_39 = arith.constant 0 : index
    %c0_40 = arith.constant 0 : index
    %c0_41 = arith.constant 0 : index
    %43 = vector.load %arg6[%c0_39, %c0_40, %c0_41] : memref<4x256x256xf32, #tpu.memory_space<vmem>>, vector<1x256x256xf32>
    %44 = vector.shape_cast %43 : vector<1x256x256xf32> to vector<256x256xf32>
    %cst_42 = arith.constant dense<0.000000e+00> : vector<16x256xf32>
    %45 = tpu.matmul %42, %44, %cst_42 {dimension_numbers = #tpu.dot_dimension_numbers<[1], [0], [0], [1], [0, 0, 1, 1], [], []>} : vector<16x256xf32>, vector<256x256xf32>, vector<16x256xf32> -> vector<16x256xf32>
    %c1_43 = arith.constant 1 : index
    %c0_44 = arith.constant 0 : index
    %c0_45 = arith.constant 0 : index
    %46 = vector.load %arg5[%c1_43, %c0_44, %c0_45] : memref<4x16x32xf32, #tpu.memory_space<vmem>>, vector<1x16x32xf32>
    %47 = vector.shape_cast %46 : vector<1x16x32xf32> to vector<16x32xf32>
    %cst_46 = arith.constant dense<0.000000e+00> : vector<16x256xf32>
    %48 = tpu.matmul %47, %39, %cst_46 {dimension_numbers = #tpu.dot_dimension_numbers<[1], [0], [0], [1], [0, 0, 1, 1], [], []>} : vector<16x32xf32>, vector<32x256xf32>, vector<16x256xf32> -> vector<16x256xf32>
    %c1_47 = arith.constant 1 : index
    %c0_48 = arith.constant 0 : index
    %c0_49 = arith.constant 0 : index
    %49 = vector.load %arg6[%c1_47, %c0_48, %c0_49] : memref<4x256x256xf32, #tpu.memory_space<vmem>>, vector<1x256x256xf32>
    %50 = vector.shape_cast %49 : vector<1x256x256xf32> to vector<256x256xf32>
    %cst_50 = arith.constant dense<0.000000e+00> : vector<16x256xf32>
    %51 = tpu.matmul %48, %50, %cst_50 {dimension_numbers = #tpu.dot_dimension_numbers<[1], [0], [0], [1], [0, 0, 1, 1], [], []>} : vector<16x256xf32>, vector<256x256xf32>, vector<16x256xf32> -> vector<16x256xf32>
    %52 = arith.addf %45, %51 : vector<16x256xf32>
    %c2_51 = arith.constant 2 : index
    %c0_52 = arith.constant 0 : index
    %c0_53 = arith.constant 0 : index
    %53 = vector.load %arg5[%c2_51, %c0_52, %c0_53] : memref<4x16x32xf32, #tpu.memory_space<vmem>>, vector<1x16x32xf32>
    %54 = vector.shape_cast %53 : vector<1x16x32xf32> to vector<16x32xf32>
    %cst_54 = arith.constant dense<0.000000e+00> : vector<16x256xf32>
    %55 = tpu.matmul %54, %39, %cst_54 {dimension_numbers = #tpu.dot_dimension_numbers<[1], [0], [0], [1], [0, 0, 1, 1], [], []>} : vector<16x32xf32>, vector<32x256xf32>, vector<16x256xf32> -> vector<16x256xf32>
    %c2_55 = arith.constant 2 : index
    %c0_56 = arith.constant 0 : index
    %c0_57 = arith.constant 0 : index
    %56 = vector.load %arg6[%c2_55, %c0_56, %c0_57] : memref<4x256x256xf32, #tpu.memory_space<vmem>>, vector<1x256x256xf32>
    %57 = vector.shape_cast %56 : vector<1x256x256xf32> to vector<256x256xf32>
    %cst_58 = arith.constant dense<0.000000e+00> : vector<16x256xf32>
    %58 = tpu.matmul %55, %57, %cst_58 {dimension_numbers = #tpu.dot_dimension_numbers<[1], [0], [0], [1], [0, 0, 1, 1], [], []>} : vector<16x256xf32>, vector<256x256xf32>, vector<16x256xf32> -> vector<16x256xf32>
    %59 = arith.addf %52, %58 : vector<16x256xf32>
    %c3_59 = arith.constant 3 : index
    %c0_60 = arith.constant 0 : index
    %c0_61 = arith.constant 0 : index
    %60 = vector.load %arg5[%c3_59, %c0_60, %c0_61] : memref<4x16x32xf32, #tpu.memory_space<vmem>>, vector<1x16x32xf32>
    %61 = vector.shape_cast %60 : vector<1x16x32xf32> to vector<16x32xf32>
    %cst_62 = arith.constant dense<0.000000e+00> : vector<16x256xf32>
    %62 = tpu.matmul %61, %39, %cst_62 {dimension_numbers = #tpu.dot_dimension_numbers<[1], [0], [0], [1], [0, 0, 1, 1], [], []>} : vector<16x32xf32>, vector<32x256xf32>, vector<16x256xf32> -> vector<16x256xf32>
    %c3_63 = arith.constant 3 : index
    %c0_64 = arith.constant 0 : index
    %c0_65 = arith.constant 0 : index
    %63 = vector.load %arg6[%c3_63, %c0_64, %c0_65] : memref<4x256x256xf32, #tpu.memory_space<vmem>>, vector<1x256x256xf32>
    %64 = vector.shape_cast %63 : vector<1x256x256xf32> to vector<256x256xf32>
    %cst_66 = arith.constant dense<0.000000e+00> : vector<16x256xf32>
    %65 = tpu.matmul %62, %64, %cst_66 {dimension_numbers = #tpu.dot_dimension_numbers<[1], [0], [0], [1], [0, 0, 1, 1], [], []>} : vector<16x256xf32>, vector<256x256xf32>, vector<16x256xf32> -> vector<16x256xf32>
    %66 = arith.addf %59, %65 : vector<16x256xf32>
    %c0_67 = arith.constant 0 : index
    %c0_68 = arith.constant 0 : index
    %67 = vector.load %arg7[%c0_67, %c0_68] : memref<1x256xf32, #tpu.memory_space<vmem>>, vector<1x256xf32>
    %68 = vector.broadcast %67 : vector<1x256xf32> to vector<16x256xf32>
    %69 = arith.addf %66, %68 : vector<16x256xf32>
    %cst_69 = arith.constant 0.000000e+00 : f32
    %70 = vector.broadcast %cst_69 : f32 to vector<16x256xf32>
    %71 = arith.cmpf ogt, %69, %70 : vector<16x256xf32>
    %cst_70 = arith.constant 0.000000e+00 : f32
    %72 = vector.broadcast %cst_70 : f32 to vector<16x256xf32>
    %73 = arith.minimumf %69, %72 : vector<16x256xf32>
    %74 = math.exp %73 : vector<16x256xf32>
    %cst_71 = arith.constant 1.000000e+00 : f32
    %75 = vector.broadcast %cst_71 : f32 to vector<16x256xf32>
    %76 = arith.subf %74, %75 : vector<16x256xf32>
    %77 = arith.select %71, %69, %76 : vector<16x256xi1>, vector<16x256xf32>
    %c0_72 = arith.constant 0 : index
    %c0_73 = arith.constant 0 : index
    %c0_74 = arith.constant 0 : index
    %78 = vector.load %arg8[%c0_72, %c0_73, %c0_74] : memref<4x8x16xf32, #tpu.memory_space<vmem>>, vector<1x8x16xf32>
    %79 = vector.shape_cast %78 : vector<1x8x16xf32> to vector<8x16xf32>
    %cst_75 = arith.constant dense<0.000000e+00> : vector<8x256xf32>
    %80 = tpu.matmul %79, %77, %cst_75 {dimension_numbers = #tpu.dot_dimension_numbers<[1], [0], [0], [1], [0, 0, 1, 1], [], []>} : vector<8x16xf32>, vector<16x256xf32>, vector<8x256xf32> -> vector<8x256xf32>
    %c0_76 = arith.constant 0 : index
    %c0_77 = arith.constant 0 : index
    %c0_78 = arith.constant 0 : index
    %81 = vector.load %arg9[%c0_76, %c0_77, %c0_78] : memref<4x256x256xf32, #tpu.memory_space<vmem>>, vector<1x256x256xf32>
    %82 = vector.shape_cast %81 : vector<1x256x256xf32> to vector<256x256xf32>
    %cst_79 = arith.constant dense<0.000000e+00> : vector<8x256xf32>
    %83 = tpu.matmul %80, %82, %cst_79 {dimension_numbers = #tpu.dot_dimension_numbers<[1], [0], [0], [1], [0, 0, 1, 1], [], []>} : vector<8x256xf32>, vector<256x256xf32>, vector<8x256xf32> -> vector<8x256xf32>
    %c1_80 = arith.constant 1 : index
    %c0_81 = arith.constant 0 : index
    %c0_82 = arith.constant 0 : index
    %84 = vector.load %arg8[%c1_80, %c0_81, %c0_82] : memref<4x8x16xf32, #tpu.memory_space<vmem>>, vector<1x8x16xf32>
    %85 = vector.shape_cast %84 : vector<1x8x16xf32> to vector<8x16xf32>
    %cst_83 = arith.constant dense<0.000000e+00> : vector<8x256xf32>
    %86 = tpu.matmul %85, %77, %cst_83 {dimension_numbers = #tpu.dot_dimension_numbers<[1], [0], [0], [1], [0, 0, 1, 1], [], []>} : vector<8x16xf32>, vector<16x256xf32>, vector<8x256xf32> -> vector<8x256xf32>
    %c1_84 = arith.constant 1 : index
    %c0_85 = arith.constant 0 : index
    %c0_86 = arith.constant 0 : index
    %87 = vector.load %arg9[%c1_84, %c0_85, %c0_86] : memref<4x256x256xf32, #tpu.memory_space<vmem>>, vector<1x256x256xf32>
    %88 = vector.shape_cast %87 : vector<1x256x256xf32> to vector<256x256xf32>
    %cst_87 = arith.constant dense<0.000000e+00> : vector<8x256xf32>
    %89 = tpu.matmul %86, %88, %cst_87 {dimension_numbers = #tpu.dot_dimension_numbers<[1], [0], [0], [1], [0, 0, 1, 1], [], []>} : vector<8x256xf32>, vector<256x256xf32>, vector<8x256xf32> -> vector<8x256xf32>
    %90 = arith.addf %83, %89 : vector<8x256xf32>
    %c2_88 = arith.constant 2 : index
    %c0_89 = arith.constant 0 : index
    %c0_90 = arith.constant 0 : index
    %91 = vector.load %arg8[%c2_88, %c0_89, %c0_90] : memref<4x8x16xf32, #tpu.memory_space<vmem>>, vector<1x8x16xf32>
    %92 = vector.shape_cast %91 : vector<1x8x16xf32> to vector<8x16xf32>
    %cst_91 = arith.constant dense<0.000000e+00> : vector<8x256xf32>
    %93 = tpu.matmul %92, %77, %cst_91 {dimension_numbers = #tpu.dot_dimension_numbers<[1], [0], [0], [1], [0, 0, 1, 1], [], []>} : vector<8x16xf32>, vector<16x256xf32>, vector<8x256xf32> -> vector<8x256xf32>
    %c2_92 = arith.constant 2 : index
    %c0_93 = arith.constant 0 : index
    %c0_94 = arith.constant 0 : index
    %94 = vector.load %arg9[%c2_92, %c0_93, %c0_94] : memref<4x256x256xf32, #tpu.memory_space<vmem>>, vector<1x256x256xf32>
    %95 = vector.shape_cast %94 : vector<1x256x256xf32> to vector<256x256xf32>
    %cst_95 = arith.constant dense<0.000000e+00> : vector<8x256xf32>
    %96 = tpu.matmul %93, %95, %cst_95 {dimension_numbers = #tpu.dot_dimension_numbers<[1], [0], [0], [1], [0, 0, 1, 1], [], []>} : vector<8x256xf32>, vector<256x256xf32>, vector<8x256xf32> -> vector<8x256xf32>
    %97 = arith.addf %90, %96 : vector<8x256xf32>
    %c3_96 = arith.constant 3 : index
    %c0_97 = arith.constant 0 : index
    %c0_98 = arith.constant 0 : index
    %98 = vector.load %arg8[%c3_96, %c0_97, %c0_98] : memref<4x8x16xf32, #tpu.memory_space<vmem>>, vector<1x8x16xf32>
    %99 = vector.shape_cast %98 : vector<1x8x16xf32> to vector<8x16xf32>
    %cst_99 = arith.constant dense<0.000000e+00> : vector<8x256xf32>
    %100 = tpu.matmul %99, %77, %cst_99 {dimension_numbers = #tpu.dot_dimension_numbers<[1], [0], [0], [1], [0, 0, 1, 1], [], []>} : vector<8x16xf32>, vector<16x256xf32>, vector<8x256xf32> -> vector<8x256xf32>
    %c3_100 = arith.constant 3 : index
    %c0_101 = arith.constant 0 : index
    %c0_102 = arith.constant 0 : index
    %101 = vector.load %arg9[%c3_100, %c0_101, %c0_102] : memref<4x256x256xf32, #tpu.memory_space<vmem>>, vector<1x256x256xf32>
    %102 = vector.shape_cast %101 : vector<1x256x256xf32> to vector<256x256xf32>
    %cst_103 = arith.constant dense<0.000000e+00> : vector<8x256xf32>
    %103 = tpu.matmul %100, %102, %cst_103 {dimension_numbers = #tpu.dot_dimension_numbers<[1], [0], [0], [1], [0, 0, 1, 1], [], []>} : vector<8x256xf32>, vector<256x256xf32>, vector<8x256xf32> -> vector<8x256xf32>
    %104 = arith.addf %97, %103 : vector<8x256xf32>
    %c0_104 = arith.constant 0 : index
    %c0_105 = arith.constant 0 : index
    %105 = vector.load %arg10[%c0_104, %c0_105] : memref<1x256xf32, #tpu.memory_space<vmem>>, vector<1x256xf32>
    %106 = vector.broadcast %105 : vector<1x256xf32> to vector<8x256xf32>
    %107 = arith.addf %104, %106 : vector<8x256xf32>
    %cst_106 = arith.constant 0.000000e+00 : f32
    %108 = vector.broadcast %cst_106 : f32 to vector<8x256xf32>
    %109 = arith.cmpf ogt, %107, %108 : vector<8x256xf32>
    %cst_107 = arith.constant 0.000000e+00 : f32
    %110 = vector.broadcast %cst_107 : f32 to vector<8x256xf32>
    %111 = arith.minimumf %107, %110 : vector<8x256xf32>
    %112 = math.exp %111 : vector<8x256xf32>
    %cst_108 = arith.constant 1.000000e+00 : f32
    %113 = vector.broadcast %cst_108 : f32 to vector<8x256xf32>
    %114 = arith.subf %112, %113 : vector<8x256xf32>
    %115 = arith.select %109, %107, %114 : vector<8x256xi1>, vector<8x256xf32>
    %c0_109 = arith.constant 0 : index
    %c0_110 = arith.constant 0 : index
    %c0_111 = arith.constant 0 : index
    %116 = vector.load %arg11[%c0_109, %c0_110, %c0_111] : memref<8x1x8xf32, #tpu.memory_space<vmem>>, vector<1x1x8xf32>
    %117 = vector.shape_cast %116 : vector<1x1x8xf32> to vector<1x8xf32>
    %cst_112 = arith.constant dense<0.000000e+00> : vector<1x256xf32>
    %118 = tpu.matmul %117, %115, %cst_112 {dimension_numbers = #tpu.dot_dimension_numbers<[1], [0], [0], [1], [0, 0, 1, 1], [], []>} : vector<1x8xf32>, vector<8x256xf32>, vector<1x256xf32> -> vector<1x256xf32>
    %c0_113 = arith.constant 0 : index
    %c0_114 = arith.constant 0 : index
    %c0_115 = arith.constant 0 : index
    %119 = vector.load %arg12[%c0_113, %c0_114, %c0_115] : memref<8x256x32xf32, #tpu.memory_space<vmem>>, vector<1x256x32xf32>
    %120 = vector.shape_cast %119 : vector<1x256x32xf32> to vector<256x32xf32>
    %cst_116 = arith.constant dense<0.000000e+00> : vector<1x32xf32>
    %121 = tpu.matmul %118, %120, %cst_116 {dimension_numbers = #tpu.dot_dimension_numbers<[1], [0], [0], [1], [0, 0, 1, 1], [], []>} : vector<1x256xf32>, vector<256x32xf32>, vector<1x32xf32> -> vector<1x32xf32>
    %c1_117 = arith.constant 1 : index
    %c0_118 = arith.constant 0 : index
    %c0_119 = arith.constant 0 : index
    %122 = vector.load %arg11[%c1_117, %c0_118, %c0_119] : memref<8x1x8xf32, #tpu.memory_space<vmem>>, vector<1x1x8xf32>
    %123 = vector.shape_cast %122 : vector<1x1x8xf32> to vector<1x8xf32>
    %cst_120 = arith.constant dense<0.000000e+00> : vector<1x256xf32>
    %124 = tpu.matmul %123, %115, %cst_120 {dimension_numbers = #tpu.dot_dimension_numbers<[1], [0], [0], [1], [0, 0, 1, 1], [], []>} : vector<1x8xf32>, vector<8x256xf32>, vector<1x256xf32> -> vector<1x256xf32>
    %c1_121 = arith.constant 1 : index
    %c0_122 = arith.constant 0 : index
    %c0_123 = arith.constant 0 : index
    %125 = vector.load %arg12[%c1_121, %c0_122, %c0_123] : memref<8x256x32xf32, #tpu.memory_space<vmem>>, vector<1x256x32xf32>
    %126 = vector.shape_cast %125 : vector<1x256x32xf32> to vector<256x32xf32>
    %cst_124 = arith.constant dense<0.000000e+00> : vector<1x32xf32>
    %127 = tpu.matmul %124, %126, %cst_124 {dimension_numbers = #tpu.dot_dimension_numbers<[1], [0], [0], [1], [0, 0, 1, 1], [], []>} : vector<1x256xf32>, vector<256x32xf32>, vector<1x32xf32> -> vector<1x32xf32>
    %128 = arith.addf %121, %127 : vector<1x32xf32>
    %c2_125 = arith.constant 2 : index
    %c0_126 = arith.constant 0 : index
    %c0_127 = arith.constant 0 : index
    %129 = vector.load %arg11[%c2_125, %c0_126, %c0_127] : memref<8x1x8xf32, #tpu.memory_space<vmem>>, vector<1x1x8xf32>
    %130 = vector.shape_cast %129 : vector<1x1x8xf32> to vector<1x8xf32>
    %cst_128 = arith.constant dense<0.000000e+00> : vector<1x256xf32>
    %131 = tpu.matmul %130, %115, %cst_128 {dimension_numbers = #tpu.dot_dimension_numbers<[1], [0], [0], [1], [0, 0, 1, 1], [], []>} : vector<1x8xf32>, vector<8x256xf32>, vector<1x256xf32> -> vector<1x256xf32>
    %c2_129 = arith.constant 2 : index
    %c0_130 = arith.constant 0 : index
    %c0_131 = arith.constant 0 : index
    %132 = vector.load %arg12[%c2_129, %c0_130, %c0_131] : memref<8x256x32xf32, #tpu.memory_space<vmem>>, vector<1x256x32xf32>
    %133 = vector.shape_cast %132 : vector<1x256x32xf32> to vector<256x32xf32>
    %cst_132 = arith.constant dense<0.000000e+00> : vector<1x32xf32>
    %134 = tpu.matmul %131, %133, %cst_132 {dimension_numbers = #tpu.dot_dimension_numbers<[1], [0], [0], [1], [0, 0, 1, 1], [], []>} : vector<1x256xf32>, vector<256x32xf32>, vector<1x32xf32> -> vector<1x32xf32>
    %135 = arith.addf %128, %134 : vector<1x32xf32>
    %c3_133 = arith.constant 3 : index
    %c0_134 = arith.constant 0 : index
    %c0_135 = arith.constant 0 : index
    %136 = vector.load %arg11[%c3_133, %c0_134, %c0_135] : memref<8x1x8xf32, #tpu.memory_space<vmem>>, vector<1x1x8xf32>
    %137 = vector.shape_cast %136 : vector<1x1x8xf32> to vector<1x8xf32>
    %cst_136 = arith.constant dense<0.000000e+00> : vector<1x256xf32>
    %138 = tpu.matmul %137, %115, %cst_136 {dimension_numbers = #tpu.dot_dimension_numbers<[1], [0], [0], [1], [0, 0, 1, 1], [], []>} : vector<1x8xf32>, vector<8x256xf32>, vector<1x256xf32> -> vector<1x256xf32>
    %c3_137 = arith.constant 3 : index
    %c0_138 = arith.constant 0 : index
    %c0_139 = arith.constant 0 : index
    %139 = vector.load %arg12[%c3_137, %c0_138, %c0_139] : memref<8x256x32xf32, #tpu.memory_space<vmem>>, vector<1x256x32xf32>
    %140 = vector.shape_cast %139 : vector<1x256x32xf32> to vector<256x32xf32>
    %cst_140 = arith.constant dense<0.000000e+00> : vector<1x32xf32>
    %141 = tpu.matmul %138, %140, %cst_140 {dimension_numbers = #tpu.dot_dimension_numbers<[1], [0], [0], [1], [0, 0, 1, 1], [], []>} : vector<1x256xf32>, vector<256x32xf32>, vector<1x32xf32> -> vector<1x32xf32>
    %142 = arith.addf %135, %141 : vector<1x32xf32>
    %c4 = arith.constant 4 : index
    %c0_141 = arith.constant 0 : index
    %c0_142 = arith.constant 0 : index
    %143 = vector.load %arg11[%c4, %c0_141, %c0_142] : memref<8x1x8xf32, #tpu.memory_space<vmem>>, vector<1x1x8xf32>
    %144 = vector.shape_cast %143 : vector<1x1x8xf32> to vector<1x8xf32>
    %cst_143 = arith.constant dense<0.000000e+00> : vector<1x256xf32>
    %145 = tpu.matmul %144, %115, %cst_143 {dimension_numbers = #tpu.dot_dimension_numbers<[1], [0], [0], [1], [0, 0, 1, 1], [], []>} : vector<1x8xf32>, vector<8x256xf32>, vector<1x256xf32> -> vector<1x256xf32>
    %c4_144 = arith.constant 4 : index
    %c0_145 = arith.constant 0 : index
    %c0_146 = arith.constant 0 : index
    %146 = vector.load %arg12[%c4_144, %c0_145, %c0_146] : memref<8x256x32xf32, #tpu.memory_space<vmem>>, vector<1x256x32xf32>
    %147 = vector.shape_cast %146 : vector<1x256x32xf32> to vector<256x32xf32>
    %cst_147 = arith.constant dense<0.000000e+00> : vector<1x32xf32>
    %148 = tpu.matmul %145, %147, %cst_147 {dimension_numbers = #tpu.dot_dimension_numbers<[1], [0], [0], [1], [0, 0, 1, 1], [], []>} : vector<1x256xf32>, vector<256x32xf32>, vector<1x32xf32> -> vector<1x32xf32>
    %149 = arith.addf %142, %148 : vector<1x32xf32>
    %c5 = arith.constant 5 : index
    %c0_148 = arith.constant 0 : index
    %c0_149 = arith.constant 0 : index
    %150 = vector.load %arg11[%c5, %c0_148, %c0_149] : memref<8x1x8xf32, #tpu.memory_space<vmem>>, vector<1x1x8xf32>
    %151 = vector.shape_cast %150 : vector<1x1x8xf32> to vector<1x8xf32>
    %cst_150 = arith.constant dense<0.000000e+00> : vector<1x256xf32>
    %152 = tpu.matmul %151, %115, %cst_150 {dimension_numbers = #tpu.dot_dimension_numbers<[1], [0], [0], [1], [0, 0, 1, 1], [], []>} : vector<1x8xf32>, vector<8x256xf32>, vector<1x256xf32> -> vector<1x256xf32>
    %c5_151 = arith.constant 5 : index
    %c0_152 = arith.constant 0 : index
    %c0_153 = arith.constant 0 : index
    %153 = vector.load %arg12[%c5_151, %c0_152, %c0_153] : memref<8x256x32xf32, #tpu.memory_space<vmem>>, vector<1x256x32xf32>
    %154 = vector.shape_cast %153 : vector<1x256x32xf32> to vector<256x32xf32>
    %cst_154 = arith.constant dense<0.000000e+00> : vector<1x32xf32>
    %155 = tpu.matmul %152, %154, %cst_154 {dimension_numbers = #tpu.dot_dimension_numbers<[1], [0], [0], [1], [0, 0, 1, 1], [], []>} : vector<1x256xf32>, vector<256x32xf32>, vector<1x32xf32> -> vector<1x32xf32>
    %156 = arith.addf %149, %155 : vector<1x32xf32>
    %c6 = arith.constant 6 : index
    %c0_155 = arith.constant 0 : index
    %c0_156 = arith.constant 0 : index
    %157 = vector.load %arg11[%c6, %c0_155, %c0_156] : memref<8x1x8xf32, #tpu.memory_space<vmem>>, vector<1x1x8xf32>
    %158 = vector.shape_cast %157 : vector<1x1x8xf32> to vector<1x8xf32>
    %cst_157 = arith.constant dense<0.000000e+00> : vector<1x256xf32>
    %159 = tpu.matmul %158, %115, %cst_157 {dimension_numbers = #tpu.dot_dimension_numbers<[1], [0], [0], [1], [0, 0, 1, 1], [], []>} : vector<1x8xf32>, vector<8x256xf32>, vector<1x256xf32> -> vector<1x256xf32>
    %c6_158 = arith.constant 6 : index
    %c0_159 = arith.constant 0 : index
    %c0_160 = arith.constant 0 : index
    %160 = vector.load %arg12[%c6_158, %c0_159, %c0_160] : memref<8x256x32xf32, #tpu.memory_space<vmem>>, vector<1x256x32xf32>
    %161 = vector.shape_cast %160 : vector<1x256x32xf32> to vector<256x32xf32>
    %cst_161 = arith.constant dense<0.000000e+00> : vector<1x32xf32>
    %162 = tpu.matmul %159, %161, %cst_161 {dimension_numbers = #tpu.dot_dimension_numbers<[1], [0], [0], [1], [0, 0, 1, 1], [], []>} : vector<1x256xf32>, vector<256x32xf32>, vector<1x32xf32> -> vector<1x32xf32>
    %163 = arith.addf %156, %162 : vector<1x32xf32>
    %c7 = arith.constant 7 : index
    %c0_162 = arith.constant 0 : index
    %c0_163 = arith.constant 0 : index
    %164 = vector.load %arg11[%c7, %c0_162, %c0_163] : memref<8x1x8xf32, #tpu.memory_space<vmem>>, vector<1x1x8xf32>
    %165 = vector.shape_cast %164 : vector<1x1x8xf32> to vector<1x8xf32>
    %cst_164 = arith.constant dense<0.000000e+00> : vector<1x256xf32>
    %166 = tpu.matmul %165, %115, %cst_164 {dimension_numbers = #tpu.dot_dimension_numbers<[1], [0], [0], [1], [0, 0, 1, 1], [], []>} : vector<1x8xf32>, vector<8x256xf32>, vector<1x256xf32> -> vector<1x256xf32>
    %c7_165 = arith.constant 7 : index
    %c0_166 = arith.constant 0 : index
    %c0_167 = arith.constant 0 : index
    %167 = vector.load %arg12[%c7_165, %c0_166, %c0_167] : memref<8x256x32xf32, #tpu.memory_space<vmem>>, vector<1x256x32xf32>
    %168 = vector.shape_cast %167 : vector<1x256x32xf32> to vector<256x32xf32>
    %cst_168 = arith.constant dense<0.000000e+00> : vector<1x32xf32>
    %169 = tpu.matmul %166, %168, %cst_168 {dimension_numbers = #tpu.dot_dimension_numbers<[1], [0], [0], [1], [0, 0, 1, 1], [], []>} : vector<1x256xf32>, vector<256x32xf32>, vector<1x32xf32> -> vector<1x32xf32>
    %170 = arith.addf %163, %169 : vector<1x32xf32>
    %c0_169 = arith.constant 0 : index
    %c0_170 = arith.constant 0 : index
    %171 = vector.load %arg13[%c0_169, %c0_170] : memref<1x32xf32, #tpu.memory_space<vmem>>, vector<1x32xf32>
    %172 = arith.addf %170, %171 : vector<1x32xf32>
    %cst_171 = arith.constant 0.000000e+00 : f32
    %173 = vector.broadcast %cst_171 : f32 to vector<1x32xf32>
    %174 = arith.cmpf ogt, %172, %173 : vector<1x32xf32>
    %cst_172 = arith.constant 0.000000e+00 : f32
    %175 = vector.broadcast %cst_172 : f32 to vector<1x32xf32>
    %176 = arith.minimumf %172, %175 : vector<1x32xf32>
    %177 = math.exp %176 : vector<1x32xf32>
    %cst_173 = arith.constant 1.000000e+00 : f32
    %178 = vector.broadcast %cst_173 : f32 to vector<1x32xf32>
    %179 = arith.subf %177, %178 : vector<1x32xf32>
    %180 = arith.select %174, %172, %179 : vector<1x32xi1>, vector<1x32xf32>
    %c0_174 = arith.constant 0 : index
    %c0_175 = arith.constant 0 : index
    %c0_176 = arith.constant 0 : index
    %181 = vector.load %arg14[%c0_174, %c0_175, %c0_176] : memref<1x1x32xf32, #tpu.memory_space<vmem>>, vector<1x1x32xf32>
    %182 = vector.shape_cast %181 : vector<1x1x32xf32> to vector<1x32xf32>
    %183 = vector.shape_cast %180 : vector<1x32xf32> to vector<1x1x32xf32>
    tpu.vector_store %arg14[%c0_174, %c0_175, %c0_176], %183 {strides = array<i32>} : memref<1x1x32xf32, #tpu.memory_space<vmem>>, vector<1x1x32xf32>,
    return
  }
  func.func @transform_0(%arg0: i32) -> (i32, i32, i32) {
    %c0_i32 = arith.constant 0 : i32
    %c0_i32_0 = arith.constant 0 : i32
    %c0_i32_1 = arith.constant 0 : i32
    return %arg0, %c0_i32, %c0_i32_0 : i32, i32, i32
  }
  func.func @transform_1(%arg0: i32) -> (i32, i32, i32) {
    %c0_i32 = arith.constant 0 : i32
    %c0_i32_0 = arith.constant 0 : i32
    %c0_i32_1 = arith.constant 0 : i32
    %c0_i32_2 = arith.constant 0 : i32
    return %c0_i32, %c0_i32_0, %c0_i32_1 : i32, i32, i32
  }
  func.func @transform_2(%arg0: i32) -> (i32, i32, i32) {
    %c0_i32 = arith.constant 0 : i32
    %c0_i32_0 = arith.constant 0 : i32
    %c0_i32_1 = arith.constant 0 : i32
    %c0_i32_2 = arith.constant 0 : i32
    return %c0_i32, %c0_i32_0, %c0_i32_1 : i32, i32, i32
  }
  func.func @transform_3(%arg0: i32) -> (i32, i32) {
    %c0_i32 = arith.constant 0 : i32
    %c0_i32_0 = arith.constant 0 : i32
    %c0_i32_1 = arith.constant 0 : i32
    return %c0_i32, %c0_i32_0 : i32, i32
  }
  func.func @transform_4(%arg0: i32) -> (i32, i32, i32) {
    %c0_i32 = arith.constant 0 : i32
    %c0_i32_0 = arith.constant 0 : i32
    %c0_i32_1 = arith.constant 0 : i32
    %c0_i32_2 = arith.constant 0 : i32
    return %c0_i32, %c0_i32_0, %c0_i32_1 : i32, i32, i32
  }
  func.func @transform_5(%arg0: i32) -> (i32, i32, i32) {
    %c0_i32 = arith.constant 0 : i32
    %c0_i32_0 = arith.constant 0 : i32
    %c0_i32_1 = arith.constant 0 : i32
    %c0_i32_2 = arith.constant 0 : i32
    return %c0_i32, %c0_i32_0, %c0_i32_1 : i32, i32, i32
  }
  func.func @transform_6(%arg0: i32) -> (i32, i32) {
    %c0_i32 = arith.constant 0 : i32
    %c0_i32_0 = arith.constant 0 : i32
    %c0_i32_1 = arith.constant 0 : i32
    return %c0_i32, %c0_i32_0 : i32, i32
  }
  func.func @transform_7(%arg0: i32) -> (i32, i32, i32) {
    %c0_i32 = arith.constant 0 : i32
    %c0_i32_0 = arith.constant 0 : i32
    %c0_i32_1 = arith.constant 0 : i32
    %c0_i32_2 = arith.constant 0 : i32
    return %c0_i32, %c0_i32_0, %c0_i32_1 : i32, i32, i32
  }
  func.func @transform_8(%arg0: i32) -> (i32, i32, i32) {
    %c0_i32 = arith.constant 0 : i32
    %c0_i32_0 = arith.constant 0 : i32
    %c0_i32_1 = arith.constant 0 : i32
    %c0_i32_2 = arith.constant 0 : i32
    return %c0_i32, %c0_i32_0, %c0_i32_1 : i32, i32, i32
  }
  func.func @transform_9(%arg0: i32) -> (i32, i32) {
    %c0_i32 = arith.constant 0 : i32
    %c0_i32_0 = arith.constant 0 : i32
    %c0_i32_1 = arith.constant 0 : i32
    return %c0_i32, %c0_i32_0 : i32, i32
  }
  func.func @transform_10(%arg0: i32) -> (i32, i32, i32) {
    %c0_i32 = arith.constant 0 : i32
    %c0_i32_0 = arith.constant 0 : i32
    %c0_i32_1 = arith.constant 0 : i32
    %c0_i32_2 = arith.constant 0 : i32
    return %c0_i32, %c0_i32_0, %c0_i32_1 : i32, i32, i32
  }
  func.func @transform_11(%arg0: i32) -> (i32, i32, i32) {
    %c0_i32 = arith.constant 0 : i32
    %c0_i32_0 = arith.constant 0 : i32
    %c0_i32_1 = arith.constant 0 : i32
    %c0_i32_2 = arith.constant 0 : i32
    return %c0_i32, %c0_i32_0, %c0_i32_1 : i32, i32, i32
  }
  func.func @transform_12(%arg0: i32) -> (i32, i32) {
    %c0_i32 = arith.constant 0 : i32
    %c0_i32_0 = arith.constant 0 : i32
    %c0_i32_1 = arith.constant 0 : i32
    return %c0_i32, %c0_i32_0 : i32, i32
  }
  func.func @transform_13(%arg0: i32) -> (i32, i32, i32) {
    %c0_i32 = arith.constant 0 : i32
    %c0_i32_0 = arith.constant 0 : i32
    %c0_i32_1 = arith.constant 0 : i32
    return %arg0, %c0_i32, %c0_i32_0 : i32, i32, i32
  }
}

</mosaic_0001>

<bundles_post_ra>
// kernel: encoder_small_forward.1
= control target key start
LH: loop header
LB: loop body
LE: loop exit
PB: predicated region body
PF: predicated region fallthrough
CT: control target
= control target key end

     0   :  { %s8839_s0 = inlined_call_operand.hbm [shape: f32[2,64,64], index: 0, kind: input, shape index: {}]   ;;  %s8840_s1 = inlined_call_operand.hbm [shape: f32[4,32,64], index: 1, kind: input, shape index: {}]   ;;  %s8841_s2 = inlined_call_operand.vmem [shape: f32[4,64,256], index: 2, kind: input, shape index: {}]   ;;  %s8842_s3 = inlined_call_operand.hbm [shape: f32[1,256], index: 3, kind: input, shape index: {}]   ;;  %s8843_s4 = inlined_call_operand.hbm [shape: f32[4,16,32], index: 4, kind: input, shape index: {}]   ;;  %s8844_s5 = inlined_call_operand.vmem [shape: f32[4,256,256], index: 5, kind: input, shape index: {}]   ;;  %s8845_s6 = inlined_call_operand.hbm [shape: f32[1,256], index: 6, kind: input, shape index: {}]   ;;  %s8846_s7 = inlined_call_operand.hbm [shape: f32[4,8,16], index: 7, kind: input, shape index: {}]   ;;  %s8847_s8 = inlined_call_operand.hbm [shape: f32[4,256,256], index: 8, kind: input, shape index: {}]   ;;  %s8848_s9 = inlined_call_operand.hbm [shape: f32[1,256], index: 9, kind: input, shape index: {}]   ;;  %s8849_s10 = inlined_call_operand.vmem [shape: f32[8,1,8], index: 10, kind: input, shape index: {}]   ;;  %s8850_s11 = inlined_call_operand.vmem [shape: f32[8,256,32], index: 11, kind: input, shape index: {}]   ;;  %s8851_s12 = inlined_call_operand.vmem [shape: f32[1,32], index: 12, kind: input, shape index: {}]   ;;  %s8852_s13 = inlined_call_operand.hbm [shape: f32[2,1,32], index: 13, kind: output, shape index: {}]  }
   0x1   :  { %8859 = sst [smem:[#allocation23_spill]] %s8840_s1 }
   0x2   :  { %8860 = sst [smem:[#allocation24_spill]] %s8842_s3 }
   0x3   :  { %8861 = sst [smem:[#allocation25_spill]] %s8843_s4 }
   0x4   :  { %8862 = sst [smem:[#allocation26_spill]] %s8845_s6 }
   0x5   :  { %8863 = sst [smem:[#allocation27_spill]] %s8846_s7 }
   0x6   :  { %8864 = sst [smem:[#allocation28_spill]] %s8847_s8 }
   0x7   :  { %8865 = sst [smem:[#allocation29_spill]] %s8848_s9 }
   0x8   :  { %18 = vsyncpa [#allocation3], 0 }
   0x9   :  { %20 = vsyncpa [#allocation3 + $0x1], 0 }
   0xa   :  { %21 = vsyncpa [#allocation6], 0 }
   0xb   :  { %22 = vsyncpa [#allocation9], 0 }
   0xc   :  { %23 = vsyncpa [#allocation12], 0 }
   0xd   :  { %24 = vsyncpa [#allocation15], 0 }
   0xe   :  { %25 = vsyncpa [#allocation4], 0 }
   0xf   :  { %27 = vsyncpa [#allocation4 + $0x1], 0  ;;  %s6462_s25 = smov 0   ;;  %s6464_s26 = smov 0  }
  0x10   :  { %s6466_s27 = smov 0   ;;  %s6468_s28 = smov 0  }
  0x11 LB: > { %s6378_s29 = smov [#allocation5]   ;;  %s6483_s14 = sadd.s32 4294967295, %s6376_s28   ;;  %s6376_s28 = sphi %s6468_s28, %s8899_s28   ;;  %s6372_s27 = sphi %s6466_s27, %s8898_s27   ;;  %s6368_s26 = sphi %s6464_s26, %s8897_s26   ;;  %s6364_s25 = sphi %s6462_s25, %s8896_s25  }
  0x12   : > { %s354_s30 = sshll.u32 %s6378_s29, 4  ;;  %p4955_p0 = scmp.ge.s32.totalorder %s6376_s28, 1  ;;  %s355_s30 = int_to_ptr.vmem [resolvable:$true] %s354_s30 }
  0x13   : > { %p8853_p1 = scmp.eq.s32.totalorder %s6483_s14, 0  ;;  %p342_p2 = scmp.lt.s32.totalorder %s6376_s28, 3 }
  0x14   : > { %s6379_s16 = smov [#allocation8]   ;;  %s6380_s19 = smov [#allocation11]  }
  0x15   : > { %p6488_p3 = pnand %p4955_p0, %p342_p2  ;;  %s381_s17 = sshll.u32 %s6379_s16, 4  ;;  %s6501_s17 = int_to_ptr.vmem [resolvable:$true] %s381_s17 }
  0x16   : > { %s408_s20 = sshll.u32 %s6380_s19, 4  ;;  %s6097_s22 = scalar_lea.vmem %s355_s30, 2048  ;;  %s6503_s20 = int_to_ptr.vmem [resolvable:$true] %s408_s20 }
  0x17   : > { %s8866_s15 = scalar_select %p6488_p3, 1, 0 }
  0x18   : > { %p5966_p5 = pneg %p6488_p3  ;;  %p6098_p8 = scmp.ne.s32.totalorder %s355_s30, %s6097_s22 }
  0x19   : > { %p6105_p11 = scmp.lt.s32.totalorder %s355_s30, %s355_s30  ;;  %p6106_p12 = scmp.lt.s32.totalorder %s6097_s22, %s6097_s22 }
  0x1a   : > { %p6497_p6 = pnand %p5966_p5, %p8853_p1 }
  0x1b   : > { %p6107_p13 = por %p6106_p12, %p6105_p11 }
  0x1c   : > { %p6507_p7 = pneg %p6497_p6 }
  0x1e   : > { %p6100_p9 = pnand %p6098_p8, %p6507_p7 }
  0x20   : > { %p6101_p10 = pneg %p6100_p9 }
  0x22   : > { %p6108_p0 = pnand %p6107_p13, %p6101_p10 }
  0x24   : > { %6111 = shalt.err (!%p6108_p0)
}
  0x25   : > { %s8855_s23 = smov 128   ;;  %s8856_s24 = smov 8  }
  0x26   : > { %s8869_s1 = sld [smem:[#allocation23_spill]]  ;;  %s6123_s19 = scalar_lea.vmem %s6501_s17, 1024 }
  0x27   : > { %p6124_p2 = scmp.ne.s32.totalorder %s6501_s17, %s6123_s19  ;;  %p6131_p9 = scmp.lt.s32.totalorder %s6501_s17, %s6501_s17 }
  0x28   : > { %p6132_p10 = scmp.lt.s32.totalorder %s6123_s19, %s6123_s19 }
  0x29   : > { %p6126_p5 = pnand %p6124_p2, %p6507_p7 }
  0x2a   : > { %p6133_p11 = por %p6132_p10, %p6131_p9 }
  0x2b   : > { %p6127_p8 = pneg %p6126_p5 }
  0x2c   : > { %5969 = dma.hbm_to_vmem [thread:$0]  (!%p6497_p6), %s8869_s1, 2048, %s355_s30, [#allocation6], %s8855_s23, %s8855_s23, %s8856_s24  }
  0x2d   : > { %p6134_p12 = pnand %p6133_p11, %p6127_p8 }
  0x2f   : > { %6137 = shalt.err (!%p6134_p12)
}
  0x30   : > { %s8870_s4 = sld [smem:[#allocation25_spill]]  ;;  %s6149_s30 = scalar_lea.vmem %s6503_s20, 512 }
  0x31   : > { %p6150_p13 = scmp.ne.s32.totalorder %s6503_s20, %s6149_s30  ;;  %p6157_p5 = scmp.lt.s32.totalorder %s6503_s20, %s6503_s20 }
  0x32   : > { %p6158_p8 = scmp.lt.s32.totalorder %s6149_s30, %s6149_s30 }
  0x33   : > { %p6152_p0 = pnand %p6150_p13, %p6507_p7 }
  0x34   : > { %p6159_p9 = por %p6158_p8, %p6157_p5 }
  0x35   : > { %p6153_p2 = pneg %p6152_p0 }
  0x36   : > { %5975 = dma.hbm_to_vmem [thread:$0]  (!%p6497_p6), %s8870_s4, 1024, %s6501_s17, [#allocation9], %s8855_s23, %s8855_s23, %s8856_s24  }
  0x37   : > { %p6160_p10 = pnand %p6159_p9, %p6153_p2 }
  0x39   : > { %6163 = shalt.err (!%p6160_p10)
}
  0x3a   : > { %s8871_s7 = sld [smem:[#allocation27_spill]]  ;;  %s6383_s17 = smov [#allocation7]  }
  0x3b   : > { %s371_s22 = sshll.u32 %s6383_s17, 4  ;;  %s6384_s29 = smov [#allocation10]   ;;  %s372_s22 = int_to_ptr.vmem [resolvable:$true] %s371_s22 }
  0x3c   : > { %s398_s1 = sshll.u32 %s6384_s29, 4  ;;  %s6175_s30 = scalar_lea.vmem %s372_s22, 32  ;;  %s399_s1 = int_to_ptr.vmem [resolvable:$true] %s398_s1 }
  0x3d   : > { %p6176_p11 = scmp.ne.s32.totalorder %s372_s22, %s6175_s30  ;;  %p6183_p0 = scmp.lt.s32.totalorder %s372_s22, %s372_s22 }
  0x3e   : > { %p6184_p2 = scmp.lt.s32.totalorder %s6175_s30, %s6175_s30 }
  0x3f   : > { %p6178_p12 = pnand %p6176_p11, %p6507_p7 }
  0x40   : > { %5981 = dma.hbm_to_vmem [thread:$0]  (!%p6497_p6), %s8871_s7, 512, %s6503_s20, [#allocation12], %s8855_s23, %s8855_s23, %s8856_s24  }
  0x41   : > { %p6179_p13 = pneg %p6178_p12  ;;  %p6185_p5 = por %p6184_p2, %p6183_p0 }
  0x43   : > { %p6186_p8 = pnand %p6185_p5, %p6179_p13 }
  0x45   : > { %6189 = shalt.err (!%p6186_p8)
}
  0x46   : > { %s8872_s3 = sld [smem:[#allocation24_spill]]  ;;  %s6201_s20 = scalar_lea.vmem %s399_s1, 32 }
  0x47   : > { %p6202_p9 = scmp.ne.s32.totalorder %s399_s1, %s6201_s20  ;;  %p6209_p11 = scmp.lt.s32.totalorder %s399_s1, %s399_s1 }
  0x48   : > { %p6210_p12 = scmp.lt.s32.totalorder %s6201_s20, %s6201_s20 }
  0x49   : > { %p6204_p10 = pnand %p6202_p9, %p6507_p7 }
  0x4a   : > { %p6211_p1 = por %p6210_p12, %p6209_p11 }
  0x4b   : > { %p6205_p4 = pneg %p6204_p10 }
  0x4c   : > { %5972 = dma.hbm_to_vmem [thread:$0]  (!%p6497_p6), %s8872_s3, 32, %s372_s22, [#allocation6]  }
  0x4d   : > { %p6212_p3 = pnand %p6211_p1, %p6205_p4 }
  0x4f   : > { %6215 = shalt.err (!%p6212_p3)
}
  0x50   : > { %s8873_s6 = sld [smem:[#allocation26_spill]]  ;;  %s6385_s30 = smov [#allocation13]  }
  0x51   : > { %s421_s22 = sshll.u32 %s6385_s30, 4  ;;  %s422_s22 = int_to_ptr.vmem [resolvable:$true] %s421_s22 }
  0x52   : > { %s6227_s16 = scalar_lea.vmem %s422_s22, 32768  ;;  %p6235_p5 = scmp.lt.s32.totalorder %s422_s22, %s422_s22 }
  0x53   : > { %p6228_p13 = scmp.ne.s32.totalorder %s422_s22, %s6227_s16  ;;  %p6236_p8 = scmp.lt.s32.totalorder %s6227_s16, %s6227_s16 }
  0x55   : > { %p6230_p0 = pnand %p6228_p13, %p6507_p7  ;;  %p6237_p9 = por %p6236_p8, %p6235_p5 }
  0x56   : > { %5978 = dma.hbm_to_vmem [thread:$0]  (!%p6497_p6), %s8873_s6, 32, %s399_s1, [#allocation9]  }
  0x57   : > { %p6231_p2 = pneg %p6230_p0 }
  0x59   : > { %p6238_p1 = pnand %p6237_p9, %p6231_p2 }
  0x5b   : > { %6241 = shalt.err (!%p6238_p1)
}
  0x5c   : > { %s6386_s19 = smov 256   ;;  %s6387_s20 = smov 16  }
  0x5d   : > { %s8874_s8 = sld [smem:[#allocation28_spill]]  ;;  %s6388_s29 = smov [#allocation14]  }
  0x5e   : > { %s435_s30 = sshll.u32 %s6388_s29, 4  ;;  %s436_s30 = int_to_ptr.vmem [resolvable:$true] %s435_s30 }
  0x5f   : > { %s6253_s23 = scalar_lea.vmem %s436_s30, 32  ;;  %p6261_p11 = scmp.lt.s32.totalorder %s436_s30, %s436_s30 }
  0x60   : > { %p6254_p3 = scmp.ne.s32.totalorder %s436_s30, %s6253_s23  ;;  %p6262_p12 = scmp.lt.s32.totalorder %s6253_s23, %s6253_s23 }
  0x62   : > { %p6256_p4 = pnand %p6254_p3, %p6507_p7  ;;  %p6263_p13 = por %p6262_p12, %p6261_p11 }
  0x63   : > { %5984 = dma.hbm_to_vmem [thread:$0]  (!%p6497_p6), %s8874_s8, 32768, %s422_s22, [#allocation12], %s6386_s19, %s6386_s19, %s6387_s20  }
  0x64   : > { %p6257_p10 = pneg %p6256_p4 }
  0x66   : > { %p6264_p0 = pnand %p6263_p13, %p6257_p10 }
  0x68   : > { %6267 = shalt.err (!%p6264_p0)
}
  0x69   : > { %s8875_s9 = sld [smem:[#allocation29_spill]]  ;;  %s4954_s21 = sadd.s32 4294967294, %s6376_s28  }
  0x6a   : > { %s6581_s18 = sadd.s32 1, %s6376_s28   ;;  %s40_s23 = sadd.s32 1, %s6372_s27 }
  0x6b   : > { %s37_s24 = ssub.s32 %s6376_s28, %s6581_s18  ;;  %p47_p7 = scmp.ne.s32.totalorder %s6372_s27, %s6368_s26 }
  0x6c   : > { %p38_p2 = scmp.eq.s32.totalorder %s37_s24, 0  ;;  %p48_p5 = scmp.eq.s32.totalorder %s6376_s28, 0 }
  0x6d   : > { %p53_p8 = scmp.ne.s32.totalorder %s6368_s26, %s6364_s25  ;;  %p329_p9 = scmp.eq.s32.totalorder %s6483_s14, 1 }
  0x6e   : > { %s6593_s22 = scalar_select %p38_p2, %s6372_s27, %s40_s23  }
  0x6f   : > { %5987 = dma.hbm_to_vmem [thread:$0]  (!%p6497_p6), %s8875_s9, 32, %s436_s30, [#allocation15]  }
  0x70   : > { %p49_p1 = por %p48_p5, %p47_p7  ;;  %p8876_p3 = scmp.eq.s32.totalorder %s6483_s14, 0 }
  0x71   : > { %p6601_p6 = por %p329_p9, %p47_p7  ;;  %p335_p10 = scmp.eq.s32.totalorder %s4954_s21, 1 }
  0x72   : > { %p6597_p4 = por %p8876_p3, %p53_p8  ;;  %p6003_p11 = scmp.lt.s32.totalorder %s6376_s28, 2 }
  0x73   : > { %s8878_s20 = scalar_select %p6601_p6, 1, 0 }
  0x74   : > { %s8877_s19 = scalar_select %p6597_p4, 1, 0 }
  0x75   : > { %s455_s17 = sand.u32 1, %s6372_s27   ;;  %p6607_p12 = por %p335_p10, %p53_p8 }
  0x76   : > { %s4964_s29 = sshll.u32 %s455_s17, 6  ;;  %s5517_s30 = sshll.u32 %s6376_s28, 10 }
  0x77   : > { %s8879_s1 = scalar_select %p6607_p12, 1, 0 }
  0x78   : > { %s6615_s24 = scalar_lea.hbm %s8839_s0, %s5517_s30  ;;  %s459_s3 = scalar_lea.vmem [#allocation2], %s4964_s29 }
  0x79   : > { %s466_s4 = sshll.u32 %s459_s3, 4  ;;  %p6617_p13 = pnand %p6003_p11, %p49_p1  ;;  %s6621_s4 = int_to_ptr.vmem [resolvable:$true] %s466_s4 }
  0x7a   : > { %s6623_s6 = scalar_lea.sflag [#allocation3], %s455_s17  ;;  %s6268_s7 = scalar_lea.hbm %s6615_s24, 1024 }
  0x7b   : > { %p6269_p0 = scmp.ne.s32.totalorder %s6615_s24, %s6268_s7  ;;  %p6270_p7 = pneg %p6617_p13 }
  0x7c   : > { %s6273_s29 = scalar_lea.hbm %s8839_s0, 2048  ;;  %p6274_p8 = scmp.lt.s32.totalorder %s6615_s24, %s8839_s0 }
  0x7d   : > { %p6271_p2 = pnand %p6270_p7, %p6269_p0  ;;  %p6275_p9 = scmp.lt.s32.totalorder %s6273_s29, %s6268_s7 }
  0x7f   : > { %p6272_p5 = pneg %p6271_p2  ;;  %p6276_p1 = por %p6275_p9, %p6274_p8 }
  0x81   : > { %p6277_p3 = pnand %p6276_p1, %p6272_p5 }
  0x83   : > { %6280 = shalt.err (!%p6277_p3)
}
  0x84   : > { %s6281_s17 = scalar_lea.vmem %s6621_s4, 1024  ;;  %s6389_s8 = smov [#allocation2]  }
  0x85   : > { %p6282_p10 = scmp.ne.s32.totalorder %s6621_s4, %s6281_s17  ;;  %s6286_s9 = sshll.u32 %s6389_s8, 4  ;;  %s6287_s9 = int_to_ptr.vmem [resolvable:$false] %s6286_s9 }
  0x86   : > { %s6288_s30 = scalar_lea.vmem %s6287_s9, 2048  ;;  %p6289_p2 = scmp.lt.s32.totalorder %s6621_s4, %s6287_s9 }
  0x87   : > { %p6284_p11 = pnand %p6282_p10, %p6270_p7  ;;  %p6290_p12 = scmp.lt.s32.totalorder %s6288_s30, %s6281_s17 }
  0x89   : > { %p6285_p0 = pneg %p6284_p11  ;;  %p6291_p6 = por %p6290_p12, %p6289_p2 }
  0x8b   : > { %p6292_p4 = pnand %p6291_p6, %p6285_p0 }
  0x8d   : > { %6295 = shalt.err (!%p6292_p4)
}
  0x8e   : > { %s8881_s7 = smov 8   ;;  %s8882_s16 = smov 128  }
  0x8f   : > { %5991 = dma.hbm_to_vmem [thread:$0]  (!%p6617_p13), %s6615_s24, 1024, %s6621_s4, %s6623_s6, %s8882_s16, %s8882_s16, %s8881_s7  }
  0x90   : > { %p8883_p7 = scmp.ne.s32.totalorder %s8866_s15, 0 }
  0x91   : > { %s6650_s8 = sand.u32 (!%p8883_p7), 1, %s6368_s26   ;;  %p8884_p4 = scmp.ne.s32.totalorder (!%p8883_p7), %s8877_s19, 0 }
  0x92   : > { %478 = sbr.rel (%p8883_p7) target bundleno = 3148 (0xc4c), region = 72  ;;  %s4968_s9 = sshll.u32 (!%p8883_p7), %s6650_s8, 6 }
  0x93   : > { %s481_s29 = scalar_lea.sflag (!%p8883_p7), [#allocation3], %s6650_s8  ;;  %s6654_s3 = scalar_lea.vmem (!%p8883_p7), [#allocation2], %s4968_s9 }
  0x97   : > { %6339 = dma.done.wait (%p8884_p4), %s481_s29, 1024  }
  0x98   : > { %6341 = vsyncadd (%p8884_p4), %s481_s29, 4294966272  ;;  %p8885_p6 = scmp.eq.s32.totalorder %s6483_s14, 0 }
  0x9a   : > { %6343 = dma.done.wait (%p8885_p6), [#allocation6], 2080   ;;  %p8886_p12 = pmov %p8885_p6 }
  0x9b   : > { %p8887_p13 = pmov %p8885_p6 }
  0x9c   : > { %6345 = vsyncadd (%p8886_p12), [#allocation6], 4294965216 }
  0x9d   : > { %6347 = dma.done.wait (%p8887_p13), [#allocation9], 1056   ;;  %p8888_p5 = pmov %p8885_p6 }
  0x9f   : > { %6349 = vsyncadd (%p8888_p5), [#allocation9], 4294966240  ;;  %p8889_p8 = pmov %p8888_p5 }
  0xa0   : > { %p8890_p9 = pmov %p8888_p5 }
  0xa1   : > { %6351 = dma.done.wait (%p8889_p8), [#allocation12], 33280  }
  0xa2   : > { %6353 = vsyncadd (%p8890_p9), [#allocation12], 4294934016  ;;  %p8891_p1 = pmov %p8888_p5 }
  0xa4   : > { %6355 = dma.done.wait (%p8891_p1), [#allocation15], 32   ;;  %p8892_p3 = pmov %p8891_p1 }
  0xa5   : > { %v6677_v0 = vld [vmem:[%s6654_s3 + $0x38] sm:$0xff]  ;;  %v6680_v1 = vld [vmem:[%s6654_s3 + $0x30] sm:$0xff]  ;;  %v6687_v2 = vld [vmem:[%s6654_s3 + $0x28] sm:$0xff]  ;;  %vm566_vm0 = vcmask 523264   ;;  %v6390_v48 = vmov 0.0   ;;  %vm1527_vm9 = vcmask 261120  }
  0xa6   : > { %6357 = vsyncadd (%p8892_p3), [#allocation15], 4294967264  ;;  %5846 = vmatprep.subr.mxu0 %v6677_v0  ;;  %5868 = vmatprep.subr.mxu1 %v6677_v0  ;;  %v6694_v3 = vld [vmem:[%s6654_s3 + $0x20] sm:$0xff]  ;;  %v6701_v4 = vld [vmem:[%s6654_s3 + $0x18] sm:$0xff]  ;;  %vm2485_vm14 = vcmask 130048   ;;  %s5514_s30 = sshll.u32 %s6483_s14, 4 }
  0xa7   : > { %5847 = vmatpush3.msra.mxu0 %v6677_v0  ;;  %5869 = vmatpush3.msra.mxu1 %v6677_v0  ;;  %v6708_v5 = vld [vmem:[%s6654_s3 + $0x10] sm:$0xff]  ;;  %v6715_v6 = vld [vmem:[%s6654_s3 + $0x8] sm:$0xff]  ;;  %v6722_v7 = vld [vmem:[%s6654_s3] sm:$0xff]  ;;  %s553_s7 = scalar_lea.vmem [#allocation16], %s6650_s8  ;;  %s8802_s3 = scalar_lea.hbm %s8852_s13, %s5514_s30 }
  0xa8   : > { %5848 = vmatprep.subr.mxu0 %v6680_v1  ;;  %5870 = vmatprep.subr.mxu1 %v6680_v1  ;;  %v562_v8 = vld [vmem:[#allocation5] sm:$0xff]  ;;  %v563_v10 = vld [vmem:[#allocation5 + $0x8] sm:$0xff]  ;;  %v683_v12 = vld [vmem:[#allocation5 + $0x30] sm:$0xff]  ;;  %s4821_s16 = sshll.u32 %s553_s7, 4  ;;  %s4809_s4 = scalar_lea.sflag [#allocation4], %s6650_s8  ;;  %s4822_s16 = int_to_ptr.vmem [resolvable:$true] %s4821_s16 }
  0xa9   : > { %5849 = vmatpush3.msra.mxu0 %v6680_v1  ;;  %5871 = vmatpush3.msra.mxu1 %v6680_v1  ;;  %v681_v9 = vld [vmem:[#allocation5 + $0x20] sm:$0xff]  ;;  %v682_v11 = vld [vmem:[#allocation5 + $0x28] sm:$0xff]  ;;  %v564_v13 = vld [vmem:[#allocation5 + $0x10] sm:$0xff]  ;;  %s6296_s6 = scalar_lea.vmem %s4822_s16, 16  ;;  %p8893_p11 = scmp.ne.s32.totalorder %s8878_s20, 0 }
  0xaa   : > { %5850 = vmatprep.subr.mxu0 %v6687_v2  ;;  %5872 = vmatprep.subr.mxu1 %v6687_v2  ;;  %v4999_v14 = vld [vmem:[%s8841_s2 + $0xf8] sm:$0xff]  ;;  %v4998_v16 = vld [vmem:[%s8841_s2 + $0xf0] sm:$0xff]  ;;  %v4997_v20 = vld [vmem:[%s8841_s2 + $0xe8] sm:$0xff]  ;;  %p6297_p10 = scmp.ne.s32.totalorder %s4822_s16, %s6296_s6  ;;  %s6391_s14 = smov [#allocation16]  }
  0xab   : > { %5851 = vmatpush3.msra.mxu0 %v6687_v2  ;;  %5873 = vmatpush3.msra.mxu1 %v6687_v2  ;;  %v679_v15 = vld [vmem:[%s8841_s2 + $0x78] sm:$0xff]  ;;  %v678_v17 = vld [vmem:[%s8841_s2 + $0x70] sm:$0xff]  ;;  %v677_v21 = vld [vmem:[%s8841_s2 + $0x68] sm:$0xff]  ;;  %s6300_s15 = sshll.u32 %s6391_s14, 4  ;;  %s6301_s15 = int_to_ptr.vmem [resolvable:$false] %s6300_s15 }
  0xac   : > { %5852 = vmatprep.subr.mxu0 %v6694_v3  ;;  %5874 = vmatprep.subr.mxu1 %v6694_v3  ;;  %v684_v18 = vld [vmem:[#allocation5 + $0x38] sm:$0xff]  ;;  %v4996_v22 = vld [vmem:[%s8841_s2 + $0xe0] sm:$0xff]  ;;  %v4994_v26 = vld [vmem:[%s8841_s2 + $0xd0] sm:$0xff]  ;;  %p6298_p0 = pnand %p6297_p10, %p8893_p11  ;;  %s6302_s19 = scalar_lea.vmem %s6301_s15, 32 }
  0xad   : > { %5853 = vmatpush3.msra.mxu0 %v6694_v3  ;;  %5875 = vmatpush3.msra.mxu1 %v6694_v3  ;;  %v565_v19 = vld [vmem:[#allocation5 + $0x18] sm:$0xff]  ;;  %v676_v23 = vld [vmem:[%s8841_s2 + $0x60] sm:$0xff]  ;;  %v674_v27 = vld [vmem:[%s8841_s2 + $0x50] sm:$0xff]  ;;  %p6303_p7 = scmp.lt.s32.totalorder %s4822_s16, %s6301_s15  ;;  %p6304_p4 = scmp.lt.s32.totalorder %s6302_s19, %s6296_s6 }
  0xae   : > { %5854 = vmatprep.subr.mxu0 %v6701_v4  ;;  %5876 = vmatprep.subr.mxu1 %v6701_v4  ;;  %v4995_v24 = vld [vmem:[%s8841_s2 + $0xd8] sm:$0xff]  ;;  %v4993_v28 = vld [vmem:[%s8841_s2 + $0xc8] sm:$0xff]  ;;  %v4992_v30 = vld [vmem:[%s8841_s2 + $0xc0] sm:$0xff]  ;;  %p6299_p2 = pneg %p6298_p0 }
  0xaf   : > { %5855 = vmatpush3.msra.mxu0 %v6701_v4  ;;  %5877 = vmatpush3.msra.mxu1 %v6701_v4  ;;  %v675_v25 = vld [vmem:[%s8841_s2 + $0x58] sm:$0xff]  ;;  %v673_v29 = vld [vmem:[%s8841_s2 + $0x48] sm:$0xff]  ;;  %v672_v31 = vld [vmem:[%s8841_s2 + $0x40] sm:$0xff]  ;;  %p6305_p6 = por %p6304_p4, %p6303_p7 }
  0xb0   : > { %5856 = vmatprep.subr.mxu0 %v6708_v5  ;;  %5878 = vmatprep.subr.mxu1 %v6708_v5  ;;  %v4991_v32 = vld [vmem:[%s8841_s2 + $0xb8] sm:$0xff]  ;;  %v4990_v34 = vld [vmem:[%s8841_s2 + $0xb0] sm:$0xff]  ;;  %v4989_v36 = vld [vmem:[%s8841_s2 + $0xa8] sm:$0xff] }
  0xb1   : > { %5857 = vmatpush3.msra.mxu0 %v6708_v5  ;;  %5879 = vmatpush3.msra.mxu1 %v6708_v5  ;;  %v671_v33 = vld [vmem:[%s8841_s2 + $0x38] sm:$0xff]  ;;  %v670_v35 = vld [vmem:[%s8841_s2 + $0x30] sm:$0xff]  ;;  %v669_v37 = vld [vmem:[%s8841_s2 + $0x28] sm:$0xff]  ;;  %p6306_p12 = pnand %p6305_p6, %p6299_p2 }
  0xb2   : > { %5858 = vmatprep.subr.mxu0 %v6715_v6  ;;  %5880 = vmatprep.subr.mxu1 %v6715_v6  ;;  %v4988_v38 = vld [vmem:[%s8841_s2 + $0xa0] sm:$0xff]  ;;  %v4987_v40 = vld [vmem:[%s8841_s2 + $0x98] sm:$0xff]  ;;  %v4986_v42 = vld [vmem:[%s8841_s2 + $0x90] sm:$0xff] }
  0xb3   : > { %5859 = vmatpush3.msra.mxu0 %v6715_v6  ;;  %5881 = vmatpush3.msra.mxu1 %v6715_v6  ;;  %v668_v39 = vld [vmem:[%s8841_s2 + $0x20] sm:$0xff]  ;;  %v667_v41 = vld [vmem:[%s8841_s2 + $0x18] sm:$0xff]  ;;  %v4985_v43 = vld [vmem:[%s8841_s2 + $0x88] sm:$0xff] }
  0xb4   : > { %5860 = vmatprep.subr.mxu0 %v6722_v7  ;;  %5882 = vmatprep.subr.mxu1 %v6722_v7  ;;  %v666_v44 = vld [vmem:[%s8841_s2 + $0x10] sm:$0xff]  ;;  %v4984_v45 = vld [vmem:[%s8841_s2 + $0x80] sm:$0xff]  ;;  %v665_v46 = vld [vmem:[%s8841_s2 + $0x8] sm:$0xff] }
  0xb5   : > { %5861 = vmatpush3.msra.mxu0 %v6722_v7  ;;  %5862 = vmatprep.mubr.msk.f32.mxu0 %vm566_vm0, %v562_v8  ;;  %v664_v47 = vld [vmem:[%s8841_s2] sm:$0xff]  ;;  %v1003_v58 = vld [vmem:[#allocation5 + $0x48] sm:$0xff]  ;;  %v1004_v59 = vld [vmem:[#allocation5 + $0x50] sm:$0xff] }
  0xb6   : > { %5883 = vmatpush3.msra.mxu1 %v6722_v7  ;;  %5884 = vmatprep.mubr.msk.f32.mxu1 %vm566_vm0, %v681_v9  ;;  %v1002_v57 = vld [vmem:[#allocation5 + $0x40] sm:$0xff]  ;;  %v1005_v60 = vld [vmem:[#allocation5 + $0x58] sm:$0xff]  ;;  %v1231_v62 = vld [vmem:[#allocation5 + $0x68] sm:$0xff] }
  0xb7   : > { %5863 = vmatmul.mubr.msk.f32.vlgmr.msra.gmra.mxu0 %vm566_vm0, %v563_v10  ;;  %5885 = vmatmul.mubr.msk.f32.vlgmr.msra.gmra.mxu1 %vm566_vm0, %v682_v11  ;;  %v1230_v61 = vld [vmem:[#allocation5 + $0x60] sm:$0xff]  ;;  %v1232_v63 = vld [vmem:[#allocation5 + $0x70] sm:$0xff]  ;;  %v5019_v9 = vld [vmem:[%s8841_s2 + $0x138] sm:$0xff] }
  0xb8   : > { %5887 = vmatprep.mubr.msk.f32.mxu1 %vm566_vm0, %v683_v12  ;;  %5865 = vmatprep.mubr.msk.f32.mxu0 %vm566_vm0, %v564_v13  ;;  %v5020_v8 = vld [vmem:[%s8841_s2 + $0x140] sm:$0xff]  ;;  %v5018_v10 = vld [vmem:[%s8841_s2 + $0x130] sm:$0xff]  ;;  %v5017_v11 = vld [vmem:[%s8841_s2 + $0x128] sm:$0xff] }
  0xb9   : > { %827 = vmatprep.subr.mxu0 %v4999_v14  ;;  %928 = vmatprep.subr.mxu1 %v679_v15  ;;  %v5016_v12 = vld [vmem:[%s8841_s2 + $0x120] sm:$0xff]  ;;  %v5015_v13 = vld [vmem:[%s8841_s2 + $0x118] sm:$0xff]  ;;  %v5014_v14 = vld [vmem:[%s8841_s2 + $0x110] sm:$0xff] }
  0xba   : > { %828 = vmatpush1.msra.mxu0 %v4998_v16  ;;  %929 = vmatpush1.msra.mxu1 %v678_v17  ;;  %v5013_v15 = vld [vmem:[%s8841_s2 + $0x108] sm:$0xff]  ;;  %v5012_v16 = vld [vmem:[%s8841_s2 + $0x100] sm:$0xff]  ;;  %v5051_v17 = vld [vmem:[%s8841_s2 + $0x1f8] sm:$0xff] }
  0xbb   : > { %5888 = vmatmul.mubr.msk.f32.gmra.mxu1 %vm566_vm0, %v684_v18  ;;  %5866 = vmatmul.mubr.msk.f32.gmra.mxu0 %vm566_vm0, %v565_v19 }
  0xbc   : > { %829 = vmatprep.subr.mxu0 %v4997_v20  ;;  %930 = vmatprep.subr.mxu1 %v677_v21 }
  0xbd   : > { %830 = vmatpush1.msra.mxu0 %v4996_v22  ;;  %931 = vmatpush1.msra.mxu1 %v676_v23 }
  0xbe   : > { %831 = vmatprep.subr.mxu0 %v4995_v24  ;;  %932 = vmatprep.subr.mxu1 %v675_v25 }
  0xbf   : > { %832 = vmatpush1.msra.mxu0 %v4994_v26  ;;  %933 = vmatpush1.msra.mxu1 %v674_v27  ;;  %v5050_v27 = vld [vmem:[%s8841_s2 + $0x1f0] sm:$0xff] }
  0xc0   : > { %833 = vmatprep.subr.mxu0 %v4993_v28  ;;  %934 = vmatprep.subr.mxu1 %v673_v29  ;;  %v5049_v29 = vld [vmem:[%s8841_s2 + $0x1e8] sm:$0xff] }
  0xc1   : > { %834 = vmatpush1.msra.mxu0 %v4992_v30  ;;  %935 = vmatpush1.msra.mxu1 %v672_v31  ;;  %v5048_v30 = vld [vmem:[%s8841_s2 + $0x1e0] sm:$0xff]  ;;  %v5047_v31 = vld [vmem:[%s8841_s2 + $0x1d8] sm:$0xff] }
  0xc2   : > { %835 = vmatprep.subr.mxu0 %v4991_v32  ;;  %936 = vmatprep.subr.mxu1 %v671_v33  ;;  %v5046_v32 = vld [vmem:[%s8841_s2 + $0x1d0] sm:$0xff] }
  0xc3   : > { %836 = vmatpush1.msra.mxu0 %v4990_v34  ;;  %937 = vmatpush1.msra.mxu1 %v670_v35  ;;  %v5045_v34 = vld [vmem:[%s8841_s2 + $0x1c8] sm:$0xff]  ;;  %v5044_v35 = vld [vmem:[%s8841_s2 + $0x1c0] sm:$0xff] }
  0xc4   : > { %837 = vmatprep.subr.mxu0 %v4989_v36  ;;  %938 = vmatprep.subr.mxu1 %v669_v37  ;;  %v5043_v36 = vld [vmem:[%s8841_s2 + $0x1b8] sm:$0xff]  ;;  %v5042_v37 = vld [vmem:[%s8841_s2 + $0x1b0] sm:$0xff] }
  0xc5   : > { %838 = vmatpush1.msra.mxu0 %v4988_v38  ;;  %939 = vmatpush1.msra.mxu1 %v668_v39  ;;  %v5041_v39 = vld [vmem:[%s8841_s2 + $0x1a8] sm:$0xff] }
  0xc6   : > { %839 = vmatprep.subr.mxu0 %v4987_v40  ;;  %940 = vmatprep.subr.mxu1 %v667_v41  ;;  %v5040_v40 = vld [vmem:[%s8841_s2 + $0x1a0] sm:$0xff]  ;;  %v5039_v41 = vld [vmem:[%s8841_s2 + $0x198] sm:$0xff] }
  0xc7   : > { %840 = vmatpush1.msra.mxu0 %v4986_v42  ;;  %941 = vmatpush1.msra.mxu1 %v666_v44  ;;  %v5038_v42 = vld [vmem:[%s8841_s2 + $0x190] sm:$0xff]  ;;  %v5036_v44 = vld [vmem:[%s8841_s2 + $0x180] sm:$0xff] }
  0xc8   : > { %841 = vmatprep.subr.mxu0 %v4985_v43  ;;  %942 = vmatprep.subr.mxu1 %v665_v46  ;;  %v5037_v43 = vld [vmem:[%s8841_s2 + $0x188] sm:$0xff]  ;;  %v5099_v46 = vld [vmem:[%s8844_s5 + $0x2f8] sm:$0xff] }
  0xc9   : > { %842 = vmatpush1.msra.mxu0 %v4984_v45  ;;  %875 = vmatprep.mubr.f32.mxu0 %v6390_v48 }
  0xca   : > { %943 = vmatpush1.msra.mxu1 %v664_v47  ;;  %976 = vmatprep.mubr.f32.mxu1 %v6390_v48  ;;  %v5098_v47 = vld [vmem:[%s8844_s5 + $0x2f0] sm:$0xff] }
  0xcb   : > { %5890 = vmatprep.subr.mxu0 %v6677_v0 }
 0x177   : > { %v5864_v49 = vpop.f32.mrf.mxu0  ;;  %v5886_v50 = vpop.f32.mrf.mxu1 }
 0x179   : > { %v645_v51 = vpop.f32.mrf.mxu0  ;;  %v763_v52 = vpop.f32.mrf.mxu1 }
 0x17a   : > { %5000 = vmatmul.mubr.msk.f32.vlgmr.msra.gmra.mxu0 %vm566_vm0, %v763_v52  ;;  %5004 = vmatmul.mubr.msk.f32.vlgmr.msra.gmra.mxu1 %vm566_vm0, %v645_v51  ;;  %v5096_v51 = vld [vmem:[%s8844_s5 + $0x2e0] sm:$0xff]  ;;  %v5095_v52 = vld [vmem:[%s8844_s5 + $0x2d8] sm:$0xff] }
 0x17b   : > { %5891 = vmatpush3.msra.mxu0 %v6677_v0  ;;  %881 = vmatprep.mubr.f32.mxu0 %v6390_v48  ;;  %v5867_v53 = vpop.f32.mrf.mxu0  ;;  %v5889_v54 = vpop.f32.mrf.mxu1 }
 0x17c   : > { %5892 = vmatprep.subr.mxu0 %v6680_v1  ;;  %982 = vmatprep.mubr.f32.mxu1 %v6390_v48 }
 0x17d   : > { %5893 = vmatpush3.msra.mxu0 %v6680_v1  ;;  %v655_v55 = vpop.f32.mrf.mxu0  ;;  %v773_v56 = vpop.f32.mrf.mxu1 }
 0x17e   : > { %5894 = vmatprep.subr.mxu0 %v6687_v2  ;;  %5001 = vmatmul.mubr.msk.f32.gmra.mxu0 %vm566_vm0, %v5886_v50  ;;  %v5097_v50 = vld [vmem:[%s8844_s5 + $0x2e8] sm:$0xff] }
 0x17f   : > { %5005 = vmatmul.mubr.msk.f32.gmra.mxu1 %vm566_vm0, %v5864_v49  ;;  %5895 = vmatpush3.msra.mxu0 %v6687_v2 }
 0x180   : > { %5896 = vmatprep.subr.mxu0 %v6694_v3  ;;  %887 = vmatprep.mubr.f32.mxu0 %v6390_v48 }
 0x181   : > { %5897 = vmatpush3.msra.mxu0 %v6694_v3  ;;  %988 = vmatprep.mubr.f32.mxu1 %v6390_v48 }
 0x182   : > { %5898 = vmatprep.subr.mxu0 %v6701_v4  ;;  %5002 = vmatmul.mubr.msk.f32.gmra.mxu0 %vm566_vm0, %v773_v56  ;;  %v5092_v56 = vld [vmem:[%s8844_s5 + $0x2c0] sm:$0xff] }
 0x183   : > { %5006 = vmatmul.mubr.msk.f32.gmra.mxu1 %vm566_vm0, %v655_v55  ;;  %5899 = vmatpush3.msra.mxu0 %v6701_v4  ;;  %v5093_v55 = vld [vmem:[%s8844_s5 + $0x2c8] sm:$0xff] }
 0x184   : > { %5900 = vmatprep.subr.mxu0 %v6708_v5  ;;  %893 = vmatprep.mubr.f32.mxu0 %v6390_v48 }
 0x185   : > { %5901 = vmatpush3.msra.mxu0 %v6708_v5  ;;  %994 = vmatprep.mubr.f32.mxu1 %v6390_v48 }
 0x186   : > { %5902 = vmatprep.subr.mxu0 %v6715_v6  ;;  %5003 = vmatmul.mubr.msk.f32.gmra.mxu0 %vm566_vm0, %v5889_v54 }
 0x187   : > { %5007 = vmatmul.mubr.msk.f32.gmra.mxu1 %vm566_vm0, %v5867_v53  ;;  %5903 = vmatpush3.msra.mxu0 %v6715_v6  ;;  %v5094_v53 = vld [vmem:[%s8844_s5 + $0x2d0] sm:$0xff] }
 0x188   : > { %5904 = vmatprep.subr.mxu0 %v6722_v7  ;;  %5906 = vmatprep.mubr.msk.f32.mxu0 %vm566_vm0, %v1002_v57 }
 0x189   : > { %5905 = vmatpush3.msra.mxu0 %v6722_v7  ;;  %1196 = vmatprep.mubr.f32.mxu1 %v6390_v48 }
 0x18a   : > { %5912 = vmatprep.subr.mxu0 %v6677_v0  ;;  %5907 = vmatmul.mubr.msk.f32.vlgmr.msra.gmra.mxu0 %vm566_vm0, %v1003_v58  ;;  %v5091_v58 = vld [vmem:[%s8844_s5 + $0x2b8] sm:$0xff] }
 0x18b   : > { %5913 = vmatpush3.msra.mxu0 %v6677_v0  ;;  %5909 = vmatprep.mubr.msk.f32.mxu0 %vm566_vm0, %v1004_v59  ;;  %v1233_v0 = vld [vmem:[#allocation5 + $0x78] sm:$0xff]  ;;  %v5090_v59 = vld [vmem:[%s8844_s5 + $0x2b0] sm:$0xff] }
 0x18c   : > { %5914 = vmatprep.subr.mxu0 %v6680_v1 }
 0x18d   : > { %5915 = vmatpush3.msra.mxu0 %v6680_v1  ;;  %v5027_v1 = vld [vmem:[%s8841_s2 + $0x178] sm:$0xff] }
 0x18e   : > { %5916 = vmatprep.subr.mxu0 %v6687_v2  ;;  %5910 = vmatmul.mubr.msk.f32.gmra.mxu0 %vm566_vm0, %v1005_v60  ;;  %v5089_v60 = vld [vmem:[%s8844_s5 + $0x2a8] sm:$0xff] }
 0x18f   : > { %5917 = vmatpush3.msra.mxu0 %v6687_v2  ;;  %5928 = vmatprep.mubr.msk.f32.mxu0 %vm566_vm0, %v1230_v61  ;;  %v5026_v2 = vld [vmem:[%s8841_s2 + $0x170] sm:$0xff]  ;;  %v5088_v61 = vld [vmem:[%s8844_s5 + $0x2a0] sm:$0xff] }
 0x190   : > { %5918 = vmatprep.subr.mxu0 %v6694_v3  ;;  %1148 = vmatprep.subr.mxu1 %v5027_v1  ;;  %v5084_v1 = vld [vmem:[%s8844_s5 + $0x280] sm:$0xff] }
 0x191   : > { %5919 = vmatpush3.msra.mxu0 %v6694_v3  ;;  %1149 = vmatpush1.msra.mxu1 %v5026_v2  ;;  %v5025_v3 = vld [vmem:[%s8841_s2 + $0x168] sm:$0xff]  ;;  %v5083_v2 = vld [vmem:[%s8844_s5 + $0x278] sm:$0xff] }
 0x192   : > { %5920 = vmatprep.subr.mxu0 %v6701_v4  ;;  %1150 = vmatprep.subr.mxu1 %v5025_v3  ;;  %v5082_v3 = vld [vmem:[%s8844_s5 + $0x270] sm:$0xff] }
 0x193   : > { %5921 = vmatpush3.msra.mxu0 %v6701_v4  ;;  %v5024_v4 = vld [vmem:[%s8841_s2 + $0x160] sm:$0xff] }
 0x194   : > { %5922 = vmatprep.subr.mxu0 %v6708_v5  ;;  %1151 = vmatpush1.msra.mxu1 %v5024_v4  ;;  %v5081_v4 = vld [vmem:[%s8844_s5 + $0x268] sm:$0xff] }
 0x195   : > { %5923 = vmatpush3.msra.mxu0 %v6708_v5  ;;  %v5023_v5 = vld [vmem:[%s8841_s2 + $0x158] sm:$0xff] }
 0x196   : > { %5924 = vmatprep.subr.mxu0 %v6715_v6  ;;  %1152 = vmatprep.subr.mxu1 %v5023_v5  ;;  %v5080_v5 = vld [vmem:[%s8844_s5 + $0x260] sm:$0xff] }
 0x197   : > { %5925 = vmatpush3.msra.mxu0 %v6715_v6  ;;  %v5022_v6 = vld [vmem:[%s8841_s2 + $0x150] sm:$0xff] }
 0x198   : > { %5926 = vmatprep.subr.mxu0 %v6722_v7  ;;  %1153 = vmatpush1.msra.mxu1 %v5022_v6  ;;  %v5079_v6 = vld [vmem:[%s8844_s5 + $0x258] sm:$0xff] }
 0x199   : > { %5927 = vmatpush3.msra.mxu0 %v6722_v7  ;;  %v5021_v7 = vld [vmem:[%s8841_s2 + $0x148] sm:$0xff] }
 0x19a   : > { %5929 = vmatmul.mubr.msk.f32.vlgmr.msra.gmra.mxu0 %vm566_vm0, %v1231_v62  ;;  %1154 = vmatprep.subr.mxu1 %v5021_v7  ;;  %v5087_v62 = vld [vmem:[%s8844_s5 + $0x298] sm:$0xff]  ;;  %v5078_v7 = vld [vmem:[%s8844_s5 + $0x250] sm:$0xff] }
 0x19b   : > { %5931 = vmatprep.mubr.msk.f32.mxu0 %vm566_vm0, %v1232_v63  ;;  %1155 = vmatpush1.msra.mxu1 %v5020_v8  ;;  %v5086_v63 = vld [vmem:[%s8844_s5 + $0x290] sm:$0xff]  ;;  %v5077_v8 = vld [vmem:[%s8844_s5 + $0x248] sm:$0xff] }
 0x19c   : > { %1156 = vmatprep.subr.mxu1 %v5019_v9  ;;  %v5076_v9 = vld [vmem:[%s8844_s5 + $0x240] sm:$0xff] }
 0x19d   : > { %1157 = vmatpush1.msra.mxu1 %v5018_v10  ;;  %v5075_v10 = vld [vmem:[%s8844_s5 + $0x238] sm:$0xff] }
 0x19e   : > { %5932 = vmatmul.mubr.msk.f32.gmra.mxu0 %vm566_vm0, %v1233_v0  ;;  %1158 = vmatprep.subr.mxu1 %v5017_v11  ;;  %v5085_v0 = vld [vmem:[%s8844_s5 + $0x288] sm:$0xff]  ;;  %v5074_v11 = vld [vmem:[%s8844_s5 + $0x230] sm:$0xff] }
 0x19f   : > { %1598 = vmatprep.mubr.f32.mxu0 %v6390_v48  ;;  %1159 = vmatpush1.msra.mxu1 %v5016_v12  ;;  %v5073_v12 = vld [vmem:[%s8844_s5 + $0x228] sm:$0xff] }
 0x1a0   : > { %1160 = vmatprep.subr.mxu1 %v5015_v13  ;;  %v5072_v13 = vld [vmem:[%s8844_s5 + $0x220] sm:$0xff] }
 0x1a1   : > { %1161 = vmatpush1.msra.mxu1 %v5014_v14  ;;  %v5071_v14 = vld [vmem:[%s8844_s5 + $0x218] sm:$0xff] }
 0x1a2   : > { %1162 = vmatprep.subr.mxu1 %v5013_v15  ;;  %v5070_v15 = vld [vmem:[%s8844_s5 + $0x210] sm:$0xff] }
 0x1a3   : > { %1163 = vmatpush1.msra.mxu1 %v5012_v16  ;;  %v5069_v16 = vld [vmem:[%s8844_s5 + $0x208] sm:$0xff] }
 0x1a4   : > { %1376 = vmatprep.subr.mxu1 %v5051_v17  ;;  %v5068_v17 = vld [vmem:[%s8844_s5 + $0x200] sm:$0xff] }
 0x23a   : > { %v6945_v18 = vpop.f32.mrf.mxu0 }
 0x23c   : > { %v6947_v19 = vpop.f32.mrf.mxu0 }
 0x23e   : > { %v6949_v20 = vpop.f32.mrf.mxu0 }
 0x240   : > { %v6951_v21 = vpop.f32.mrf.mxu0 }
 0x242   : > { %v6953_v22 = vpop.f32.mrf.mxu0 }
 0x244   : > { %v6955_v23 = vpop.f32.mrf.mxu0 }
 0x246   : > { %v6957_v24 = vpop.f32.mrf.mxu0 }
 0x248   : > { %v6959_v25 = vpop.f32.mrf.mxu0 }
 0x24a   : > { %v5908_v26 = vpop.f32.mrf.mxu0 }
 0x24c   : > { %v1084_v28 = vpop.f32.mrf.mxu0 }
 0x24d   : > { %5028 = vmatmul.mubr.msk.f32.vlgmr.msra.gmra.mxu1 %vm566_vm0, %v1084_v28  ;;  %v5129_v28 = vld [vmem:[%s8844_s5 + $0x3e8] sm:$0xff] }
 0x24e   : > { %1377 = vmatpush1.msra.mxu1 %v5050_v27  ;;  %1202 = vmatprep.mubr.f32.mxu1 %v6390_v48  ;;  %v5911_v33 = vpop.f32.mrf.mxu0  ;;  %v5130_v27 = vld [vmem:[%s8844_s5 + $0x3f0] sm:$0xff] }
 0x24f   : > { %1378 = vmatprep.subr.mxu1 %v5049_v29  ;;  %v5128_v29 = vld [vmem:[%s8844_s5 + $0x3e0] sm:$0xff] }
 0x250   : > { %1379 = vmatpush1.msra.mxu1 %v5048_v30  ;;  %v1094_v38 = vpop.f32.mrf.mxu0  ;;  %v5127_v30 = vld [vmem:[%s8844_s5 + $0x3d8] sm:$0xff] }
 0x251   : > { %5029 = vmatmul.mubr.msk.f32.gmra.mxu1 %vm566_vm0, %v5908_v26  ;;  %1380 = vmatprep.subr.mxu1 %v5047_v31  ;;  %v5131_v26 = vld [vmem:[%s8844_s5 + $0x3f8] sm:$0xff]  ;;  %v5126_v31 = vld [vmem:[%s8844_s5 + $0x3d0] sm:$0xff] }
 0x252   : > { %1381 = vmatpush1.msra.mxu1 %v5046_v32  ;;  %1208 = vmatprep.mubr.f32.mxu1 %v6390_v48  ;;  %v5125_v32 = vld [vmem:[%s8844_s5 + $0x3c8] sm:$0xff] }
 0x253   : > { %1382 = vmatprep.subr.mxu1 %v5045_v34  ;;  %v5123_v34 = vld [vmem:[%s8844_s5 + $0x3b8] sm:$0xff] }
 0x254   : > { %1383 = vmatpush1.msra.mxu1 %v5044_v35  ;;  %v5122_v35 = vld [vmem:[%s8844_s5 + $0x3b0] sm:$0xff] }
 0x255   : > { %5030 = vmatmul.mubr.msk.f32.gmra.mxu1 %vm566_vm0, %v1094_v38  ;;  %1384 = vmatprep.subr.mxu1 %v5043_v36  ;;  %v5121_v36 = vld [vmem:[%s8844_s5 + $0x3a8] sm:$0xff]  ;;  %v5119_v38 = vld [vmem:[%s8844_s5 + $0x398] sm:$0xff] }
 0x256   : > { %1385 = vmatpush1.msra.mxu1 %v5042_v37  ;;  %1214 = vmatprep.mubr.f32.mxu1 %v6390_v48  ;;  %v5120_v37 = vld [vmem:[%s8844_s5 + $0x3a0] sm:$0xff] }
 0x257   : > { %1386 = vmatprep.subr.mxu1 %v5041_v39  ;;  %v5118_v39 = vld [vmem:[%s8844_s5 + $0x390] sm:$0xff] }
 0x258   : > { %1387 = vmatpush1.msra.mxu1 %v5040_v40  ;;  %v5117_v40 = vld [vmem:[%s8844_s5 + $0x388] sm:$0xff] }
 0x259   : > { %5031 = vmatmul.mubr.msk.f32.gmra.mxu1 %vm566_vm0, %v5911_v33  ;;  %1388 = vmatprep.subr.mxu1 %v5039_v41  ;;  %v5124_v33 = vld [vmem:[%s8844_s5 + $0x3c0] sm:$0xff] }
 0x25a   : > { %v5930_v45 = vpop.f32.mrf.mxu0  ;;  %1389 = vmatpush1.msra.mxu1 %v5038_v42  ;;  %1424 = vmatprep.mubr.f32.mxu1 %v6390_v48  ;;  %v5116_v41 = vld [vmem:[%s8844_s5 + $0x380] sm:$0xff]  ;;  %v5115_v42 = vld [vmem:[%s8844_s5 + $0x378] sm:$0xff] }
 0x25b   : > { %1390 = vmatprep.subr.mxu1 %v5037_v43  ;;  %v5114_v43 = vld [vmem:[%s8844_s5 + $0x370] sm:$0xff] }
 0x25c   : > { %v1312_v49 = vpop.f32.mrf.mxu0  ;;  %1391 = vmatpush1.msra.mxu1 %v5036_v44  ;;  %v5113_v44 = vld [vmem:[%s8844_s5 + $0x368] sm:$0xff] }
 0x25d   : > { %5052 = vmatmul.mubr.msk.f32.vlgmr.msra.gmra.mxu1 %vm566_vm0, %v1312_v49  ;;  %1826 = vmatprep.subr.mxu1 %v5099_v46  ;;  %v5111_v46 = vld [vmem:[%s8844_s5 + $0x358] sm:$0xff]  ;;  %v5109_v49 = vld [vmem:[%s8844_s5 + $0x348] sm:$0xff] }
 0x25e   : > { %1430 = vmatprep.mubr.f32.mxu1 %v6390_v48  ;;  %1827 = vmatpush1.msra.mxu1 %v5098_v47  ;;  %v5933_v54 = vpop.f32.mrf.mxu0  ;;  %v5110_v47 = vld [vmem:[%s8844_s5 + $0x350] sm:$0xff] }
 0x25f   : > { %1828 = vmatprep.subr.mxu1 %v5097_v50  ;;  %v5108_v50 = vld [vmem:[%s8844_s5 + $0x340] sm:$0xff] }
 0x260   : > { %1829 = vmatpush1.msra.mxu1 %v5096_v51  ;;  %v1322_v57 = vpop.f32.mrf.mxu0  ;;  %v5107_v51 = vld [vmem:[%s8844_s5 + $0x338] sm:$0xff] }
 0x261   : > { %5053 = vmatmul.mubr.msk.f32.gmra.mxu1 %vm566_vm0, %v5930_v45  ;;  %1830 = vmatprep.subr.mxu1 %v5095_v52  ;;  %v5112_v45 = vld [vmem:[%s8844_s5 + $0x360] sm:$0xff]  ;;  %v5106_v52 = vld [vmem:[%s8844_s5 + $0x330] sm:$0xff] }
 0x262   : > { %1436 = vmatprep.mubr.f32.mxu1 %v6390_v48  ;;  %1831 = vmatpush1.msra.mxu1 %v5094_v53  ;;  %v5105_v53 = vld [vmem:[%s8844_s5 + $0x328] sm:$0xff] }
 0x263   : > { %1832 = vmatprep.subr.mxu1 %v5093_v55  ;;  %v5103_v55 = vld [vmem:[%s8844_s5 + $0x318] sm:$0xff] }
 0x264   : > { %1833 = vmatpush1.msra.mxu1 %v5092_v56  ;;  %v5102_v56 = vld [vmem:[%s8844_s5 + $0x310] sm:$0xff] }
 0x265   : > { %5054 = vmatmul.mubr.msk.f32.gmra.mxu1 %vm566_vm0, %v1322_v57  ;;  %1834 = vmatprep.subr.mxu1 %v5091_v58  ;;  %v5101_v57 = vld [vmem:[%s8844_s5 + $0x308] sm:$0xff]  ;;  %v5100_v58 = vld [vmem:[%s8844_s5 + $0x300] sm:$0xff] }
 0x266   : > { %1442 = vmatprep.mubr.f32.mxu1 %v6390_v48  ;;  %1835 = vmatpush1.msra.mxu1 %v5090_v59  ;;  %v978_v59 = vpop.f32.mrf.mxu1 }
 0x267   : > { %1836 = vmatprep.subr.mxu1 %v5089_v60 }
 0x268   : > { %1837 = vmatpush1.msra.mxu1 %v5088_v61  ;;  %v980_v60 = vpop.f32.mrf.mxu1 }
 0x269   : > { %5055 = vmatmul.mubr.msk.f32.gmra.mxu1 %vm566_vm0, %v5933_v54  ;;  %1838 = vmatprep.subr.mxu1 %v5087_v62  ;;  %v5104_v54 = vld [vmem:[%s8844_s5 + $0x320] sm:$0xff] }
 0x26a   : > { %1839 = vmatpush1.msra.mxu1 %v5086_v63  ;;  %v984_v61 = vpop.f32.mrf.mxu1 }
 0x26b   : > { %1840 = vmatprep.subr.mxu1 %v5085_v0 }
 0x26c   : > { %1841 = vmatpush1.msra.mxu1 %v5084_v1  ;;  %v986_v62 = vpop.f32.mrf.mxu1 }
 0x26d   : > { %1842 = vmatprep.subr.mxu1 %v5083_v2 }
 0x26e   : > { %1843 = vmatpush1.msra.mxu1 %v5082_v3  ;;  %v990_v63 = vpop.f32.mrf.mxu1 }
 0x26f   : > { %1844 = vmatprep.subr.mxu1 %v5081_v4 }
 0x270   : > { %1845 = vmatpush1.msra.mxu1 %v5080_v5  ;;  %v992_v0 = vpop.f32.mrf.mxu1 }
 0x271   : > { %1846 = vmatprep.subr.mxu1 %v5079_v6 }
 0x272   : > { %1847 = vmatpush1.msra.mxu1 %v5078_v7  ;;  %v996_v1 = vpop.f32.mrf.mxu1 }
 0x273   : > { %1848 = vmatprep.subr.mxu1 %v5077_v8 }
 0x274   : > { %1849 = vmatpush1.msra.mxu1 %v5076_v9  ;;  %v998_v2 = vpop.f32.mrf.mxu1 }
 0x275   : > { %1850 = vmatprep.subr.mxu1 %v5075_v10  ;;  %v1459_v10 = vlaneseq }
 0x276   : > { %1851 = vmatpush1.msra.mxu1 %v5074_v11 }
 0x277   : > { %1852 = vmatprep.subr.mxu1 %v5073_v12 }
 0x278   : > { %1853 = vmatpush1.msra.mxu1 %v5072_v13  ;;  %v1460_v13 = vshrl.u32 %v1459_v10, 7 }
 0x279   : > { %1854 = vmatprep.subr.mxu1 %v5071_v14 }
 0x27a   : > { %1855 = vmatpush1.msra.mxu1 %v5070_v15  ;;  %v987_v15 = vadd.f32 %v986_v62, %v6951_v21 }
 0x27b   : > { %1856 = vmatprep.subr.mxu1 %v5069_v16  ;;  %v7214_v16 = vsub.s32 1, %v1460_v13 }
 0x27c   : > { %1857 = vmatpush1.msra.mxu1 %v5068_v17  ;;  %v985_v17 = vadd.f32 %v984_v61, %v6949_v20 }
 0x27d   : > { %1858 = vmatprep.subr.mxu1 %v5131_v26 }
 0x27e   : > { %1859 = vmatpush2.msra.mxu1 %v5130_v27  ;;  %v981_v27 = vadd.f32 %v980_v60, %v6947_v19 }
 0x27f   : > { %1860 = vmatprep.subr.mxu1 %v5129_v28 }
 0x280   : > { %1861 = vmatpush2.msra.mxu1 %v5128_v29  ;;  %v979_v29 = vadd.f32 %v978_v59, %v6945_v18 }
 0x281   : > { %1862 = vmatprep.subr.mxu1 %v5127_v30  ;;  %v991_v30 = vadd.f32 %v990_v63, %v6953_v22 }
 0x282   : > { %1863 = vmatpush2.msra.mxu1 %v5126_v31 }
 0x283   : > { %1864 = vmatprep.subr.mxu1 %v5125_v32  ;;  %v1457_v32 = vld [vmem:[#allocation7] sm:$0x3] }
 0x284   : > { %1865 = vmatpush2.msra.mxu1 %v5124_v33  ;;  %v7220_v33 = vsub.s32 0, %v1460_v13 }
 0x285   : > { %1866 = vmatprep.subr.mxu1 %v5123_v34 }
 0x286   : > { %1867 = vmatpush2.msra.mxu1 %v5122_v35  ;;  %v993_v35 = vadd.f32 %v992_v0, %v6955_v23  ;;  %v999_v23 = vadd.f32 %v998_v2, %v6959_v25 }
 0x287   : > { %1868 = vmatprep.subr.mxu1 %v5121_v36  ;;  %v1466_v36 = vrot.slane %v1457_v32, %v7214_v16 }
 0x288   : > { %1869 = vmatpush2.msra.mxu1 %v5120_v37 }
 0x289   : > { %1870 = vmatprep.subr.mxu1 %v5119_v38 }
 0x28a   : > { %1871 = vmatpush2.msra.mxu1 %v5118_v39 }
 0x28b   : > { %1872 = vmatprep.subr.mxu1 %v5117_v40  ;;  %v997_v40 = vadd.f32 %v996_v1, %v6957_v24 }
 0x28c   : > { %1873 = vmatpush2.msra.mxu1 %v5116_v41 }
 0x28d   : > { %1874 = vmatprep.subr.mxu1 %v5115_v42 }
 0x28e   : > { %1875 = vmatpush2.msra.mxu1 %v5114_v43  ;;  %v1462_v43 = vrot.slane %v1457_v32, %v7220_v33 }
 0x28f   : > { %1876 = vmatprep.subr.mxu1 %v5113_v44 }
 0x290   : > { %1877 = vmatpush2.msra.mxu1 %v5112_v45 }
 0x291   : > { %1878 = vmatprep.subr.mxu1 %v5111_v46 }
 0x292   : > { %1879 = vmatpush2.msra.mxu1 %v5110_v47 }
 0x293   : > { %1880 = vmatprep.subr.mxu1 %v5109_v49 }
 0x294   : > { %1881 = vmatpush2.msra.mxu1 %v5108_v50 }
 0x295   : > { %1882 = vmatprep.subr.mxu1 %v5107_v51 }
 0x296   : > { %1883 = vmatpush2.msra.mxu1 %v5106_v52 }
 0x297   : > { %1884 = vmatprep.subr.mxu1 %v5105_v53 }
 0x298   : > { %1885 = vmatpush2.msra.mxu1 %v5104_v54 }
 0x299   : > { %1886 = vmatprep.subr.mxu1 %v5103_v55 }
 0x29a   : > { %1887 = vmatpush2.msra.mxu1 %v5102_v56 }
 0x29b   : > { %1888 = vmatprep.subr.mxu1 %v5101_v57 }
 0x29c   : > { %1889 = vmatpush2.msra.mxu1 %v5100_v58 }
 0x30d   : > { %v1198_v3 = vpop.f32.mrf.mxu1 }
 0x30e   : > { %v1221_v20 = vadd.f32 %v1198_v3, %v979_v29 }
 0x30f   : > { %v1200_v4 = vpop.f32.mrf.mxu1 }
 0x310   : > { %v1222_v21 = vadd.f32 %v1200_v4, %v981_v27 }
 0x311   : > { %v1204_v5 = vpop.f32.mrf.mxu1 }
 0x312   : > { %v1223_v31 = vadd.f32 %v1204_v5, %v985_v17 }
 0x313   : > { %v1206_v6 = vpop.f32.mrf.mxu1 }
 0x314   : > { %v1224_v28 = vadd.f32 %v1206_v6, %v987_v15 }
 0x315   : > { %v1210_v7 = vpop.f32.mrf.mxu1 }
 0x316   : > { %v1225_v38 = vadd.f32 %v1210_v7, %v991_v30 }
 0x317   : > { %v1212_v8 = vpop.f32.mrf.mxu1 }
 0x318   : > { %v1226_v18 = vadd.f32 %v1212_v8, %v993_v35 }
 0x319   : > { %v1216_v9 = vpop.f32.mrf.mxu1 }
 0x31a   : > { %v1227_v46 = vadd.f32 %v1216_v9, %v997_v40 }
 0x31b   : > { %v1218_v11 = vpop.f32.mrf.mxu1 }
 0x31c   : > { %v1228_v24 = vadd.f32 %v1218_v11, %v999_v23  ;;  %v1639_v23 = vld [vmem:[%s8844_s5 + $0xe0] sm:$0xff] }
 0x31d   : > { %v1426_v12 = vpop.f32.mrf.mxu1 }
 0x31e   : > { %v1449_v42 = vadd.f32 %v1426_v12, %v1221_v20 }
 0x31f   : > { %v1428_v14 = vpop.f32.mrf.mxu1 }
 0x320   : > { %v1450_v41 = vadd.f32 %v1428_v14, %v1222_v21  ;;  %v7234_v56 = vadd.f32 %v1462_v43, %v1449_v42  ;;  %v1676_v42 = vld [vmem:[#allocation8 + $0x10] sm:$0xff] }
 0x321   : > { %v1432_v26 = vpop.f32.mrf.mxu1 }
 0x322   : > { %v1451_v39 = vadd.f32 %v1432_v26, %v1223_v31  ;;  %v7232_v53 = vadd.f32 %v1466_v36, %v1450_v41  ;;  %v1485_v3 = vmin.f32 %v7234_v56, 0.0  ;;  %vm1477_vm8 = vcmp.gt.f32.partialorder %v7234_v56, 0.0 }
 0x323   : > { %v1434_v34 = vpop.f32.mrf.mxu1 }
 0x324   : > { %v1452_v37 = vadd.f32 %v1434_v34, %v1224_v28  ;;  %v7230_v50 = vadd.f32 %v1462_v43, %v1451_v39  ;;  %v1486_v63 = vmin.f32 %v7232_v53, 0.0  ;;  %v1493_v10 = vmul.f32 1.442695, %v1485_v3  ;;  %v1617_v3 = vld [vmem:[%s8844_s5 + $0x30] sm:$0xff] }
 0x325   : > { %v1438_v19 = vpop.f32.mrf.mxu1  ;;  %vm1478_vm7 = vcmp.gt.f32.partialorder %v7232_v53, 0.0 }
 0x326   : > { %v7225_v22 = vadd.f32 %v1466_v36, %v1452_v37  ;;  %v1453_v44 = vadd.f32 %v1438_v19, %v1225_v38  ;;  %v1487_v62 = vmin.f32 %v7230_v50, 0.0  ;;  %v1495_v8 = vmul.f32 1.442695, %v1486_v63  ;;  %v1621_v63 = vld [vmem:[%s8844_s5 + $0x50] sm:$0xff] }
 0x327   : > { %v1440_v45 = vpop.f32.mrf.mxu1  ;;  %vm1479_vm6 = vcmp.gt.f32.partialorder %v7230_v50, 0.0 }
 0x328   : > { %v1488_v47 = vmin.f32 %v7225_v22, 0.0  ;;  %v1454_v49 = vadd.f32 %v1440_v45, %v1226_v18  ;;  %v1473_v51 = vadd.f32 %v1462_v43, %v1453_v44  ;;  %v1497_v7 = vmul.f32 1.442695, %v1487_v62  ;;  %v1525_v18 = vld [vmem:[#allocation8] sm:$0xff]  ;;  %v1641_v44 = vld [vmem:[%s8844_s5 + $0xf0] sm:$0xff]  ;;  %v1622_v62 = vld [vmem:[%s8844_s5 + $0x58] sm:$0xff] }
 0x329   : > { %v1444_v52 = vpop.f32.mrf.mxu1  ;;  %vm1480_vm5 = vcmp.gt.f32.partialorder %v7225_v22, 0.0  ;;  %v1640_v45 = vld [vmem:[%s8844_s5 + $0xe8] sm:$0xff] }
 0x32a   : > { %v1474_v54 = vadd.f32 %v1466_v36, %v1454_v49  ;;  %v1455_v55 = vadd.f32 %v1444_v52, %v1227_v46  ;;  %v1489_v57 = vmin.f32 %v1473_v51, 0.0  ;;  %v1499_v59 = vmul.f32 1.442695, %v1488_v47  ;;  %v1677_v46 = vld [vmem:[#allocation8 + $0x18] sm:$0xff]  ;;  %v1637_v49 = vld [vmem:[%s8844_s5 + $0xd0] sm:$0xff] }
 0x32b   : > { %v1446_v58 = vpop.f32.mrf.mxu1  ;;  %vm1481_vm4 = vcmp.gt.f32.partialorder %v1473_v51, 0.0  ;;  %v1638_v47 = vld [vmem:[%s8844_s5 + $0xd8] sm:$0xff] }
 0x32c   : > { %v1490_v60 = vmin.f32 %v1474_v54, 0.0  ;;  %v1475_v25 = vadd.f32 %v1462_v43, %v1455_v55  ;;  %v1456_v61 = vadd.f32 %v1446_v58, %v1228_v24  ;;  %v1501_v4 = vmul.f32 1.442695, %v1489_v57  ;;  %v1642_v43 = vld [vmem:[%s8844_s5 + $0xf8] sm:$0xff]  ;;  %v1633_v24 = vld [vmem:[%s8844_s5 + $0xb0] sm:$0xff]  ;;  %v1628_v57 = vld [vmem:[%s8844_s5 + $0x88] sm:$0xff] }
 0x32d   : > { %6056 = vpow2.f32 %v1499_v59  ;;  %vm1482_vm3 = vcmp.gt.f32.partialorder %v1474_v54, 0.0  ;;  %v1634_v52 = vld [vmem:[%s8844_s5 + $0xb8] sm:$0xff]  ;;  %v1627_v58 = vld [vmem:[%s8844_s5 + $0x80] sm:$0xff] }
 0x32e   : > { %v1503_v0 = vmul.f32 1.442695, %v1490_v60  ;;  %v1491_v1 = vmin.f32 %v1475_v25, 0.0  ;;  %v1476_v2 = vadd.f32 %v1466_v36, %v1456_v61  ;;  %vm1483_vm2 = vcmp.gt.f32.partialorder %v1475_v25, 0.0  ;;  %v1630_v55 = vld [vmem:[%s8844_s5 + $0x98] sm:$0xff]  ;;  %v1625_v60 = vld [vmem:[%s8844_s5 + $0x70] sm:$0xff] }
 0x32f   : > { %v1626_v59 = vld [vmem:[%s8844_s5 + $0x78] sm:$0xff]  ;;  %v1623_v61 = vld [vmem:[%s8844_s5 + $0x60] sm:$0xff] }
 0x330   : > { %v1505_v5 = vmul.f32 1.442695, %v1491_v1  ;;  %v1492_v6 = vmin.f32 %v1476_v2, 0.0  ;;  %6058 = vpow2.f32 %v1503_v0  ;;  %vm1484_vm1 = vcmp.gt.f32.partialorder %v1476_v2, 0.0  ;;  %v1620_v0 = vld [vmem:[%s8844_s5 + $0x48] sm:$0xff]  ;;  %v1619_v1 = vld [vmem:[%s8844_s5 + $0x40] sm:$0xff] }
 0x332   : > { %6060 = vpow2.f32 %v1505_v5  ;;  %v1507_v9 = vmul.f32 1.442695, %v1492_v6  ;;  %v1615_v5 = vld [vmem:[%s8844_s5 + $0x20] sm:$0xff]  ;;  %v1614_v6 = vld [vmem:[%s8844_s5 + $0x18] sm:$0xff] }
 0x333   : > { %6062 = vpow2.f32 %v1501_v4  ;;  %v1616_v4 = vld [vmem:[%s8844_s5 + $0x28] sm:$0xff] }
 0x334   : > { %6064 = vpow2.f32 %v1507_v9  ;;  %v1611_v9 = vld [vmem:[%s8844_s5] sm:$0xff] }
 0x335   : > { %6066 = vpow2.f32 %v1497_v7  ;;  %v1613_v7 = vld [vmem:[%s8844_s5 + $0x10] sm:$0xff] }
 0x336   : > { %6068 = vpow2.f32 %v1495_v8  ;;  %v1612_v8 = vld [vmem:[%s8844_s5 + $0x8] sm:$0xff] }
 0x337   : > { %6070 = vpow2.f32 %v1493_v10  ;;  %v1674_v10 = vld [vmem:[%s8844_s5 + $0x1f8] sm:$0xff] }
 0x33a   : > { %v6057_v11 = vpop.eup %6056 }
 0x33b   : > { %v5059_v34 = vadd.f32 -1.0, %v6057_v11  ;;  %v1673_v11 = vld [vmem:[%s8844_s5 + $0x1f0] sm:$0xff] }
 0x33d   : > { %v6059_v12 = vpop.eup %6058  ;;  %v7254_v39 = vsel %vm1480_vm5, %v7225_v22, %v5059_v34  ;;  %v1526_v22 = vld [vmem:[#allocation8 + $0x8] sm:$0xff] }
 0x33e   : > { %v5061_v28 = vadd.f32 -1.0, %v6059_v12  ;;  %v1672_v12 = vld [vmem:[%s8844_s5 + $0x1e8] sm:$0xff]  ;;  %v1661_v34 = vld [vmem:[%s8844_s5 + $0x190] sm:$0xff] }
 0x33f   : > { %v6061_v13 = vpop.eup %6060 }
 0x340   : > { %v6063_v14 = vpop.eup %6062  ;;  %v5062_v17 = vadd.f32 -1.0, %v6061_v13  ;;  %v7246_v36 = vsel %vm1482_vm3, %v1474_v54, %v5061_v28  ;;  %v1631_v54 = vld [vmem:[%s8844_s5 + $0xa0] sm:$0xff]  ;;  %v1665_v28 = vld [vmem:[%s8844_s5 + $0x1b0] sm:$0xff] }
 0x341   : > { %v6065_v15 = vpop.eup %6064  ;;  %v5060_v30 = vadd.f32 -1.0, %v6063_v14  ;;  %v1671_v13 = vld [vmem:[%s8844_s5 + $0x1e0] sm:$0xff]  ;;  %v1670_v14 = vld [vmem:[%s8844_s5 + $0x1d8] sm:$0xff] }
 0x342   : > { %v6067_v26 = vpop.eup %6066  ;;  %v5063_v27 = vadd.f32 -1.0, %v6065_v15  ;;  %v7243_v35 = vsel %vm1483_vm2, %v1475_v25, %v5062_v17  ;;  %v1624_v25 = vld [vmem:[%s8844_s5 + $0x68] sm:$0xff]  ;;  %v1669_v15 = vld [vmem:[%s8844_s5 + $0x1d0] sm:$0xff]  ;;  %vm4806_vm2 = vcmask 253952  }
 0x343   : > { %v6069_v29 = vpop.eup %6068  ;;  %v5058_v21 = vadd.f32 -1.0, %v6067_v26  ;;  %v7249_v20 = vsel %vm1481_vm4, %v1473_v51, %v5060_v30  ;;  %v1635_v51 = vld [vmem:[%s8844_s5 + $0xc0] sm:$0xff]  ;;  %v1668_v17 = vld [vmem:[%s8844_s5 + $0x1c8] sm:$0xff] }
 0x344   : > { %v6071_v31 = vpop.eup %6070  ;;  %v7239_v32 = vsel %vm1484_vm1, %v1476_v2, %v5063_v27  ;;  %v5057_v37 = vadd.f32 -1.0, %v6069_v29  ;;  %v1618_v2 = vld [vmem:[%s8844_s5 + $0x38] sm:$0xff]  ;;  %v1667_v26 = vld [vmem:[%s8844_s5 + $0x1c0] sm:$0xff]  ;;  %v1664_v29 = vld [vmem:[%s8844_s5 + $0x1a8] sm:$0xff]  ;;  %vm3362_vm1 = vcmask 64512  }
 0x345   : > { %1558 = vmatprep.subr.mxu0 %v7239_v32  ;;  %2013 = vmatprep.subr.mxu1 %v7239_v32  ;;  %v5056_v38 = vadd.f32 -1.0, %v6071_v31  ;;  %v7259_v19 = vsel %vm1479_vm6, %v7230_v50, %v5058_v21  ;;  %v1636_v50 = vld [vmem:[%s8844_s5 + $0xc8] sm:$0xff]  ;;  %v1666_v27 = vld [vmem:[%s8844_s5 + $0x1b8] sm:$0xff]  ;;  %v1663_v30 = vld [vmem:[%s8844_s5 + $0x1a0] sm:$0xff] }
 0x346   : > { %1559 = vmatpush1.msra.mxu0 %v7243_v35  ;;  %v7264_v40 = vsel %vm1478_vm7, %v7232_v53, %v5057_v37  ;;  %v1632_v53 = vld [vmem:[%s8844_s5 + $0xa8] sm:$0xff]  ;;  %v1662_v31 = vld [vmem:[%s8844_s5 + $0x198] sm:$0xff]  ;;  %v1659_v37 = vld [vmem:[%s8844_s5 + $0x180] sm:$0xff] }
 0x347   : > { %1560 = vmatprep.subr.mxu0 %v7246_v36  ;;  %v7269_v41 = vsel %vm1477_vm8, %v7234_v56, %v5056_v38  ;;  %v1629_v56 = vld [vmem:[%s8844_s5 + $0x90] sm:$0xff]  ;;  %v1660_v21 = vld [vmem:[%s8844_s5 + $0x188] sm:$0xff]  ;;  %v1658_v38 = vld [vmem:[%s8844_s5 + $0x178] sm:$0xff] }
 0x348   : > { %1561 = vmatpush1.msra.mxu0 %v7249_v20 }
 0x349   : > { %1562 = vmatprep.subr.mxu0 %v7254_v39 }
 0x34a   : > { %1563 = vmatpush1.msra.mxu0 %v7259_v19 }
 0x34b   : > { %1564 = vmatprep.subr.mxu0 %v7264_v40 }
 0x34c   : > { %1565 = vmatpush1.msra.mxu0 %v7269_v41 }
 0x34d   : > { %5064 = vmatmul.mubr.msk.f32.vlgmr.msra.gmra.mxu0 %vm1527_vm9, %v1525_v18  ;;  %1708 = vmatprep.subr.mxu0 %v7239_v32  ;;  %v1657_v18 = vld [vmem:[%s8844_s5 + $0x170] sm:$0xff] }
 0x34e   : > { %1709 = vmatpush1.msra.mxu0 %v7243_v35  ;;  %1604 = vmatprep.mubr.f32.mxu0 %v6390_v48 }
 0x34f   : > { %1710 = vmatprep.subr.mxu0 %v7246_v36 }
 0x350   : > { %1711 = vmatpush1.msra.mxu0 %v7249_v20 }
 0x351   : > { %5065 = vmatmul.mubr.msk.f32.gmra.mxu0 %vm1527_vm9, %v1526_v22  ;;  %1712 = vmatprep.subr.mxu0 %v7254_v39  ;;  %v1656_v22 = vld [vmem:[%s8844_s5 + $0x168] sm:$0xff] }
 0x352   : > { %1713 = vmatpush1.msra.mxu0 %v7259_v19  ;;  %1748 = vmatprep.mubr.f32.mxu0 %v6390_v48 }
 0x353   : > { %1714 = vmatprep.subr.mxu0 %v7264_v40 }
 0x354   : > { %1715 = vmatpush1.msra.mxu0 %v7269_v41 }
 0x355   : > { %5066 = vmatmul.mubr.msk.f32.vlgmr.msra.gmra.mxu0 %vm1527_vm9, %v1676_v42  ;;  %1903 = vmatprep.subr.mxu0 %v1642_v43  ;;  %v1655_v42 = vld [vmem:[%s8844_s5 + $0x160] sm:$0xff]  ;;  %v1654_v43 = vld [vmem:[%s8844_s5 + $0x158] sm:$0xff] }
 0x356   : > { %1904 = vmatpush1.msra.mxu0 %v1641_v44  ;;  %1754 = vmatprep.mubr.f32.mxu0 %v6390_v48  ;;  %v1653_v44 = vld [vmem:[%s8844_s5 + $0x150] sm:$0xff] }
 0x357   : > { %1905 = vmatprep.subr.mxu0 %v1640_v45  ;;  %v1652_v45 = vld [vmem:[%s8844_s5 + $0x148] sm:$0xff] }
 0x358   : > { %1906 = vmatpush1.msra.mxu0 %v1639_v23  ;;  %v1651_v23 = vld [vmem:[%s8844_s5 + $0x140] sm:$0xff] }
 0x359   : > { %5067 = vmatmul.mubr.msk.f32.gmra.mxu0 %vm1527_vm9, %v1677_v46  ;;  %1907 = vmatprep.subr.mxu0 %v1638_v47  ;;  %v1650_v46 = vld [vmem:[%s8844_s5 + $0x138] sm:$0xff]  ;;  %v1649_v47 = vld [vmem:[%s8844_s5 + $0x130] sm:$0xff] }
 0x35a   : > { %1908 = vmatpush1.msra.mxu0 %v1637_v49  ;;  %v1648_v49 = vld [vmem:[%s8844_s5 + $0x128] sm:$0xff] }
 0x35b   : > { %1909 = vmatprep.subr.mxu0 %v1636_v50  ;;  %v1647_v50 = vld [vmem:[%s8844_s5 + $0x120] sm:$0xff] }
 0x35c   : > { %1910 = vmatpush1.msra.mxu0 %v1635_v51  ;;  %v1646_v51 = vld [vmem:[%s8844_s5 + $0x118] sm:$0xff] }
 0x35d   : > { %1911 = vmatprep.subr.mxu0 %v1634_v52  ;;  %v1645_v52 = vld [vmem:[%s8844_s5 + $0x110] sm:$0xff] }
 0x35e   : > { %1912 = vmatpush1.msra.mxu0 %v1633_v24  ;;  %v1644_v24 = vld [vmem:[%s8844_s5 + $0x108] sm:$0xff] }
 0x35f   : > { %1913 = vmatprep.subr.mxu0 %v1632_v53  ;;  %v1643_v53 = vld [vmem:[%s8844_s5 + $0x100] sm:$0xff] }
 0x360   : > { %1914 = vmatpush1.msra.mxu0 %v1631_v54 }
 0x361   : > { %1915 = vmatprep.subr.mxu0 %v1630_v55 }
 0x362   : > { %1916 = vmatpush1.msra.mxu0 %v1629_v56 }
 0x363   : > { %1917 = vmatprep.subr.mxu0 %v1628_v57 }
 0x364   : > { %1918 = vmatpush1.msra.mxu0 %v1627_v58 }
 0x365   : > { %1919 = vmatprep.subr.mxu0 %v1626_v59 }
 0x366   : > { %1920 = vmatpush1.msra.mxu0 %v1625_v60  ;;  %v5231_v60 = vld [vmem:[%s8844_s5 + $0x6f8] sm:$0xff] }
 0x367   : > { %1921 = vmatprep.subr.mxu0 %v1624_v25 }
 0x368   : > { %1922 = vmatpush1.msra.mxu0 %v1623_v61 }
 0x369   : > { %1923 = vmatprep.subr.mxu0 %v1622_v62  ;;  %v2214_v62 = vld [vmem:[#allocation8 + $0x38] sm:$0xff] }
 0x36a   : > { %1924 = vmatpush1.msra.mxu0 %v1621_v63  ;;  %v5230_v63 = vld [vmem:[%s8844_s5 + $0x6f0] sm:$0xff] }
 0x36b   : > { %1925 = vmatprep.subr.mxu0 %v1620_v0  ;;  %v1982_v0 = vld [vmem:[#allocation8 + $0x28] sm:$0xff] }
 0x36c   : > { %1926 = vmatpush1.msra.mxu0 %v1619_v1  ;;  %v5226_v1 = vld [vmem:[%s8844_s5 + $0x6d0] sm:$0xff] }
 0x36d   : > { %1927 = vmatprep.subr.mxu0 %v1618_v2  ;;  %v5162_v2 = vld [vmem:[%s8844_s5 + $0x4e0] sm:$0xff] }
 0x36e   : > { %1928 = vmatpush1.msra.mxu0 %v1617_v3  ;;  %v5225_v3 = vld [vmem:[%s8844_s5 + $0x6c8] sm:$0xff] }
 0x36f   : > { %1929 = vmatprep.subr.mxu0 %v1616_v4  ;;  %v5161_v4 = vld [vmem:[%s8844_s5 + $0x4d8] sm:$0xff] }
 0x370   : > { %1930 = vmatpush1.msra.mxu0 %v1615_v5  ;;  %v5224_v5 = vld [vmem:[%s8844_s5 + $0x6c0] sm:$0xff] }
 0x371   : > { %1931 = vmatprep.subr.mxu0 %v1614_v6  ;;  %v5160_v6 = vld [vmem:[%s8844_s5 + $0x4d0] sm:$0xff] }
 0x372   : > { %1932 = vmatpush1.msra.mxu0 %v1613_v7  ;;  %v5223_v7 = vld [vmem:[%s8844_s5 + $0x6b8] sm:$0xff] }
 0x373   : > { %1933 = vmatprep.subr.mxu0 %v1612_v8  ;;  %v5159_v8 = vld [vmem:[%s8844_s5 + $0x4c8] sm:$0xff] }
 0x374   : > { %1934 = vmatpush1.msra.mxu0 %v1611_v9  ;;  %v5222_v9 = vld [vmem:[%s8844_s5 + $0x6b0] sm:$0xff] }
 0x375   : > { %1935 = vmatprep.subr.mxu0 %v1674_v10  ;;  %v5158_v10 = vld [vmem:[%s8844_s5 + $0x4c0] sm:$0xff] }
 0x376   : > { %1936 = vmatpush2.msra.mxu0 %v1673_v11  ;;  %v5221_v11 = vld [vmem:[%s8844_s5 + $0x6a8] sm:$0xff] }
 0x377   : > { %1937 = vmatprep.subr.mxu0 %v1672_v12  ;;  %v5157_v12 = vld [vmem:[%s8844_s5 + $0x4b8] sm:$0xff] }
 0x378   : > { %1938 = vmatpush2.msra.mxu0 %v1671_v13  ;;  %v5220_v13 = vld [vmem:[%s8844_s5 + $0x6a0] sm:$0xff] }
 0x379   : > { %1939 = vmatprep.subr.mxu0 %v1670_v14  ;;  %v5156_v14 = vld [vmem:[%s8844_s5 + $0x4b0] sm:$0xff] }
 0x37a   : > { %1940 = vmatpush2.msra.mxu0 %v1669_v15  ;;  %v5219_v15 = vld [vmem:[%s8844_s5 + $0x698] sm:$0xff] }
 0x37b   : > { %1941 = vmatprep.subr.mxu0 %v1668_v17  ;;  %v5155_v17 = vld [vmem:[%s8844_s5 + $0x4a8] sm:$0xff] }
 0x37c   : > { %1942 = vmatpush2.msra.mxu0 %v1667_v26  ;;  %v5218_v26 = vld [vmem:[%s8844_s5 + $0x690] sm:$0xff] }
 0x37d   : > { %1943 = vmatprep.subr.mxu0 %v1666_v27  ;;  %v5154_v27 = vld [vmem:[%s8844_s5 + $0x4a0] sm:$0xff] }
 0x37e   : > { %1944 = vmatpush2.msra.mxu0 %v1665_v28  ;;  %v5217_v28 = vld [vmem:[%s8844_s5 + $0x688] sm:$0xff] }
 0x37f   : > { %1945 = vmatprep.subr.mxu0 %v1664_v29  ;;  %v5153_v29 = vld [vmem:[%s8844_s5 + $0x498] sm:$0xff] }
 0x380   : > { %1946 = vmatpush2.msra.mxu0 %v1663_v30  ;;  %v5216_v30 = vld [vmem:[%s8844_s5 + $0x680] sm:$0xff] }
 0x381   : > { %1947 = vmatprep.subr.mxu0 %v1662_v31  ;;  %v5152_v31 = vld [vmem:[%s8844_s5 + $0x490] sm:$0xff] }
 0x382   : > { %1948 = vmatpush2.msra.mxu0 %v1661_v34  ;;  %v5215_v34 = vld [vmem:[%s8844_s5 + $0x678] sm:$0xff] }
 0x383   : > { %1949 = vmatprep.subr.mxu0 %v1660_v21  ;;  %v5151_v21 = vld [vmem:[%s8844_s5 + $0x488] sm:$0xff] }
 0x384   : > { %1950 = vmatpush2.msra.mxu0 %v1659_v37  ;;  %v5214_v37 = vld [vmem:[%s8844_s5 + $0x670] sm:$0xff] }
 0x385   : > { %1951 = vmatprep.subr.mxu0 %v1658_v38  ;;  %v5150_v38 = vld [vmem:[%s8844_s5 + $0x480] sm:$0xff] }
 0x386   : > { %1952 = vmatpush2.msra.mxu0 %v1657_v18  ;;  %v5213_v18 = vld [vmem:[%s8844_s5 + $0x668] sm:$0xff] }
 0x387   : > { %1953 = vmatprep.subr.mxu0 %v1656_v22  ;;  %v5149_v22 = vld [vmem:[%s8844_s5 + $0x478] sm:$0xff] }
 0x388   : > { %1954 = vmatpush2.msra.mxu0 %v1655_v42  ;;  %v5212_v42 = vld [vmem:[%s8844_s5 + $0x660] sm:$0xff] }
 0x389   : > { %1955 = vmatprep.subr.mxu0 %v1654_v43  ;;  %v5148_v43 = vld [vmem:[%s8844_s5 + $0x470] sm:$0xff] }
 0x38a   : > { %1956 = vmatpush2.msra.mxu0 %v1653_v44  ;;  %v5211_v44 = vld [vmem:[%s8844_s5 + $0x658] sm:$0xff] }
 0x38b   : > { %1957 = vmatprep.subr.mxu0 %v1652_v45  ;;  %v5147_v45 = vld [vmem:[%s8844_s5 + $0x468] sm:$0xff] }
 0x38c   : > { %1958 = vmatpush2.msra.mxu0 %v1651_v23  ;;  %v5210_v23 = vld [vmem:[%s8844_s5 + $0x650] sm:$0xff] }
 0x38d   : > { %1959 = vmatprep.subr.mxu0 %v1650_v46  ;;  %v5146_v46 = vld [vmem:[%s8844_s5 + $0x460] sm:$0xff] }
 0x38e   : > { %1960 = vmatpush2.msra.mxu0 %v1649_v47  ;;  %v5209_v47 = vld [vmem:[%s8844_s5 + $0x648] sm:$0xff] }
 0x38f   : > { %1961 = vmatprep.subr.mxu0 %v1648_v49  ;;  %v5145_v49 = vld [vmem:[%s8844_s5 + $0x458] sm:$0xff] }
 0x390   : > { %1962 = vmatpush2.msra.mxu0 %v1647_v50  ;;  %v5208_v50 = vld [vmem:[%s8844_s5 + $0x640] sm:$0xff] }
 0x391   : > { %1963 = vmatprep.subr.mxu0 %v1646_v51  ;;  %v5144_v51 = vld [vmem:[%s8844_s5 + $0x450] sm:$0xff] }
 0x392   : > { %1964 = vmatpush2.msra.mxu0 %v1645_v52  ;;  %v5207_v52 = vld [vmem:[%s8844_s5 + $0x638] sm:$0xff] }
 0x393   : > { %1965 = vmatprep.subr.mxu0 %v1644_v24  ;;  %v5143_v24 = vld [vmem:[%s8844_s5 + $0x448] sm:$0xff] }
 0x394   : > { %1966 = vmatpush2.msra.mxu0 %v1643_v53  ;;  %v5206_v53 = vld [vmem:[%s8844_s5 + $0x630] sm:$0xff] }
 0x395   : > { %2245 = vmatprep.subr.mxu0 %v7239_v32  ;;  %v2213_v32 = vld [vmem:[#allocation8 + $0x30] sm:$0xff] }
 0x40d   : > { %v1600_v54 = vpop.f32.mrf.mxu0 }
 0x40f   : > { %v1602_v55 = vpop.f32.mrf.mxu0 }
 0x410   : > { %1967 = vmatprep.mubr.f32.mxu0 %v1602_v55  ;;  %v5205_v55 = vld [vmem:[%s8844_s5 + $0x628] sm:$0xff] }
 0x411   : > { %v1606_v56 = vpop.f32.mrf.mxu0  ;;  %1968 = vmatmul.mubr.f32.vlgmr.msra.gmra.mxu0 %v1600_v54  ;;  %v5142_v54 = vld [vmem:[%s8844_s5 + $0x440] sm:$0xff] }
 0x412   : > { %2246 = vmatpush1.msra.mxu0 %v7243_v35 }
 0x413   : > { %2247 = vmatprep.subr.mxu0 %v7246_v36  ;;  %v1608_v57 = vpop.f32.mrf.mxu0 }
 0x414   : > { %2248 = vmatpush1.msra.mxu0 %v7249_v20  ;;  %1973 = vmatprep.mubr.f32.mxu0 %v1608_v57  ;;  %v5204_v57 = vld [vmem:[%s8844_s5 + $0x620] sm:$0xff] }
 0x415   : > { %2249 = vmatprep.subr.mxu0 %v7254_v39  ;;  %v1750_v58 = vpop.f32.mrf.mxu0  ;;  %1974 = vmatmul.mubr.f32.gmra.mxu0 %v1606_v56  ;;  %v5141_v56 = vld [vmem:[%s8844_s5 + $0x438] sm:$0xff] }
 0x416   : > { %2250 = vmatpush1.msra.mxu0 %v7259_v19  ;;  %2285 = vmatprep.mubr.f32.mxu0 %v6390_v48 }
 0x417   : > { %2251 = vmatprep.subr.mxu0 %v7264_v40  ;;  %v1752_v59 = vpop.f32.mrf.mxu0 }
 0x418   : > { %2252 = vmatpush1.msra.mxu0 %v7269_v41  ;;  %1890 = vmatprep.mubr.f32.mxu1 %v1752_v59  ;;  %v5139_v59 = vld [vmem:[%s8844_s5 + $0x428] sm:$0xff] }
 0x419   : > { %v1756_v25 = vpop.f32.mrf.mxu0  ;;  %1891 = vmatmul.mubr.f32.vlgmr.msra.gmra.mxu1 %v1750_v58  ;;  %5198 = vmatmul.mubr.msk.f32.vlgmr.msra.gmra.mxu0 %vm1527_vm9, %v2213_v32  ;;  %v5140_v58 = vld [vmem:[%s8844_s5 + $0x430] sm:$0xff]  ;;  %v5203_v32 = vld [vmem:[%s8844_s5 + $0x618] sm:$0xff] }
 0x41a   : > { %2014 = vmatpush1.msra.mxu1 %v7243_v35  ;;  %2291 = vmatprep.mubr.f32.mxu0 %v6390_v48  ;;  %v1981_v35 = vld [vmem:[#allocation8 + $0x20] sm:$0xff] }
 0x41b   : > { %2015 = vmatprep.subr.mxu1 %v7246_v36  ;;  %v1758_v61 = vpop.f32.mrf.mxu0  ;;  %2363 = vmatprep.subr.mxu0 %v5231_v60  ;;  %v5229_v36 = vld [vmem:[%s8844_s5 + $0x6e8] sm:$0xff]  ;;  %v5202_v60 = vld [vmem:[%s8844_s5 + $0x610] sm:$0xff] }
 0x41c   : > { %2016 = vmatpush1.msra.mxu1 %v7249_v20  ;;  %1896 = vmatprep.mubr.f32.mxu1 %v1758_v61  ;;  %v5165_v20 = vld [vmem:[%s8844_s5 + $0x4f8] sm:$0xff]  ;;  %v5201_v61 = vld [vmem:[%s8844_s5 + $0x608] sm:$0xff] }
 0x41d   : > { %2017 = vmatprep.subr.mxu1 %v7254_v39  ;;  %1897 = vmatmul.mubr.f32.gmra.mxu1 %v1756_v25  ;;  %v5228_v39 = vld [vmem:[%s8844_s5 + $0x6e0] sm:$0xff] }
 0x41e   : > { %2018 = vmatpush1.msra.mxu1 %v7259_v19  ;;  %2053 = vmatprep.mubr.f32.mxu1 %v6390_v48  ;;  %v5164_v19 = vld [vmem:[%s8844_s5 + $0x4f0] sm:$0xff]  ;;  %v5138_v25 = vld [vmem:[%s8844_s5 + $0x420] sm:$0xff] }
 0x41f   : > { %2019 = vmatprep.subr.mxu1 %v7264_v40  ;;  %5199 = vmatmul.mubr.msk.f32.gmra.mxu0 %vm1527_vm9, %v2214_v62  ;;  %v5227_v40 = vld [vmem:[%s8844_s5 + $0x6d8] sm:$0xff] }
 0x420   : > { %2020 = vmatpush1.msra.mxu1 %v7269_v41  ;;  %2364 = vmatpush1.msra.mxu0 %v5230_v63  ;;  %v5163_v41 = vld [vmem:[%s8844_s5 + $0x4e8] sm:$0xff]  ;;  %v5137_v62 = vld [vmem:[%s8844_s5 + $0x418] sm:$0xff]  ;;  %v5200_v63 = vld [vmem:[%s8844_s5 + $0x600] sm:$0xff] }
 0x421   : > { %5132 = vmatmul.mubr.msk.f32.vlgmr.msra.gmra.mxu1 %vm1527_vm9, %v1981_v35  ;;  %2365 = vmatprep.subr.mxu0 %v5229_v36  ;;  %v5136_v35 = vld [vmem:[%s8844_s5 + $0x410] sm:$0xff]  ;;  %v5263_v36 = vld [vmem:[%s8844_s5 + $0x7f8] sm:$0xff] }
 0x422   : > { %2059 = vmatprep.mubr.f32.mxu1 %v6390_v48  ;;  %2131 = vmatprep.subr.mxu1 %v5165_v20  ;;  %v5135_v20 = vld [vmem:[%s8844_s5 + $0x408] sm:$0xff] }
 0x423   : > { %2366 = vmatpush1.msra.mxu0 %v5228_v39  ;;  %2132 = vmatpush1.msra.mxu1 %v5164_v19  ;;  %v5262_v39 = vld [vmem:[%s8844_s5 + $0x7f0] sm:$0xff]  ;;  %v5134_v19 = vld [vmem:[%s8844_s5 + $0x400] sm:$0xff] }
 0x424   : > { %2367 = vmatprep.subr.mxu0 %v5227_v40  ;;  %2133 = vmatprep.subr.mxu1 %v5163_v41  ;;  %v5261_v40 = vld [vmem:[%s8844_s5 + $0x7e8] sm:$0xff]  ;;  %v5197_v41 = vld [vmem:[%s8844_s5 + $0x5f8] sm:$0xff] }
 0x425   : > { %5133 = vmatmul.mubr.msk.f32.gmra.mxu1 %vm1527_vm9, %v1982_v0  ;;  %2368 = vmatpush1.msra.mxu0 %v5226_v1  ;;  %v5260_v0 = vld [vmem:[%s8844_s5 + $0x7e0] sm:$0xff]  ;;  %v5196_v1 = vld [vmem:[%s8844_s5 + $0x5f0] sm:$0xff] }
 0x426   : > { %2134 = vmatpush1.msra.mxu1 %v5162_v2  ;;  %2369 = vmatprep.subr.mxu0 %v5225_v3  ;;  %v5259_v2 = vld [vmem:[%s8844_s5 + $0x7d8] sm:$0xff]  ;;  %v5195_v3 = vld [vmem:[%s8844_s5 + $0x5e8] sm:$0xff] }
 0x427   : > { %2135 = vmatprep.subr.mxu1 %v5161_v4  ;;  %2370 = vmatpush1.msra.mxu0 %v5224_v5  ;;  %v5258_v4 = vld [vmem:[%s8844_s5 + $0x7d0] sm:$0xff]  ;;  %v5194_v5 = vld [vmem:[%s8844_s5 + $0x5e0] sm:$0xff] }
 0x428   : > { %2136 = vmatpush1.msra.mxu1 %v5160_v6  ;;  %2371 = vmatprep.subr.mxu0 %v5223_v7  ;;  %v5257_v6 = vld [vmem:[%s8844_s5 + $0x7c8] sm:$0xff]  ;;  %v5193_v7 = vld [vmem:[%s8844_s5 + $0x5d8] sm:$0xff] }
 0x429   : > { %2137 = vmatprep.subr.mxu1 %v5159_v8  ;;  %2372 = vmatpush1.msra.mxu0 %v5222_v9  ;;  %v5256_v8 = vld [vmem:[%s8844_s5 + $0x7c0] sm:$0xff]  ;;  %v5192_v9 = vld [vmem:[%s8844_s5 + $0x5d0] sm:$0xff] }
 0x42a   : > { %2138 = vmatpush1.msra.mxu1 %v5158_v10  ;;  %2373 = vmatprep.subr.mxu0 %v5221_v11  ;;  %v5255_v10 = vld [vmem:[%s8844_s5 + $0x7b8] sm:$0xff]  ;;  %v5191_v11 = vld [vmem:[%s8844_s5 + $0x5c8] sm:$0xff] }
 0x42b   : > { %2139 = vmatprep.subr.mxu1 %v5157_v12  ;;  %2374 = vmatpush1.msra.mxu0 %v5220_v13  ;;  %v5254_v12 = vld [vmem:[%s8844_s5 + $0x7b0] sm:$0xff]  ;;  %v5190_v13 = vld [vmem:[%s8844_s5 + $0x5c0] sm:$0xff] }
 0x42c   : > { %2140 = vmatpush1.msra.mxu1 %v5156_v14  ;;  %2375 = vmatprep.subr.mxu0 %v5219_v15  ;;  %v5253_v14 = vld [vmem:[%s8844_s5 + $0x7a8] sm:$0xff]  ;;  %v5189_v15 = vld [vmem:[%s8844_s5 + $0x5b8] sm:$0xff] }
 0x42d   : > { %2141 = vmatprep.subr.mxu1 %v5155_v17  ;;  %2376 = vmatpush1.msra.mxu0 %v5218_v26  ;;  %v5252_v17 = vld [vmem:[%s8844_s5 + $0x7a0] sm:$0xff]  ;;  %v5188_v26 = vld [vmem:[%s8844_s5 + $0x5b0] sm:$0xff] }
 0x42e   : > { %2142 = vmatpush1.msra.mxu1 %v5154_v27  ;;  %2377 = vmatprep.subr.mxu0 %v5217_v28  ;;  %v5251_v27 = vld [vmem:[%s8844_s5 + $0x798] sm:$0xff]  ;;  %v5187_v28 = vld [vmem:[%s8844_s5 + $0x5a8] sm:$0xff] }
 0x42f   : > { %2143 = vmatprep.subr.mxu1 %v5153_v29  ;;  %2378 = vmatpush1.msra.mxu0 %v5216_v30  ;;  %v5250_v29 = vld [vmem:[%s8844_s5 + $0x790] sm:$0xff]  ;;  %v5186_v30 = vld [vmem:[%s8844_s5 + $0x5a0] sm:$0xff] }
 0x430   : > { %2144 = vmatpush1.msra.mxu1 %v5152_v31  ;;  %2379 = vmatprep.subr.mxu0 %v5215_v34  ;;  %v5249_v31 = vld [vmem:[%s8844_s5 + $0x788] sm:$0xff]  ;;  %v5185_v34 = vld [vmem:[%s8844_s5 + $0x598] sm:$0xff] }
 0x431   : > { %2145 = vmatprep.subr.mxu1 %v5151_v21  ;;  %2380 = vmatpush1.msra.mxu0 %v5214_v37  ;;  %v5248_v21 = vld [vmem:[%s8844_s5 + $0x780] sm:$0xff]  ;;  %v5184_v37 = vld [vmem:[%s8844_s5 + $0x590] sm:$0xff] }
 0x432   : > { %2146 = vmatpush1.msra.mxu1 %v5150_v38  ;;  %2381 = vmatprep.subr.mxu0 %v5213_v18  ;;  %v5247_v38 = vld [vmem:[%s8844_s5 + $0x778] sm:$0xff]  ;;  %v5183_v18 = vld [vmem:[%s8844_s5 + $0x588] sm:$0xff] }
 0x433   : > { %2147 = vmatprep.subr.mxu1 %v5149_v22  ;;  %2382 = vmatpush1.msra.mxu0 %v5212_v42  ;;  %v5246_v22 = vld [vmem:[%s8844_s5 + $0x770] sm:$0xff]  ;;  %v5182_v42 = vld [vmem:[%s8844_s5 + $0x580] sm:$0xff] }
 0x434   : > { %2148 = vmatpush1.msra.mxu1 %v5148_v43  ;;  %2383 = vmatprep.subr.mxu0 %v5211_v44  ;;  %v5245_v43 = vld [vmem:[%s8844_s5 + $0x768] sm:$0xff]  ;;  %v5181_v44 = vld [vmem:[%s8844_s5 + $0x578] sm:$0xff] }
 0x435   : > { %2149 = vmatprep.subr.mxu1 %v5147_v45  ;;  %2384 = vmatpush1.msra.mxu0 %v5210_v23  ;;  %v5244_v45 = vld [vmem:[%s8844_s5 + $0x760] sm:$0xff]  ;;  %v5180_v23 = vld [vmem:[%s8844_s5 + $0x570] sm:$0xff] }
 0x436   : > { %2150 = vmatpush1.msra.mxu1 %v5146_v46  ;;  %2385 = vmatprep.subr.mxu0 %v5209_v47  ;;  %v5243_v46 = vld [vmem:[%s8844_s5 + $0x758] sm:$0xff]  ;;  %v5179_v47 = vld [vmem:[%s8844_s5 + $0x568] sm:$0xff] }
 0x437   : > { %2151 = vmatprep.subr.mxu1 %v5145_v49  ;;  %2386 = vmatpush1.msra.mxu0 %v5208_v50  ;;  %v5242_v49 = vld [vmem:[%s8844_s5 + $0x750] sm:$0xff]  ;;  %v5178_v50 = vld [vmem:[%s8844_s5 + $0x560] sm:$0xff] }
 0x438   : > { %2152 = vmatpush1.msra.mxu1 %v5144_v51  ;;  %2387 = vmatprep.subr.mxu0 %v5207_v52  ;;  %v5241_v51 = vld [vmem:[%s8844_s5 + $0x748] sm:$0xff]  ;;  %v5177_v52 = vld [vmem:[%s8844_s5 + $0x558] sm:$0xff] }
 0x439   : > { %2153 = vmatprep.subr.mxu1 %v5143_v24  ;;  %2388 = vmatpush1.msra.mxu0 %v5206_v53  ;;  %v5240_v24 = vld [vmem:[%s8844_s5 + $0x740] sm:$0xff]  ;;  %v5176_v53 = vld [vmem:[%s8844_s5 + $0x550] sm:$0xff] }
 0x43a   : > { %2154 = vmatpush1.msra.mxu1 %v5142_v54  ;;  %2389 = vmatprep.subr.mxu0 %v5205_v55  ;;  %v5239_v54 = vld [vmem:[%s8844_s5 + $0x738] sm:$0xff]  ;;  %v5175_v55 = vld [vmem:[%s8844_s5 + $0x548] sm:$0xff] }
 0x43b   : > { %2155 = vmatprep.subr.mxu1 %v5141_v56  ;;  %2390 = vmatpush1.msra.mxu0 %v5204_v57  ;;  %v5238_v56 = vld [vmem:[%s8844_s5 + $0x730] sm:$0xff]  ;;  %v5174_v57 = vld [vmem:[%s8844_s5 + $0x540] sm:$0xff] }
 0x43c   : > { %2156 = vmatpush1.msra.mxu1 %v5140_v58  ;;  %2391 = vmatprep.subr.mxu0 %v5203_v32  ;;  %v5237_v58 = vld [vmem:[%s8844_s5 + $0x728] sm:$0xff]  ;;  %v5173_v32 = vld [vmem:[%s8844_s5 + $0x538] sm:$0xff] }
 0x43d   : > { %2157 = vmatprep.subr.mxu1 %v5139_v59  ;;  %2392 = vmatpush1.msra.mxu0 %v5202_v60  ;;  %v5236_v59 = vld [vmem:[%s8844_s5 + $0x720] sm:$0xff]  ;;  %v5172_v60 = vld [vmem:[%s8844_s5 + $0x530] sm:$0xff] }
 0x43e   : > { %2158 = vmatpush1.msra.mxu1 %v5138_v25  ;;  %2393 = vmatprep.subr.mxu0 %v5201_v61  ;;  %v5235_v25 = vld [vmem:[%s8844_s5 + $0x718] sm:$0xff]  ;;  %v5171_v61 = vld [vmem:[%s8844_s5 + $0x528] sm:$0xff] }
 0x43f   : > { %2159 = vmatprep.subr.mxu1 %v5137_v62  ;;  %2394 = vmatpush1.msra.mxu0 %v5200_v63  ;;  %v5234_v62 = vld [vmem:[%s8844_s5 + $0x710] sm:$0xff]  ;;  %v5170_v63 = vld [vmem:[%s8844_s5 + $0x520] sm:$0xff] }
 0x440   : > { %2160 = vmatpush1.msra.mxu1 %v5136_v35  ;;  %2395 = vmatprep.subr.mxu0 %v5263_v36  ;;  %v5233_v35 = vld [vmem:[%s8844_s5 + $0x708] sm:$0xff]  ;;  %v5169_v36 = vld [vmem:[%s8844_s5 + $0x518] sm:$0xff] }
 0x441   : > { %2161 = vmatprep.subr.mxu1 %v5135_v20  ;;  %2396 = vmatpush2.msra.mxu0 %v5262_v39  ;;  %v5232_v20 = vld [vmem:[%s8844_s5 + $0x700] sm:$0xff]  ;;  %v5168_v39 = vld [vmem:[%s8844_s5 + $0x510] sm:$0xff] }
 0x442   : > { %2162 = vmatpush1.msra.mxu1 %v5134_v19  ;;  %2397 = vmatprep.subr.mxu0 %v5261_v40  ;;  %v5167_v19 = vld [vmem:[%s8844_s5 + $0x508] sm:$0xff]  ;;  %v5166_v40 = vld [vmem:[%s8844_s5 + $0x500] sm:$0xff] }
 0x443   : > { %2163 = vmatprep.subr.mxu1 %v5197_v41  ;;  %2398 = vmatpush2.msra.mxu0 %v5260_v0 }
 0x444   : > { %2164 = vmatpush2.msra.mxu1 %v5196_v1  ;;  %2399 = vmatprep.subr.mxu0 %v5259_v2 }
 0x445   : > { %2165 = vmatprep.subr.mxu1 %v5195_v3  ;;  %2400 = vmatpush2.msra.mxu0 %v5258_v4 }
 0x446   : > { %2166 = vmatpush2.msra.mxu1 %v5194_v5  ;;  %2401 = vmatprep.subr.mxu0 %v5257_v6 }
 0x447   : > { %2167 = vmatprep.subr.mxu1 %v5193_v7  ;;  %2402 = vmatpush2.msra.mxu0 %v5256_v8 }
 0x448   : > { %2168 = vmatpush2.msra.mxu1 %v5192_v9  ;;  %2403 = vmatprep.subr.mxu0 %v5255_v10 }
 0x449   : > { %2169 = vmatprep.subr.mxu1 %v5191_v11  ;;  %2404 = vmatpush2.msra.mxu0 %v5254_v12 }
 0x44a   : > { %2170 = vmatpush2.msra.mxu1 %v5190_v13  ;;  %2405 = vmatprep.subr.mxu0 %v5253_v14 }
 0x44b   : > { %2171 = vmatprep.subr.mxu1 %v5189_v15  ;;  %2406 = vmatpush2.msra.mxu0 %v5252_v17 }
 0x44c   : > { %2172 = vmatpush2.msra.mxu1 %v5188_v26  ;;  %2407 = vmatprep.subr.mxu0 %v5251_v27 }
 0x44d   : > { %2173 = vmatprep.subr.mxu1 %v5187_v28  ;;  %2408 = vmatpush2.msra.mxu0 %v5250_v29  ;;  %v2591_v28 = vld [vmem:[#allocation13 + $0xf8] sm:$0xff]  ;;  %v2590_v29 = vld [vmem:[#allocation13 + $0xf0] sm:$0xff] }
 0x44e   : > { %2174 = vmatpush2.msra.mxu1 %v5186_v30  ;;  %2409 = vmatprep.subr.mxu0 %v5249_v31  ;;  %v2589_v30 = vld [vmem:[#allocation13 + $0xe8] sm:$0xff]  ;;  %v2588_v31 = vld [vmem:[#allocation13 + $0xe0] sm:$0xff] }
 0x44f   : > { %2175 = vmatprep.subr.mxu1 %v5185_v34  ;;  %2410 = vmatpush2.msra.mxu0 %v5248_v21  ;;  %v2587_v34 = vld [vmem:[#allocation13 + $0xd8] sm:$0xff]  ;;  %v2586_v21 = vld [vmem:[#allocation13 + $0xd0] sm:$0xff] }
 0x450   : > { %2176 = vmatpush2.msra.mxu1 %v5184_v37  ;;  %2411 = vmatprep.subr.mxu0 %v5247_v38  ;;  %v2585_v37 = vld [vmem:[#allocation13 + $0xc8] sm:$0xff]  ;;  %v2584_v38 = vld [vmem:[#allocation13 + $0xc0] sm:$0xff] }
 0x451   : > { %2177 = vmatprep.subr.mxu1 %v5183_v18  ;;  %2412 = vmatpush2.msra.mxu0 %v5246_v22  ;;  %v2583_v18 = vld [vmem:[#allocation13 + $0xb8] sm:$0xff]  ;;  %v2582_v22 = vld [vmem:[#allocation13 + $0xb0] sm:$0xff] }
 0x452   : > { %2178 = vmatpush2.msra.mxu1 %v5182_v42  ;;  %2413 = vmatprep.subr.mxu0 %v5245_v43  ;;  %v2581_v42 = vld [vmem:[#allocation13 + $0xa8] sm:$0xff]  ;;  %v2580_v43 = vld [vmem:[#allocation13 + $0xa0] sm:$0xff] }
 0x453   : > { %2179 = vmatprep.subr.mxu1 %v5181_v44  ;;  %2414 = vmatpush2.msra.mxu0 %v5244_v45  ;;  %v2579_v44 = vld [vmem:[#allocation13 + $0x98] sm:$0xff]  ;;  %v2578_v45 = vld [vmem:[#allocation13 + $0x90] sm:$0xff] }
 0x454   : > { %2180 = vmatpush2.msra.mxu1 %v5180_v23  ;;  %2415 = vmatprep.subr.mxu0 %v5243_v46  ;;  %v2577_v23 = vld [vmem:[#allocation13 + $0x88] sm:$0xff]  ;;  %v2576_v46 = vld [vmem:[#allocation13 + $0x80] sm:$0xff] }
 0x455   : > { %2181 = vmatprep.subr.mxu1 %v5179_v47  ;;  %2416 = vmatpush2.msra.mxu0 %v5242_v49  ;;  %v2575_v47 = vld [vmem:[#allocation13 + $0x78] sm:$0xff]  ;;  %v2574_v49 = vld [vmem:[#allocation13 + $0x70] sm:$0xff] }
 0x456   : > { %2182 = vmatpush2.msra.mxu1 %v5178_v50  ;;  %2417 = vmatprep.subr.mxu0 %v5241_v51  ;;  %v2573_v50 = vld [vmem:[#allocation13 + $0x68] sm:$0xff]  ;;  %v2572_v51 = vld [vmem:[#allocation13 + $0x60] sm:$0xff] }
 0x457   : > { %2183 = vmatprep.subr.mxu1 %v5177_v52  ;;  %2418 = vmatpush2.msra.mxu0 %v5240_v24  ;;  %v2571_v24 = vld [vmem:[#allocation13 + $0x58] sm:$0xff] }
 0x458   : > { %2184 = vmatpush2.msra.mxu1 %v5176_v53  ;;  %2419 = vmatprep.subr.mxu0 %v5239_v54  ;;  %v2570_v53 = vld [vmem:[#allocation13 + $0x50] sm:$0xff]  ;;  %v2444_v54 = vld [vmem:[#allocation10] sm:$0x3] }
 0x459   : > { %2185 = vmatprep.subr.mxu1 %v5175_v55  ;;  %2420 = vmatpush2.msra.mxu0 %v5238_v56  ;;  %v2569_v55 = vld [vmem:[#allocation13 + $0x48] sm:$0xff]  ;;  %v2568_v56 = vld [vmem:[#allocation13 + $0x40] sm:$0xff] }
 0x45a   : > { %2186 = vmatpush2.msra.mxu1 %v5174_v57  ;;  %2421 = vmatprep.subr.mxu0 %v5237_v58 }
 0x45b   : > { %2187 = vmatprep.subr.mxu1 %v5173_v32  ;;  %2422 = vmatpush2.msra.mxu0 %v5236_v59  ;;  %v2567_v32 = vld [vmem:[#allocation13 + $0x38] sm:$0xff] }
 0x45c   : > { %2188 = vmatpush2.msra.mxu1 %v5172_v60  ;;  %2423 = vmatprep.subr.mxu0 %v5235_v25  ;;  %v2449_v60 = vrot.slane %v2444_v54, %v7220_v33  ;;  %v2566_v25 = vld [vmem:[#allocation13 + $0x30] sm:$0xff] }
 0x45d   : > { %2189 = vmatprep.subr.mxu1 %v5171_v61  ;;  %2424 = vmatpush2.msra.mxu0 %v5234_v62  ;;  %v2565_v62 = vld [vmem:[#allocation13 + $0x28] sm:$0xff] }
 0x45e   : > { %2190 = vmatpush2.msra.mxu1 %v5170_v63  ;;  %2425 = vmatprep.subr.mxu0 %v5233_v35 }
 0x45f   : > { %2191 = vmatprep.subr.mxu1 %v5169_v36  ;;  %2426 = vmatpush2.msra.mxu0 %v5232_v20  ;;  %v2453_v36 = vrot.slane %v2444_v54, %v7214_v16  ;;  %v2564_v20 = vld [vmem:[#allocation13 + $0x20] sm:$0xff] }
 0x460   : > { %2192 = vmatpush2.msra.mxu1 %v5168_v39  ;;  %2836 = vmatprep.subr.mxu0 %v2591_v28 }
 0x461   : > { %2193 = vmatprep.subr.mxu1 %v5167_v19 }
 0x462   : > { %2194 = vmatpush2.msra.mxu1 %v5166_v40  ;;  %v2563_v40 = vld [vmem:[#allocation13 + $0x18] sm:$0xff] }
 0x4d1   : > { %v1969_v41 = vpop.f32.mrf.mxu0 }
 0x4d3   : > { %v1971_v0 = vpop.f32.mrf.mxu0 }
 0x4d5   : > { %v1975_v1 = vpop.f32.mrf.mxu0 }
 0x4d7   : > { %v1977_v2 = vpop.f32.mrf.mxu0 }
 0x4d9   : > { %v1892_v3 = vpop.f32.mrf.mxu1  ;;  %v2287_v4 = vpop.f32.mrf.mxu0 }
 0x4da   : > { %v7886_v5 = vadd.f32 %v1969_v41, %v1892_v3 }
 0x4db   : > { %v1894_v6 = vpop.f32.mrf.mxu1  ;;  %v2289_v7 = vpop.f32.mrf.mxu0 }
 0x4dc   : > { %v7888_v8 = vadd.f32 %v1971_v0, %v1894_v6  ;;  %2427 = vmatprep.mubr.f32.mxu0 %v2289_v7 }
 0x4dd   : > { %v1898_v9 = vpop.f32.mrf.mxu1  ;;  %2428 = vmatmul.mubr.f32.vlgmr.msra.gmra.mxu0 %v2287_v4  ;;  %v2561_v4 = vld [vmem:[#allocation13 + $0x8] sm:$0xff] }
 0x4de   : > { %v7890_v10 = vadd.f32 %v1975_v1, %v1898_v9  ;;  %2837 = vmatpush1.msra.mxu0 %v2590_v29  ;;  %v2620_v29 = vld [vmem:[#allocation13 + $0x1e0] sm:$0xff] }
 0x4df   : > { %v1900_v11 = vpop.f32.mrf.mxu1  ;;  %v2293_v12 = vpop.f32.mrf.mxu0  ;;  %2838 = vmatprep.subr.mxu0 %v2589_v30 }
 0x4e0   : > { %v7892_v13 = vadd.f32 %v1977_v2, %v1900_v11  ;;  %2839 = vmatpush1.msra.mxu0 %v2588_v31  ;;  %v2562_v2 = vld [vmem:[#allocation13 + $0x10] sm:$0xff]  ;;  %v2619_v31 = vld [vmem:[#allocation13 + $0x1d8] sm:$0xff] }
 0x4e1   : > { %v2055_v14 = vpop.f32.mrf.mxu1  ;;  %v2295_v15 = vpop.f32.mrf.mxu0  ;;  %2840 = vmatprep.subr.mxu0 %v2587_v34 }
 0x4e2   : > { %2433 = vmatprep.mubr.f32.mxu0 %v2295_v15  ;;  %2841 = vmatpush1.msra.mxu0 %v2586_v21 }
 0x4e3   : > { %v2057_v17 = vpop.f32.mrf.mxu1  ;;  %2434 = vmatmul.mubr.f32.gmra.mxu0 %v2293_v12  ;;  %2842 = vmatprep.subr.mxu0 %v2585_v37  ;;  %v2623_v12 = vld [vmem:[#allocation13 + $0x1f8] sm:$0xff]  ;;  %v2618_v37 = vld [vmem:[#allocation13 + $0x1d0] sm:$0xff] }
 0x4e4   : > { %2195 = vmatprep.mubr.f32.mxu1 %v2057_v17  ;;  %2843 = vmatpush1.msra.mxu0 %v2584_v38  ;;  %v2622_v17 = vld [vmem:[#allocation13 + $0x1f0] sm:$0xff]  ;;  %v2617_v38 = vld [vmem:[#allocation13 + $0x1c8] sm:$0xff] }
 0x4e5   : > { %v2061_v26 = vpop.f32.mrf.mxu1  ;;  %2196 = vmatmul.mubr.f32.vlgmr.msra.gmra.mxu1 %v2055_v14  ;;  %2844 = vmatprep.subr.mxu0 %v2583_v18 }
 0x4e6   : > { %2845 = vmatpush1.msra.mxu0 %v2582_v22  ;;  %v2616_v22 = vld [vmem:[#allocation13 + $0x1c0] sm:$0xff] }
 0x4e7   : > { %v2063_v27 = vpop.f32.mrf.mxu1  ;;  %2846 = vmatprep.subr.mxu0 %v2581_v42  ;;  %v2615_v42 = vld [vmem:[#allocation13 + $0x1b8] sm:$0xff] }
 0x4e8   : > { %2201 = vmatprep.mubr.f32.mxu1 %v2063_v27  ;;  %2847 = vmatpush1.msra.mxu0 %v2580_v43  ;;  %v2614_v43 = vld [vmem:[#allocation13 + $0x1b0] sm:$0xff] }
 0x4e9   : > { %2202 = vmatmul.mubr.f32.gmra.mxu1 %v2061_v26  ;;  %2848 = vmatprep.subr.mxu0 %v2579_v44  ;;  %v2621_v26 = vld [vmem:[#allocation13 + $0x1e8] sm:$0xff] }
 0x4ea   : > { %2553 = vmatprep.mubr.f32.mxu1 %v6390_v48  ;;  %2849 = vmatpush1.msra.mxu0 %v2578_v45  ;;  %v2613_v44 = vld [vmem:[#allocation13 + $0x1a8] sm:$0xff]  ;;  %v2612_v45 = vld [vmem:[#allocation13 + $0x1a0] sm:$0xff] }
 0x4eb   : > { %2850 = vmatprep.subr.mxu0 %v2577_v23  ;;  %v2611_v23 = vld [vmem:[#allocation13 + $0x198] sm:$0xff] }
 0x4ec   : > { %2851 = vmatpush1.msra.mxu0 %v2576_v46  ;;  %v2610_v46 = vld [vmem:[#allocation13 + $0x190] sm:$0xff] }
 0x4ed   : > { %2852 = vmatprep.subr.mxu0 %v2575_v47  ;;  %v2609_v47 = vld [vmem:[#allocation13 + $0x188] sm:$0xff] }
 0x4ee   : > { %2853 = vmatpush1.msra.mxu0 %v2574_v49  ;;  %v2608_v49 = vld [vmem:[#allocation13 + $0x180] sm:$0xff] }
 0x4ef   : > { %2854 = vmatprep.subr.mxu0 %v2573_v50  ;;  %v2607_v50 = vld [vmem:[#allocation13 + $0x178] sm:$0xff] }
 0x4f0   : > { %2855 = vmatpush1.msra.mxu0 %v2572_v51  ;;  %v2606_v51 = vld [vmem:[#allocation13 + $0x170] sm:$0xff] }
 0x4f1   : > { %2856 = vmatprep.subr.mxu0 %v2571_v24 }
 0x4f2   : > { %2857 = vmatpush1.msra.mxu0 %v2570_v53  ;;  %v2604_v53 = vld [vmem:[#allocation13 + $0x160] sm:$0xff] }
 0x4f3   : > { %2858 = vmatprep.subr.mxu0 %v2569_v55  ;;  %v2603_v55 = vld [vmem:[#allocation13 + $0x158] sm:$0xff] }
 0x4f4   : > { %2859 = vmatpush1.msra.mxu0 %v2568_v56 }
 0x4f5   : > { %2860 = vmatprep.subr.mxu0 %v2567_v32 }
 0x4f6   : > { %2861 = vmatpush1.msra.mxu0 %v2566_v25 }
 0x4f7   : > { %2862 = vmatprep.subr.mxu0 %v2565_v62 }
 0x4f8   : > { %2863 = vmatpush1.msra.mxu0 %v2564_v20 }
 0x4f9   : > { %2864 = vmatprep.subr.mxu0 %v2563_v40  ;;  %v2484_v40 = vld [vmem:[#allocation11] sm:$0xff] }
 0x4fa   : > { %2865 = vmatpush1.msra.mxu0 %v2562_v2  ;;  %v2625_v2 = vld [vmem:[#allocation11 + $0x8] sm:$0xff] }
 0x4fb   : > { %2866 = vmatprep.subr.mxu0 %v2561_v4  ;;  %v2731_v4 = vld [vmem:[#allocation13 + $0x2f0] sm:$0xff] }
 0x59d   : > { %v2429_v52 = vpop.f32.mrf.mxu0 }
 0x59f   : > { %v2431_v57 = vpop.f32.mrf.mxu0 }
 0x5a3   : > { %v2435_v39 = vpop.f32.mrf.mxu0 }
 0x5a5   : > { %v2197_v58 = vpop.f32.mrf.mxu1  ;;  %v2437_v11 = vpop.f32.mrf.mxu0 }
 0x5a6   : > { %v2208_v59 = vadd.f32 %v2197_v58, %v7886_v5 }
 0x5a7   : > { %v2199_v61 = vpop.f32.mrf.mxu1 }
 0x5a8   : > { %v2440_v63 = vadd.f32 %v2429_v52, %v2208_v59  ;;  %v2209_v35 = vadd.f32 %v2199_v61, %v7888_v8  ;;  %v2560_v8 = vld [vmem:[#allocation13] sm:$0xff]  ;;  %v2605_v52 = vld [vmem:[#allocation13 + $0x168] sm:$0xff] }
 0x5a9   : > { %v2203_v19 = vpop.f32.mrf.mxu1  ;;  %2867 = vmatpush1.msra.mxu0 %v2560_v8  ;;  %v2601_v59 = vld [vmem:[#allocation13 + $0x148] sm:$0xff]  ;;  %v2600_v61 = vld [vmem:[#allocation13 + $0x140] sm:$0xff] }
 0x5aa   : > { %v7899_v41 = vadd.f32 %v2449_v60, %v2440_v63  ;;  %v2441_v0 = vadd.f32 %v2431_v57, %v2209_v35  ;;  %v2210_v1 = vadd.f32 %v2203_v19, %v7890_v10  ;;  %2868 = vmatprep.subr.mxu0 %v2623_v12  ;;  %v2602_v57 = vld [vmem:[#allocation13 + $0x150] sm:$0xff]  ;;  %v2599_v63 = vld [vmem:[#allocation13 + $0x138] sm:$0xff]  ;;  %v2726_v8 = vld [vmem:[#allocation13 + $0x2c8] sm:$0xff] }
 0x5ab   : > { %v2205_v3 = vpop.f32.mrf.mxu1  ;;  %2869 = vmatpush2.msra.mxu0 %v2622_v17  ;;  %v2723_v12 = vld [vmem:[#allocation13 + $0x2b0] sm:$0xff] }
 0x5ac   : > { %v7902_v5 = vadd.f32 %v2453_v36, %v2441_v0  ;;  %v2442_v6 = vadd.f32 %v2435_v39, %v2210_v1  ;;  %v2211_v7 = vadd.f32 %v2205_v3, %v7892_v13  ;;  %v2464_v9 = vmin.f32 %v7899_v41, 0.0  ;;  %2870 = vmatprep.subr.mxu0 %v2621_v26  ;;  %v2597_v39 = vld [vmem:[#allocation13 + $0x128] sm:$0xff]  ;;  %v2596_v1 = vld [vmem:[#allocation13 + $0x120] sm:$0xff]  ;;  %v2732_v3 = vld [vmem:[#allocation13 + $0x2f8] sm:$0xff] }
 0x5ad   : > { %2871 = vmatpush2.msra.mxu0 %v2620_v29  ;;  %vm2460_vm13 = vcmp.gt.f32.partialorder %v7899_v41, 0.0  ;;  %v2719_v17 = vld [vmem:[#allocation13 + $0x290] sm:$0xff]  ;;  %v2718_v26 = vld [vmem:[#allocation13 + $0x288] sm:$0xff] }
 0x5ae   : > { %v2465_v14 = vmin.f32 %v7902_v5, 0.0  ;;  %v7907_v10 = vadd.f32 %v2449_v60, %v2442_v6  ;;  %v2443_v15 = vadd.f32 %v2437_v11, %v2211_v7  ;;  %v2468_v30 = vmul.f32 1.442695, %v2464_v9  ;;  %2872 = vmatprep.subr.mxu0 %v2619_v31  ;;  %v2728_v6 = vld [vmem:[#allocation13 + $0x2d8] sm:$0xff]  ;;  %v2727_v7 = vld [vmem:[#allocation13 + $0x2d0] sm:$0xff]  ;;  %v2725_v9 = vld [vmem:[#allocation13 + $0x2c0] sm:$0xff] }
 0x5af   : > { %2873 = vmatpush2.msra.mxu0 %v2618_v37  ;;  %vm2461_vm12 = vcmp.gt.f32.partialorder %v7902_v5, 0.0  ;;  %v2724_v11 = vld [vmem:[#allocation13 + $0x2b8] sm:$0xff]  ;;  %v2714_v29 = vld [vmem:[#allocation13 + $0x268] sm:$0xff]  ;;  %v2709_v37 = vld [vmem:[#allocation13 + $0x240] sm:$0xff] }
 0x5b0   : > { %v2470_v27 = vmul.f32 1.442695, %v2465_v14  ;;  %v2466_v28 = vmin.f32 %v7907_v10, 0.0  ;;  %v7910_v13 = vadd.f32 %v2453_v36, %v2443_v15  ;;  %2874 = vmatprep.subr.mxu0 %v2617_v38  ;;  %vm2462_vm11 = vcmp.gt.f32.partialorder %v7907_v10, 0.0  ;;  %v2598_v36 = vld [vmem:[#allocation13 + $0x130] sm:$0xff]  ;;  %v2722_v14 = vld [vmem:[#allocation13 + $0x2a8] sm:$0xff] }
 0x5b1   : > { %2875 = vmatpush2.msra.mxu0 %v2616_v22  ;;  %v2720_v15 = vld [vmem:[#allocation13 + $0x298] sm:$0xff]  ;;  %v2706_v22 = vld [vmem:[#allocation13 + $0x228] sm:$0xff] }
 0x5b2   : > { %v2472_v34 = vmul.f32 1.442695, %v2466_v28  ;;  %v2467_v21 = vmin.f32 %v7910_v13, 0.0  ;;  %6072 = vpow2.f32 %v2470_v27  ;;  %2876 = vmatprep.subr.mxu0 %v2615_v42  ;;  %vm2463_vm10 = vcmp.gt.f32.partialorder %v7910_v13, 0.0  ;;  %v2717_v27 = vld [vmem:[#allocation13 + $0x280] sm:$0xff]  ;;  %v2716_v28 = vld [vmem:[#allocation13 + $0x278] sm:$0xff] }
 0x5b3   : > { %2877 = vmatpush2.msra.mxu0 %v2614_v43  ;;  %v2712_v31 = vld [vmem:[#allocation13 + $0x258] sm:$0xff]  ;;  %v2705_v42 = vld [vmem:[#allocation13 + $0x220] sm:$0xff] }
 0x5b4   : > { %6074 = vpow2.f32 %v2472_v34  ;;  %v2474_v18 = vmul.f32 1.442695, %v2467_v21  ;;  %2878 = vmatprep.subr.mxu0 %v2613_v44  ;;  %v2711_v34 = vld [vmem:[#allocation13 + $0x250] sm:$0xff]  ;;  %v2710_v21 = vld [vmem:[#allocation13 + $0x248] sm:$0xff]  ;;  %v2708_v38 = vld [vmem:[#allocation13 + $0x238] sm:$0xff] }
 0x5b5   : > { %6076 = vpow2.f32 %v2468_v30  ;;  %2879 = vmatpush2.msra.mxu0 %v2612_v45  ;;  %v2713_v30 = vld [vmem:[#allocation13 + $0x260] sm:$0xff]  ;;  %v2704_v43 = vld [vmem:[#allocation13 + $0x218] sm:$0xff]  ;;  %v2703_v44 = vld [vmem:[#allocation13 + $0x210] sm:$0xff] }
 0x5b6   : > { %6078 = vpow2.f32 %v2474_v18  ;;  %2880 = vmatprep.subr.mxu0 %v2611_v23  ;;  %v2707_v18 = vld [vmem:[#allocation13 + $0x230] sm:$0xff]  ;;  %v2702_v45 = vld [vmem:[#allocation13 + $0x208] sm:$0xff]  ;;  %v2701_v23 = vld [vmem:[#allocation13 + $0x200] sm:$0xff] }
 0x5b7   : > { %2881 = vmatpush2.msra.mxu0 %v2610_v46  ;;  %v2764_v46 = vld [vmem:[#allocation13 + $0x3f8] sm:$0xff] }
 0x5b8   : > { %2882 = vmatprep.subr.mxu0 %v2609_v47  ;;  %v2763_v47 = vld [vmem:[#allocation13 + $0x3f0] sm:$0xff] }
 0x5b9   : > { %2883 = vmatpush2.msra.mxu0 %v2608_v49  ;;  %v2762_v49 = vld [vmem:[#allocation13 + $0x3e8] sm:$0xff] }
 0x5ba   : > { %2884 = vmatprep.subr.mxu0 %v2607_v50  ;;  %v2761_v50 = vld [vmem:[#allocation13 + $0x3e0] sm:$0xff] }
 0x5bb   : > { %2885 = vmatpush2.msra.mxu0 %v2606_v51  ;;  %v2760_v51 = vld [vmem:[#allocation13 + $0x3d8] sm:$0xff] }
 0x5bc   : > { %2886 = vmatprep.subr.mxu0 %v2605_v52  ;;  %v2759_v52 = vld [vmem:[#allocation13 + $0x3d0] sm:$0xff] }
 0x5bd   : > { %2887 = vmatpush2.msra.mxu0 %v2604_v53  ;;  %v2757_v53 = vld [vmem:[#allocation13 + $0x3c0] sm:$0xff] }
 0x5be   : > { %2888 = vmatprep.subr.mxu0 %v2603_v55  ;;  %v2755_v55 = vld [vmem:[#allocation13 + $0x3b0] sm:$0xff] }
 0x5bf   : > { %v6073_v24 = vpop.eup %6072  ;;  %2889 = vmatpush2.msra.mxu0 %v2602_v57  ;;  %v2753_v57 = vld [vmem:[#allocation13 + $0x3a0] sm:$0xff] }
 0x5c0   : > { %v5265_v25 = vadd.f32 -1.0, %v6073_v24  ;;  %2890 = vmatprep.subr.mxu0 %v2601_v59  ;;  %v2758_v24 = vld [vmem:[#allocation13 + $0x3c8] sm:$0xff] }
 0x5c1   : > { %v6075_v54 = vpop.eup %6074  ;;  %2891 = vmatpush2.msra.mxu0 %v2600_v61  ;;  %v2750_v59 = vld [vmem:[#allocation13 + $0x388] sm:$0xff]  ;;  %v2747_v61 = vld [vmem:[#allocation13 + $0x370] sm:$0xff] }
 0x5c2   : > { %v6077_v56 = vpop.eup %6076  ;;  %v5266_v32 = vadd.f32 -1.0, %v6075_v54  ;;  %v7925_v19 = vsel %vm2461_vm12, %v7902_v5, %v5265_v25  ;;  %2892 = vmatprep.subr.mxu0 %v2599_v63  ;;  %v2729_v5 = vld [vmem:[#allocation13 + $0x2e0] sm:$0xff]  ;;  %v2756_v54 = vld [vmem:[#allocation13 + $0x3b8] sm:$0xff] }
 0x5c3   : > { %v6079_v58 = vpop.eup %6078  ;;  %v5264_v62 = vadd.f32 -1.0, %v6077_v56  ;;  %2893 = vmatpush2.msra.mxu0 %v2598_v36  ;;  %v2754_v56 = vld [vmem:[#allocation13 + $0x3a8] sm:$0xff]  ;;  %v2748_v25 = vld [vmem:[#allocation13 + $0x378] sm:$0xff]  ;;  %v2745_v63 = vld [vmem:[#allocation13 + $0x360] sm:$0xff] }
 0x5c4   : > { %v5267_v60 = vadd.f32 -1.0, %v6079_v58  ;;  %v7920_v20 = vsel %vm2462_vm11, %v7907_v10, %v5266_v32  ;;  %2894 = vmatprep.subr.mxu0 %v2597_v39  ;;  %v2721_v10 = vld [vmem:[#allocation13 + $0x2a0] sm:$0xff]  ;;  %v2752_v58 = vld [vmem:[#allocation13 + $0x398] sm:$0xff]  ;;  %v2751_v32 = vld [vmem:[#allocation13 + $0x390] sm:$0xff] }
 0x5c5   : > { %v7930_v0 = vsel %vm2460_vm13, %v7899_v41, %v5264_v62  ;;  %2895 = vmatpush2.msra.mxu0 %v2596_v1  ;;  %v2730_v41 = vld [vmem:[#allocation13 + $0x2e8] sm:$0xff]  ;;  %v2744_v36 = vld [vmem:[#allocation13 + $0x358] sm:$0xff]  ;;  %v2743_v39 = vld [vmem:[#allocation13 + $0x350] sm:$0xff] }
 0x5c6   : > { %v7915_v35 = vsel %vm2463_vm10, %v7910_v13, %v5267_v60  ;;  %v2715_v13 = vld [vmem:[#allocation13 + $0x270] sm:$0xff]  ;;  %v2749_v60 = vld [vmem:[#allocation13 + $0x380] sm:$0xff]  ;;  %v2746_v62 = vld [vmem:[#allocation13 + $0x368] sm:$0xff] }
 0x5c7   : > { %2517 = vmatprep.subr.mxu1 %v7915_v35  ;;  %v2741_v1 = vld [vmem:[#allocation13 + $0x340] sm:$0xff] }
 0x5c8   : > { %2518 = vmatpush1.msra.mxu1 %v7920_v20 }
 0x5c9   : > { %2519 = vmatprep.subr.mxu1 %v7925_v19 }
 0x5ca   : > { %2520 = vmatpush1.msra.mxu1 %v7930_v0 }
 0x5cb   : > { %5268 = vmatmul.mubr.msk.f32.vlgmr.msra.gmra.mxu1 %vm2485_vm14, %v2484_v40  ;;  %2657 = vmatprep.subr.mxu1 %v7915_v35  ;;  %v2742_v40 = vld [vmem:[#allocation13 + $0x348] sm:$0xff] }
 0x5cc   : > { %2658 = vmatpush1.msra.mxu1 %v7920_v20  ;;  %2693 = vmatprep.mubr.f32.mxu1 %v6390_v48 }
 0x5cd   : > { %2659 = vmatprep.subr.mxu1 %v7925_v19 }
 0x5ce   : > { %2660 = vmatpush1.msra.mxu1 %v7930_v0 }
 0x5cf   : > { %5269 = vmatmul.mubr.msk.f32.vlgmr.msra.gmra.mxu1 %vm2485_vm14, %v2625_v2  ;;  %2765 = vmatprep.subr.mxu1 %v2732_v3  ;;  %v2740_v2 = vld [vmem:[#allocation13 + $0x338] sm:$0xff]  ;;  %v2739_v3 = vld [vmem:[#allocation13 + $0x330] sm:$0xff] }
 0x5d0   : > { %2766 = vmatpush1.msra.mxu1 %v2731_v4  ;;  %v2738_v4 = vld [vmem:[#allocation13 + $0x328] sm:$0xff] }
 0x5d1   : > { %2767 = vmatprep.subr.mxu1 %v2730_v41  ;;  %v2737_v41 = vld [vmem:[#allocation13 + $0x320] sm:$0xff] }
 0x5d2   : > { %2768 = vmatpush1.msra.mxu1 %v2729_v5  ;;  %v2736_v5 = vld [vmem:[#allocation13 + $0x318] sm:$0xff] }
 0x5d3   : > { %2769 = vmatprep.subr.mxu1 %v2728_v6  ;;  %v2735_v6 = vld [vmem:[#allocation13 + $0x310] sm:$0xff] }
 0x5d4   : > { %2770 = vmatpush1.msra.mxu1 %v2727_v7  ;;  %v2734_v7 = vld [vmem:[#allocation13 + $0x308] sm:$0xff] }
 0x5d5   : > { %2771 = vmatprep.subr.mxu1 %v2726_v8  ;;  %v2733_v8 = vld [vmem:[#allocation13 + $0x300] sm:$0xff] }
 0x5d6   : > { %2772 = vmatpush1.msra.mxu1 %v2725_v9  ;;  %v2595_v9 = vld [vmem:[#allocation13 + $0x118] sm:$0xff] }
 0x5d7   : > { %2773 = vmatprep.subr.mxu1 %v2724_v11  ;;  %v2594_v11 = vld [vmem:[#allocation13 + $0x110] sm:$0xff]  ;;  %2896 = vmatprep.subr.mxu0 %v2595_v9 }
 0x5d8   : > { %2774 = vmatpush1.msra.mxu1 %v2723_v12  ;;  %2897 = vmatpush2.msra.mxu0 %v2594_v11  ;;  %v2593_v12 = vld [vmem:[#allocation13 + $0x108] sm:$0xff]  ;;  %v2986_v9 = vld [vmem:[#allocation13 + $0x410] sm:$0xff] }
 0x5d9   : > { %2775 = vmatprep.subr.mxu1 %v2722_v14  ;;  %v2592_v14 = vld [vmem:[#allocation13 + $0x100] sm:$0xff]  ;;  %2898 = vmatprep.subr.mxu0 %v2593_v12  ;;  %v3207_v11 = vld [vmem:[#allocation13 + $0x648] sm:$0xff] }
 0x5da   : > { %2776 = vmatpush1.msra.mxu1 %v2721_v10  ;;  %2899 = vmatpush2.msra.mxu0 %v2592_v14  ;;  %v3015_v10 = vld [vmem:[#allocation13 + $0x4f8] sm:$0xff]  ;;  %v2985_v12 = vld [vmem:[#allocation13 + $0x408] sm:$0xff]  ;;  %v3206_v14 = vld [vmem:[#allocation13 + $0x640] sm:$0xff] }
 0x5db   : > { %2777 = vmatprep.subr.mxu1 %v2720_v15  ;;  %3048 = vmatprep.subr.mxu0 %v3015_v10  ;;  %v2984_v10 = vld [vmem:[#allocation13 + $0x400] sm:$0xff] }
 0x5dc   : > { %2778 = vmatpush1.msra.mxu1 %v2719_v17 }
 0x5dd   : > { %2779 = vmatprep.subr.mxu1 %v2718_v26  ;;  %v3014_v26 = vld [vmem:[#allocation13 + $0x4f0] sm:$0xff] }
 0x5de   : > { %2780 = vmatpush1.msra.mxu1 %v2717_v27  ;;  %v3013_v27 = vld [vmem:[#allocation13 + $0x4e8] sm:$0xff] }
 0x5df   : > { %2781 = vmatprep.subr.mxu1 %v2716_v28 }
 0x5e0   : > { %2782 = vmatpush1.msra.mxu1 %v2715_v13  ;;  %v3012_v13 = vld [vmem:[#allocation13 + $0x4e0] sm:$0xff] }
 0x5e1   : > { %2783 = vmatprep.subr.mxu1 %v2714_v29  ;;  %v3011_v29 = vld [vmem:[#allocation13 + $0x4d8] sm:$0xff] }
 0x5e2   : > { %2784 = vmatpush1.msra.mxu1 %v2713_v30 }
 0x5e3   : > { %2785 = vmatprep.subr.mxu1 %v2712_v31  ;;  %v3010_v31 = vld [vmem:[#allocation13 + $0x4d0] sm:$0xff] }
 0x5e4   : > { %2786 = vmatpush1.msra.mxu1 %v2711_v34  ;;  %v3009_v34 = vld [vmem:[#allocation13 + $0x4c8] sm:$0xff] }
 0x5e5   : > { %2787 = vmatprep.subr.mxu1 %v2710_v21  ;;  %v2908_v21 = vld [vmem:[#allocation11 + $0x10] sm:$0xff] }
 0x5e6   : > { %2788 = vmatpush1.msra.mxu1 %v2709_v37  ;;  %v3008_v37 = vld [vmem:[#allocation13 + $0x4c0] sm:$0xff] }
 0x5e7   : > { %2789 = vmatprep.subr.mxu1 %v2708_v38  ;;  %v3007_v38 = vld [vmem:[#allocation13 + $0x4b8] sm:$0xff] }
 0x5e8   : > { %2790 = vmatpush1.msra.mxu1 %v2707_v18  ;;  %v3122_v18 = vld [vmem:[#allocation11 + $0x18] sm:$0xff] }
 0x5e9   : > { %2791 = vmatprep.subr.mxu1 %v2706_v22  ;;  %v3229_v22 = vld [vmem:[#allocation13 + $0x6f8] sm:$0xff] }
 0x5ea   : > { %2792 = vmatpush1.msra.mxu1 %v2705_v42  ;;  %v3228_v42 = vld [vmem:[#allocation13 + $0x6f0] sm:$0xff] }
 0x5eb   : > { %2793 = vmatprep.subr.mxu1 %v2704_v43  ;;  %v3006_v43 = vld [vmem:[#allocation13 + $0x4b0] sm:$0xff] }
 0x5ec   : > { %2794 = vmatpush1.msra.mxu1 %v2703_v44  ;;  %v3227_v44 = vld [vmem:[#allocation13 + $0x6e8] sm:$0xff] }
 0x5ed   : > { %2795 = vmatprep.subr.mxu1 %v2702_v45  ;;  %v3005_v45 = vld [vmem:[#allocation13 + $0x4a8] sm:$0xff] }
 0x5ee   : > { %2796 = vmatpush1.msra.mxu1 %v2701_v23  ;;  %v3004_v23 = vld [vmem:[#allocation13 + $0x4a0] sm:$0xff] }
 0x5ef   : > { %2797 = vmatprep.subr.mxu1 %v2764_v46  ;;  %v3003_v46 = vld [vmem:[#allocation13 + $0x498] sm:$0xff] }
 0x5f0   : > { %2798 = vmatpush2.msra.mxu1 %v2763_v47  ;;  %v3224_v47 = vld [vmem:[#allocation13 + $0x6d0] sm:$0xff] }
 0x5f1   : > { %2799 = vmatprep.subr.mxu1 %v2762_v49  ;;  %v3223_v49 = vld [vmem:[#allocation13 + $0x6c8] sm:$0xff] }
 0x5f2   : > { %2800 = vmatpush2.msra.mxu1 %v2761_v50  ;;  %v3222_v50 = vld [vmem:[#allocation13 + $0x6c0] sm:$0xff] }
 0x5f3   : > { %2801 = vmatprep.subr.mxu1 %v2760_v51  ;;  %v3000_v51 = vld [vmem:[#allocation13 + $0x480] sm:$0xff] }
 0x5f4   : > { %2802 = vmatpush2.msra.mxu1 %v2759_v52  ;;  %v3221_v52 = vld [vmem:[#allocation13 + $0x6b8] sm:$0xff] }
 0x5f5   : > { %2803 = vmatprep.subr.mxu1 %v2758_v24  ;;  %v2999_v24 = vld [vmem:[#allocation13 + $0x478] sm:$0xff] }
 0x5f6   : > { %2804 = vmatpush2.msra.mxu1 %v2757_v53  ;;  %v3220_v53 = vld [vmem:[#allocation13 + $0x6b0] sm:$0xff] }
 0x5f7   : > { %2805 = vmatprep.subr.mxu1 %v2756_v54  ;;  %v2998_v54 = vld [vmem:[#allocation13 + $0x470] sm:$0xff] }
 0x5f8   : > { %2806 = vmatpush2.msra.mxu1 %v2755_v55  ;;  %v3219_v55 = vld [vmem:[#allocation13 + $0x6a8] sm:$0xff] }
 0x5f9   : > { %2807 = vmatprep.subr.mxu1 %v2754_v56  ;;  %v2997_v56 = vld [vmem:[#allocation13 + $0x468] sm:$0xff] }
 0x5fa   : > { %2808 = vmatpush2.msra.mxu1 %v2753_v57  ;;  %v3218_v57 = vld [vmem:[#allocation13 + $0x6a0] sm:$0xff] }
 0x5fb   : > { %2809 = vmatprep.subr.mxu1 %v2752_v58  ;;  %v2996_v58 = vld [vmem:[#allocation13 + $0x460] sm:$0xff] }
 0x5fc   : > { %2810 = vmatpush2.msra.mxu1 %v2751_v32  ;;  %v3217_v32 = vld [vmem:[#allocation13 + $0x698] sm:$0xff] }
 0x5fd   : > { %2811 = vmatprep.subr.mxu1 %v2750_v59  ;;  %v2995_v59 = vld [vmem:[#allocation13 + $0x458] sm:$0xff] }
 0x5fe   : > { %2812 = vmatpush2.msra.mxu1 %v2749_v60  ;;  %v3216_v60 = vld [vmem:[#allocation13 + $0x690] sm:$0xff] }
 0x5ff   : > { %2813 = vmatprep.subr.mxu1 %v2748_v25  ;;  %v2994_v25 = vld [vmem:[#allocation13 + $0x450] sm:$0xff] }
 0x600   : > { %2814 = vmatpush2.msra.mxu1 %v2747_v61  ;;  %v3215_v61 = vld [vmem:[#allocation13 + $0x688] sm:$0xff] }
 0x601   : > { %2815 = vmatprep.subr.mxu1 %v2746_v62  ;;  %v2993_v62 = vld [vmem:[#allocation13 + $0x448] sm:$0xff] }
 0x602   : > { %2816 = vmatpush2.msra.mxu1 %v2745_v63  ;;  %v3214_v63 = vld [vmem:[#allocation13 + $0x680] sm:$0xff] }
 0x603   : > { %2817 = vmatprep.subr.mxu1 %v2744_v36  ;;  %v2992_v36 = vld [vmem:[#allocation13 + $0x440] sm:$0xff] }
 0x604   : > { %2818 = vmatpush2.msra.mxu1 %v2743_v39  ;;  %v3213_v39 = vld [vmem:[#allocation13 + $0x678] sm:$0xff] }
 0x605   : > { %2819 = vmatprep.subr.mxu1 %v2742_v40  ;;  %v2991_v40 = vld [vmem:[#allocation13 + $0x438] sm:$0xff] }
 0x606   : > { %2820 = vmatpush2.msra.mxu1 %v2741_v1  ;;  %v3212_v1 = vld [vmem:[#allocation13 + $0x670] sm:$0xff] }
 0x607   : > { %2821 = vmatprep.subr.mxu1 %v2740_v2  ;;  %v2990_v2 = vld [vmem:[#allocation13 + $0x430] sm:$0xff] }
 0x608   : > { %2822 = vmatpush2.msra.mxu1 %v2739_v3  ;;  %v3211_v3 = vld [vmem:[#allocation13 + $0x668] sm:$0xff] }
 0x609   : > { %2823 = vmatprep.subr.mxu1 %v2738_v4  ;;  %v2989_v4 = vld [vmem:[#allocation13 + $0x428] sm:$0xff] }
 0x60a   : > { %2824 = vmatpush2.msra.mxu1 %v2737_v41  ;;  %v3210_v41 = vld [vmem:[#allocation13 + $0x660] sm:$0xff] }
 0x60b   : > { %2825 = vmatprep.subr.mxu1 %v2736_v5  ;;  %v2988_v5 = vld [vmem:[#allocation13 + $0x420] sm:$0xff] }
 0x60c   : > { %2826 = vmatpush2.msra.mxu1 %v2735_v6  ;;  %v3209_v6 = vld [vmem:[#allocation13 + $0x658] sm:$0xff] }
 0x60d   : > { %2827 = vmatprep.subr.mxu1 %v2734_v7  ;;  %v2987_v7 = vld [vmem:[#allocation13 + $0x418] sm:$0xff] }
 0x60e   : > { %2828 = vmatpush2.msra.mxu1 %v2733_v8  ;;  %v3208_v8 = vld [vmem:[#allocation13 + $0x650] sm:$0xff] }
 0x60f   : > { %2940 = vmatprep.subr.mxu1 %v7915_v35 }
 0x68b   : > { %v2555_v15 = vpop.f32.mrf.mxu1 }
 0x68d   : > { %v2557_v17 = vpop.f32.mrf.mxu1 }
 0x68e   : > { %2900 = vmatprep.mubr.f32.mxu0 %v2557_v17  ;;  %v3047_v17 = vld [vmem:[#allocation13 + $0x5f8] sm:$0xff] }
 0x68f   : > { %v2695_v28 = vpop.f32.mrf.mxu1  ;;  %2901 = vmatmul.mubr.f32.vlgmr.msra.gmra.mxu0 %v2555_v15  ;;  %v3205_v15 = vld [vmem:[#allocation13 + $0x638] sm:$0xff] }
 0x690   : > { %3049 = vmatpush1.msra.mxu0 %v3014_v26  ;;  %v3204_v26 = vld [vmem:[#allocation13 + $0x630] sm:$0xff] }
 0x691   : > { %v2697_v30 = vpop.f32.mrf.mxu1  ;;  %3050 = vmatprep.subr.mxu0 %v3013_v27  ;;  %v3046_v27 = vld [vmem:[#allocation13 + $0x5f0] sm:$0xff] }
 0x692   : > { %2829 = vmatprep.mubr.f32.mxu1 %v2697_v30  ;;  %3051 = vmatpush1.msra.mxu0 %v3012_v13  ;;  %v3045_v13 = vld [vmem:[#allocation13 + $0x5e8] sm:$0xff]  ;;  %v3044_v30 = vld [vmem:[#allocation13 + $0x5e0] sm:$0xff] }
 0x693   : > { %2830 = vmatmul.mubr.f32.vlgmr.msra.gmra.mxu1 %v2695_v28  ;;  %3052 = vmatprep.subr.mxu0 %v3011_v29  ;;  %v3203_v28 = vld [vmem:[#allocation13 + $0x628] sm:$0xff]  ;;  %v3202_v29 = vld [vmem:[#allocation13 + $0x620] sm:$0xff] }
 0x694   : > { %2941 = vmatpush1.msra.mxu1 %v7920_v20  ;;  %2976 = vmatprep.mubr.f32.mxu1 %v6390_v48 }
 0x695   : > { %2942 = vmatprep.subr.mxu1 %v7925_v19  ;;  %3053 = vmatpush1.msra.mxu0 %v3010_v31  ;;  %v3201_v31 = vld [vmem:[#allocation13 + $0x618] sm:$0xff] }
 0x696   : > { %2943 = vmatpush1.msra.mxu1 %v7930_v0  ;;  %3054 = vmatprep.subr.mxu0 %v3009_v34  ;;  %v3043_v34 = vld [vmem:[#allocation13 + $0x5d8] sm:$0xff] }
 0x697   : > { %3154 = vmatprep.subr.mxu1 %v7915_v35  ;;  %5270 = vmatmul.mubr.msk.f32.vlgmr.msra.gmra.mxu1 %vm2485_vm14, %v2908_v21  ;;  %v3226_v35 = vld [vmem:[#allocation13 + $0x6e0] sm:$0xff]  ;;  %v3200_v21 = vld [vmem:[#allocation13 + $0x610] sm:$0xff] }
 0x698   : > { %3155 = vmatpush1.msra.mxu1 %v7920_v20  ;;  %3190 = vmatprep.mubr.f32.mxu1 %v6390_v48  ;;  %v3225_v20 = vld [vmem:[#allocation13 + $0x6d8] sm:$0xff] }
 0x699   : > { %3156 = vmatprep.subr.mxu1 %v7925_v19  ;;  %3055 = vmatpush1.msra.mxu0 %v3008_v37  ;;  %v3002_v19 = vld [vmem:[#allocation13 + $0x490] sm:$0xff] }
 0x69a   : > { %3157 = vmatpush1.msra.mxu1 %v7930_v0  ;;  %3056 = vmatprep.subr.mxu0 %v3007_v38  ;;  %v3001_v0 = vld [vmem:[#allocation13 + $0x488] sm:$0xff]  ;;  %v3042_v37 = vld [vmem:[#allocation13 + $0x5d0] sm:$0xff] }
 0x69b   : > { %5271 = vmatmul.mubr.msk.f32.vlgmr.msra.gmra.mxu1 %vm2485_vm14, %v3122_v18  ;;  %3262 = vmatprep.subr.mxu1 %v3229_v22  ;;  %v3199_v38 = vld [vmem:[#allocation13 + $0x608] sm:$0xff]  ;;  %v3198_v22 = vld [vmem:[#allocation13 + $0x600] sm:$0xff] }
 0x69c   : > { %3263 = vmatpush1.msra.mxu1 %v3228_v42  ;;  %3057 = vmatpush1.msra.mxu0 %v3006_v43  ;;  %v3041_v18 = vld [vmem:[#allocation13 + $0x5c8] sm:$0xff]  ;;  %v3040_v42 = vld [vmem:[#allocation13 + $0x5c0] sm:$0xff]  ;;  %v3261_v43 = vld [vmem:[#allocation13 + $0x7f8] sm:$0xff] }
 0x69d   : > { %3264 = vmatprep.subr.mxu1 %v3227_v44  ;;  %3058 = vmatprep.subr.mxu0 %v3005_v45  ;;  %v3039_v44 = vld [vmem:[#allocation13 + $0x5b8] sm:$0xff]  ;;  %v3260_v45 = vld [vmem:[#allocation13 + $0x7f0] sm:$0xff] }
 0x69e   : > { %3265 = vmatpush1.msra.mxu1 %v3226_v35  ;;  %3059 = vmatpush1.msra.mxu0 %v3004_v23  ;;  %v3038_v35 = vld [vmem:[#allocation13 + $0x5b0] sm:$0xff]  ;;  %v3259_v23 = vld [vmem:[#allocation13 + $0x7e8] sm:$0xff] }
 0x69f   : > { %3266 = vmatprep.subr.mxu1 %v3225_v20  ;;  %3060 = vmatprep.subr.mxu0 %v3003_v46  ;;  %v3037_v20 = vld [vmem:[#allocation13 + $0x5a8] sm:$0xff]  ;;  %v3258_v46 = vld [vmem:[#allocation13 + $0x7e0] sm:$0xff] }
 0x6a0   : > { %3267 = vmatpush1.msra.mxu1 %v3224_v47  ;;  %3061 = vmatpush1.msra.mxu0 %v3002_v19  ;;  %v3036_v47 = vld [vmem:[#allocation13 + $0x5a0] sm:$0xff]  ;;  %v3257_v19 = vld [vmem:[#allocation13 + $0x7d8] sm:$0xff] }
 0x6a1   : > { %3268 = vmatprep.subr.mxu1 %v3223_v49  ;;  %3062 = vmatprep.subr.mxu0 %v3001_v0  ;;  %v3035_v49 = vld [vmem:[#allocation13 + $0x598] sm:$0xff]  ;;  %v3256_v0 = vld [vmem:[#allocation13 + $0x7d0] sm:$0xff] }
 0x6a2   : > { %3269 = vmatpush1.msra.mxu1 %v3222_v50  ;;  %3063 = vmatpush1.msra.mxu0 %v3000_v51  ;;  %v3034_v50 = vld [vmem:[#allocation13 + $0x590] sm:$0xff]  ;;  %v3255_v51 = vld [vmem:[#allocation13 + $0x7c8] sm:$0xff] }
 0x6a3   : > { %3270 = vmatprep.subr.mxu1 %v3221_v52  ;;  %3064 = vmatprep.subr.mxu0 %v2999_v24  ;;  %v3033_v52 = vld [vmem:[#allocation13 + $0x588] sm:$0xff]  ;;  %v3254_v24 = vld [vmem:[#allocation13 + $0x7c0] sm:$0xff] }
 0x6a4   : > { %3271 = vmatpush1.msra.mxu1 %v3220_v53  ;;  %3065 = vmatpush1.msra.mxu0 %v2998_v54  ;;  %v3032_v53 = vld [vmem:[#allocation13 + $0x580] sm:$0xff]  ;;  %v3253_v54 = vld [vmem:[#allocation13 + $0x7b8] sm:$0xff] }
 0x6a5   : > { %3272 = vmatprep.subr.mxu1 %v3219_v55  ;;  %3066 = vmatprep.subr.mxu0 %v2997_v56  ;;  %v3031_v55 = vld [vmem:[#allocation13 + $0x578] sm:$0xff]  ;;  %v3252_v56 = vld [vmem:[#allocation13 + $0x7b0] sm:$0xff] }
 0x6a6   : > { %3273 = vmatpush1.msra.mxu1 %v3218_v57  ;;  %3067 = vmatpush1.msra.mxu0 %v2996_v58  ;;  %v3030_v57 = vld [vmem:[#allocation13 + $0x570] sm:$0xff]  ;;  %v3251_v58 = vld [vmem:[#allocation13 + $0x7a8] sm:$0xff] }
 0x6a7   : > { %3274 = vmatprep.subr.mxu1 %v3217_v32  ;;  %3068 = vmatprep.subr.mxu0 %v2995_v59  ;;  %v3029_v32 = vld [vmem:[#allocation13 + $0x568] sm:$0xff]  ;;  %v3250_v59 = vld [vmem:[#allocation13 + $0x7a0] sm:$0xff] }
 0x6a8   : > { %3275 = vmatpush1.msra.mxu1 %v3216_v60  ;;  %3069 = vmatpush1.msra.mxu0 %v2994_v25  ;;  %v3028_v60 = vld [vmem:[#allocation13 + $0x560] sm:$0xff]  ;;  %v3249_v25 = vld [vmem:[#allocation13 + $0x798] sm:$0xff] }
 0x6a9   : > { %3276 = vmatprep.subr.mxu1 %v3215_v61  ;;  %3070 = vmatprep.subr.mxu0 %v2993_v62  ;;  %v3248_v61 = vld [vmem:[#allocation13 + $0x790] sm:$0xff]  ;;  %v3247_v62 = vld [vmem:[#allocation13 + $0x788] sm:$0xff] }
 0x6aa   : > { %3277 = vmatpush1.msra.mxu1 %v3214_v63  ;;  %3071 = vmatpush1.msra.mxu0 %v2992_v36  ;;  %v3246_v63 = vld [vmem:[#allocation13 + $0x780] sm:$0xff]  ;;  %v3027_v36 = vld [vmem:[#allocation13 + $0x558] sm:$0xff] }
 0x6ab   : > { %3278 = vmatprep.subr.mxu1 %v3213_v39  ;;  %3072 = vmatprep.subr.mxu0 %v2991_v40  ;;  %v3245_v39 = vld [vmem:[#allocation13 + $0x778] sm:$0xff]  ;;  %v3026_v40 = vld [vmem:[#allocation13 + $0x550] sm:$0xff] }
 0x6ac   : > { %3279 = vmatpush1.msra.mxu1 %v3212_v1  ;;  %3073 = vmatpush1.msra.mxu0 %v2990_v2  ;;  %v3244_v1 = vld [vmem:[#allocation13 + $0x770] sm:$0xff]  ;;  %v3025_v2 = vld [vmem:[#allocation13 + $0x548] sm:$0xff] }
 0x6ad   : > { %3280 = vmatprep.subr.mxu1 %v3211_v3  ;;  %3074 = vmatprep.subr.mxu0 %v2989_v4  ;;  %v3243_v3 = vld [vmem:[#allocation13 + $0x768] sm:$0xff]  ;;  %v3024_v4 = vld [vmem:[#allocation13 + $0x540] sm:$0xff] }
 0x6ae   : > { %3281 = vmatpush1.msra.mxu1 %v3210_v41  ;;  %3075 = vmatpush1.msra.mxu0 %v2988_v5  ;;  %v3242_v41 = vld [vmem:[#allocation13 + $0x760] sm:$0xff]  ;;  %v3023_v5 = vld [vmem:[#allocation13 + $0x538] sm:$0xff] }
 0x6af   : > { %3282 = vmatprep.subr.mxu1 %v3209_v6  ;;  %3076 = vmatprep.subr.mxu0 %v2987_v7  ;;  %v3241_v6 = vld [vmem:[#allocation13 + $0x758] sm:$0xff]  ;;  %v3022_v7 = vld [vmem:[#allocation13 + $0x530] sm:$0xff] }
 0x6b0   : > { %3283 = vmatpush1.msra.mxu1 %v3208_v8  ;;  %3077 = vmatpush1.msra.mxu0 %v2986_v9  ;;  %v3240_v8 = vld [vmem:[#allocation13 + $0x750] sm:$0xff]  ;;  %v3021_v9 = vld [vmem:[#allocation13 + $0x528] sm:$0xff] }
 0x6b1   : > { %3284 = vmatprep.subr.mxu1 %v3207_v11  ;;  %3078 = vmatprep.subr.mxu0 %v2985_v12  ;;  %v3239_v11 = vld [vmem:[#allocation13 + $0x748] sm:$0xff]  ;;  %v3020_v12 = vld [vmem:[#allocation13 + $0x520] sm:$0xff] }
 0x6b2   : > { %3285 = vmatpush1.msra.mxu1 %v3206_v14  ;;  %3079 = vmatpush1.msra.mxu0 %v2984_v10  ;;  %v3238_v14 = vld [vmem:[#allocation13 + $0x740] sm:$0xff]  ;;  %v3019_v10 = vld [vmem:[#allocation13 + $0x518] sm:$0xff] }
 0x6b3   : > { %3286 = vmatprep.subr.mxu1 %v3205_v15  ;;  %3080 = vmatprep.subr.mxu0 %v3047_v17  ;;  %v3237_v15 = vld [vmem:[#allocation13 + $0x738] sm:$0xff]  ;;  %v3018_v17 = vld [vmem:[#allocation13 + $0x510] sm:$0xff] }
 0x6b4   : > { %3287 = vmatpush1.msra.mxu1 %v3204_v26  ;;  %3081 = vmatpush2.msra.mxu0 %v3046_v27  ;;  %v3236_v26 = vld [vmem:[#allocation13 + $0x730] sm:$0xff]  ;;  %v3017_v27 = vld [vmem:[#allocation13 + $0x508] sm:$0xff] }
 0x6b5   : > { %3288 = vmatprep.subr.mxu1 %v3203_v28  ;;  %3082 = vmatprep.subr.mxu0 %v3045_v13  ;;  %v3235_v28 = vld [vmem:[#allocation13 + $0x728] sm:$0xff]  ;;  %v3016_v13 = vld [vmem:[#allocation13 + $0x500] sm:$0xff] }
 0x6b6   : > { %3289 = vmatpush1.msra.mxu1 %v3202_v29  ;;  %3083 = vmatpush2.msra.mxu0 %v3044_v30  ;;  %v3234_v29 = vld [vmem:[#allocation13 + $0x720] sm:$0xff]  ;;  %v3233_v30 = vld [vmem:[#allocation13 + $0x718] sm:$0xff] }
 0x6b7   : > { %3290 = vmatprep.subr.mxu1 %v3201_v31  ;;  %3084 = vmatprep.subr.mxu0 %v3043_v34  ;;  %v3232_v31 = vld [vmem:[#allocation13 + $0x710] sm:$0xff]  ;;  %v3231_v34 = vld [vmem:[#allocation13 + $0x708] sm:$0xff] }
 0x6b8   : > { %3291 = vmatpush1.msra.mxu1 %v3200_v21  ;;  %3085 = vmatpush2.msra.mxu0 %v3042_v37  ;;  %v3230_v21 = vld [vmem:[#allocation13 + $0x700] sm:$0xff] }
 0x6b9   : > { %3292 = vmatprep.subr.mxu1 %v3199_v38  ;;  %3086 = vmatprep.subr.mxu0 %v3041_v18 }
 0x6ba   : > { %3293 = vmatpush1.msra.mxu1 %v3198_v22  ;;  %3087 = vmatpush2.msra.mxu0 %v3040_v42 }
 0x6bb   : > { %3294 = vmatprep.subr.mxu1 %v3261_v43  ;;  %3088 = vmatprep.subr.mxu0 %v3039_v44  ;;  %v5308_v44 = vld [vmem:[%s8850_s11 + $0x1f8] sm:$0xff] }
 0x6bc   : > { %3295 = vmatpush2.msra.mxu1 %v3260_v45  ;;  %3089 = vmatpush2.msra.mxu0 %v3038_v35  ;;  %v5292_v45 = vld [vmem:[%s8850_s11 + $0x178] sm:$0xff]  ;;  %v5307_v35 = vld [vmem:[%s8850_s11 + $0x1f0] sm:$0xff] }
 0x6bd   : > { %3296 = vmatprep.subr.mxu1 %v3259_v23  ;;  %3090 = vmatprep.subr.mxu0 %v3037_v20  ;;  %v5291_v23 = vld [vmem:[%s8850_s11 + $0x170] sm:$0xff]  ;;  %v5306_v20 = vld [vmem:[%s8850_s11 + $0x1e8] sm:$0xff] }
 0x6be   : > { %3297 = vmatpush2.msra.mxu1 %v3258_v46  ;;  %3091 = vmatpush2.msra.mxu0 %v3036_v47  ;;  %v5290_v46 = vld [vmem:[%s8850_s11 + $0x168] sm:$0xff]  ;;  %v5305_v47 = vld [vmem:[%s8850_s11 + $0x1e0] sm:$0xff] }
 0x6bf   : > { %3298 = vmatprep.subr.mxu1 %v3257_v19  ;;  %3092 = vmatprep.subr.mxu0 %v3035_v49  ;;  %v5289_v19 = vld [vmem:[%s8850_s11 + $0x160] sm:$0xff]  ;;  %v5304_v49 = vld [vmem:[%s8850_s11 + $0x1d8] sm:$0xff] }
 0x6c0   : > { %3299 = vmatpush2.msra.mxu1 %v3256_v0  ;;  %3093 = vmatpush2.msra.mxu0 %v3034_v50  ;;  %v5288_v0 = vld [vmem:[%s8850_s11 + $0x158] sm:$0xff]  ;;  %v5303_v50 = vld [vmem:[%s8850_s11 + $0x1d0] sm:$0xff] }
 0x6c1   : > { %3300 = vmatprep.subr.mxu1 %v3255_v51  ;;  %3094 = vmatprep.subr.mxu0 %v3033_v52  ;;  %v5287_v51 = vld [vmem:[%s8850_s11 + $0x150] sm:$0xff]  ;;  %v5302_v52 = vld [vmem:[%s8850_s11 + $0x1c8] sm:$0xff] }
 0x6c2   : > { %3301 = vmatpush2.msra.mxu1 %v3254_v24  ;;  %3095 = vmatpush2.msra.mxu0 %v3032_v53  ;;  %v5286_v24 = vld [vmem:[%s8850_s11 + $0x148] sm:$0xff]  ;;  %v5301_v53 = vld [vmem:[%s8850_s11 + $0x1c0] sm:$0xff] }
 0x6c3   : > { %3302 = vmatprep.subr.mxu1 %v3253_v54  ;;  %3096 = vmatprep.subr.mxu0 %v3031_v55  ;;  %v5285_v54 = vld [vmem:[%s8850_s11 + $0x140] sm:$0xff]  ;;  %v5300_v55 = vld [vmem:[%s8850_s11 + $0x1b8] sm:$0xff] }
 0x6c4   : > { %3303 = vmatpush2.msra.mxu1 %v3252_v56  ;;  %3097 = vmatpush2.msra.mxu0 %v3030_v57  ;;  %v5284_v56 = vld [vmem:[%s8850_s11 + $0x138] sm:$0xff]  ;;  %v5299_v57 = vld [vmem:[%s8850_s11 + $0x1b0] sm:$0xff] }
 0x6c5   : > { %3304 = vmatprep.subr.mxu1 %v3251_v58  ;;  %3098 = vmatprep.subr.mxu0 %v3029_v32  ;;  %v5283_v58 = vld [vmem:[%s8850_s11 + $0x130] sm:$0xff]  ;;  %v5298_v32 = vld [vmem:[%s8850_s11 + $0x1a8] sm:$0xff] }
 0x6c6   : > { %3305 = vmatpush2.msra.mxu1 %v3250_v59  ;;  %3099 = vmatpush2.msra.mxu0 %v3028_v60  ;;  %v5282_v59 = vld [vmem:[%s8850_s11 + $0x128] sm:$0xff]  ;;  %v5297_v60 = vld [vmem:[%s8850_s11 + $0x1a0] sm:$0xff] }
 0x6c7   : > { %3306 = vmatprep.subr.mxu1 %v3249_v25  ;;  %3100 = vmatprep.subr.mxu0 %v3027_v36  ;;  %v5281_v25 = vld [vmem:[%s8850_s11 + $0x120] sm:$0xff]  ;;  %v5279_v36 = vld [vmem:[%s8850_s11 + $0x110] sm:$0xff] }
 0x6c8   : > { %3307 = vmatpush2.msra.mxu1 %v3248_v61  ;;  %3101 = vmatpush2.msra.mxu0 %v3026_v40  ;;  %v5296_v61 = vld [vmem:[%s8850_s11 + $0x198] sm:$0xff]  ;;  %v5278_v40 = vld [vmem:[%s8850_s11 + $0x108] sm:$0xff] }
 0x6c9   : > { %3308 = vmatprep.subr.mxu1 %v3247_v62  ;;  %3102 = vmatprep.subr.mxu0 %v3025_v2  ;;  %v5280_v62 = vld [vmem:[%s8850_s11 + $0x118] sm:$0xff]  ;;  %v5277_v2 = vld [vmem:[%s8850_s11 + $0x100] sm:$0xff] }
 0x6ca   : > { %3309 = vmatpush2.msra.mxu1 %v3246_v63  ;;  %3103 = vmatpush2.msra.mxu0 %v3024_v4  ;;  %v5295_v63 = vld [vmem:[%s8850_s11 + $0x190] sm:$0xff] }
 0x6cb   : > { %3310 = vmatprep.subr.mxu1 %v3245_v39  ;;  %3104 = vmatprep.subr.mxu0 %v3023_v5  ;;  %v5294_v39 = vld [vmem:[%s8850_s11 + $0x188] sm:$0xff]  ;;  %v3335_v5 = vld [vmem:[#allocation14] sm:$0x3] }
 0x6cc   : > { %3311 = vmatpush2.msra.mxu1 %v3244_v1  ;;  %3105 = vmatpush2.msra.mxu0 %v3022_v7  ;;  %v5293_v1 = vld [vmem:[%s8850_s11 + $0x180] sm:$0xff] }
 0x6cd   : > { %3312 = vmatprep.subr.mxu1 %v3243_v3  ;;  %3106 = vmatprep.subr.mxu0 %v3021_v9 }
 0x6ce   : > { %3313 = vmatpush2.msra.mxu1 %v3242_v41  ;;  %3107 = vmatpush2.msra.mxu0 %v3020_v12 }
 0x6cf   : > { %3314 = vmatprep.subr.mxu1 %v3241_v6  ;;  %3108 = vmatprep.subr.mxu0 %v3019_v10 }
 0x6d0   : > { %3315 = vmatpush2.msra.mxu1 %v3240_v8  ;;  %3109 = vmatpush2.msra.mxu0 %v3018_v17 }
 0x6d1   : > { %3316 = vmatprep.subr.mxu1 %v3239_v11  ;;  %3110 = vmatprep.subr.mxu0 %v3017_v27  ;;  %v3340_v11 = vrot.slane %v3335_v5, %v7220_v33 }
 0x6d2   : > { %3317 = vmatpush2.msra.mxu1 %v3238_v14  ;;  %3111 = vmatpush2.msra.mxu0 %v3016_v13 }
 0x6d3   : > { %3318 = vmatprep.subr.mxu1 %v3237_v15  ;;  %v3344_v15 = vrot.slane %v3335_v5, %v7214_v16  ;;  %v3361_v16 = vld [vmem:[%s8849_s10] sm:$0x1] }
 0x6d4   : > { %3319 = vmatpush2.msra.mxu1 %v3236_v26 }
 0x6d5   : > { %3320 = vmatprep.subr.mxu1 %v3235_v28 }
 0x6d6   : > { %3321 = vmatpush2.msra.mxu1 %v3234_v29 }
 0x6d7   : > { %3322 = vmatprep.subr.mxu1 %v3233_v30 }
 0x6d8   : > { %3323 = vmatpush2.msra.mxu1 %v3232_v31 }
 0x6d9   : > { %3324 = vmatprep.subr.mxu1 %v3231_v34 }
 0x6da   : > { %3325 = vmatpush2.msra.mxu1 %v3230_v21 }
 0x6db   : > { %5566 = vmatprep.subr.mxu1 %v5308_v44  ;;  %v3467_v44 = vld [vmem:[%s8850_s11 + $0xf0] sm:$0xff] }
 0x74f   : > { %v2902_v3 = vpop.f32.mrf.mxu0 }
 0x751   : > { %v2904_v4 = vpop.f32.mrf.mxu0 }
 0x753   : > { %v7952_v37 = vpop.f32.mrf.mxu1 }
 0x754   : > { %v2903_v6 = vadd.f32 %v2902_v3, %v7952_v37 }
 0x755   : > { %v7954_v38 = vpop.f32.mrf.mxu1 }
 0x756   : > { %v2905_v8 = vadd.f32 %v2904_v4, %v7954_v38  ;;  %v5326_v4 = vld [vmem:[%s8850_s11 + $0x278] sm:$0xff] }
 0x757   : > { %v2978_v18 = vpop.f32.mrf.mxu1 }
 0x759   : > { %v2980_v22 = vpop.f32.mrf.mxu1 }
 0x75a   : > { %3112 = vmatprep.mubr.f32.mxu0 %v2980_v22  ;;  %v3468_v22 = vld [vmem:[%s8850_s11 + $0xf8] sm:$0xff] }
 0x75b   : > { %3113 = vmatmul.mubr.f32.vlgmr.msra.gmra.mxu0 %v2978_v18  ;;  %v3192_v42 = vpop.f32.mrf.mxu1 }
 0x75c   : > { %3430 = vmatprep.mubr.f32.mxu0 %v6390_v48 }
 0x75d   : > { %v3194_v43 = vpop.f32.mrf.mxu1 }
 0x75e   : > { %3326 = vmatprep.mubr.f32.mxu1 %v3194_v43  ;;  %v3452_v43 = vld [vmem:[%s8850_s11 + $0x78] sm:$0xff] }
 0x75f   : > { %3327 = vmatmul.mubr.f32.vlgmr.msra.gmra.mxu1 %v3192_v42  ;;  %v5275_v42 = vld [vmem:[%s8849_s10 + $0x1] sm:$0x1] }
 0x760   : > { %5567 = vmatpush3.msra.mxu1 %v5292_v45  ;;  %v3451_v45 = vld [vmem:[%s8850_s11 + $0x70] sm:$0xff] }
 0x761   : > { %5568 = vmatprep.subr.mxu1 %v5307_v35  ;;  %v3466_v35 = vld [vmem:[%s8850_s11 + $0xe8] sm:$0xff] }
 0x762   : > { %5569 = vmatpush3.msra.mxu1 %v5291_v23  ;;  %v3450_v23 = vld [vmem:[%s8850_s11 + $0x68] sm:$0xff] }
 0x763   : > { %5570 = vmatprep.subr.mxu1 %v5306_v20  ;;  %v3465_v20 = vld [vmem:[%s8850_s11 + $0xe0] sm:$0xff] }
 0x764   : > { %5571 = vmatpush3.msra.mxu1 %v5290_v46  ;;  %v3449_v46 = vld [vmem:[%s8850_s11 + $0x60] sm:$0xff] }
 0x765   : > { %5572 = vmatprep.subr.mxu1 %v5305_v47  ;;  %v3464_v47 = vld [vmem:[%s8850_s11 + $0xd8] sm:$0xff] }
 0x766   : > { %5573 = vmatpush3.msra.mxu1 %v5289_v19  ;;  %v3448_v19 = vld [vmem:[%s8850_s11 + $0x58] sm:$0xff] }
 0x767   : > { %5574 = vmatprep.subr.mxu1 %v5304_v49  ;;  %v3463_v49 = vld [vmem:[%s8850_s11 + $0xd0] sm:$0xff] }
 0x768   : > { %5575 = vmatpush3.msra.mxu1 %v5288_v0  ;;  %v3447_v0 = vld [vmem:[%s8850_s11 + $0x50] sm:$0xff] }
 0x769   : > { %5576 = vmatprep.subr.mxu1 %v5303_v50  ;;  %v3462_v50 = vld [vmem:[%s8850_s11 + $0xc8] sm:$0xff] }
 0x76a   : > { %5577 = vmatpush3.msra.mxu1 %v5287_v51  ;;  %v3446_v51 = vld [vmem:[%s8850_s11 + $0x48] sm:$0xff] }
 0x76b   : > { %5578 = vmatprep.subr.mxu1 %v5302_v52  ;;  %v3461_v52 = vld [vmem:[%s8850_s11 + $0xc0] sm:$0xff] }
 0x76c   : > { %5579 = vmatpush3.msra.mxu1 %v5286_v24  ;;  %v3445_v24 = vld [vmem:[%s8850_s11 + $0x40] sm:$0xff] }
 0x76d   : > { %5580 = vmatprep.subr.mxu1 %v5301_v53  ;;  %v3460_v53 = vld [vmem:[%s8850_s11 + $0xb8] sm:$0xff] }
 0x76e   : > { %5581 = vmatpush3.msra.mxu1 %v5285_v54  ;;  %v3444_v54 = vld [vmem:[%s8850_s11 + $0x38] sm:$0xff] }
 0x76f   : > { %5582 = vmatprep.subr.mxu1 %v5300_v55  ;;  %v3459_v55 = vld [vmem:[%s8850_s11 + $0xb0] sm:$0xff] }
 0x770   : > { %5583 = vmatpush3.msra.mxu1 %v5284_v56  ;;  %v3443_v56 = vld [vmem:[%s8850_s11 + $0x30] sm:$0xff] }
 0x771   : > { %5584 = vmatprep.subr.mxu1 %v5299_v57  ;;  %v3458_v57 = vld [vmem:[%s8850_s11 + $0xa8] sm:$0xff] }
 0x772   : > { %5585 = vmatpush3.msra.mxu1 %v5283_v58  ;;  %v3442_v58 = vld [vmem:[%s8850_s11 + $0x28] sm:$0xff] }
 0x773   : > { %5586 = vmatprep.subr.mxu1 %v5298_v32  ;;  %v3457_v32 = vld [vmem:[%s8850_s11 + $0xa0] sm:$0xff] }
 0x774   : > { %5587 = vmatpush3.msra.mxu1 %v5282_v59  ;;  %v3441_v59 = vld [vmem:[%s8850_s11 + $0x20] sm:$0xff] }
 0x775   : > { %5588 = vmatprep.subr.mxu1 %v5297_v60  ;;  %v3456_v60 = vld [vmem:[%s8850_s11 + $0x98] sm:$0xff] }
 0x776   : > { %5589 = vmatpush3.msra.mxu1 %v5281_v25  ;;  %v3440_v25 = vld [vmem:[%s8850_s11 + $0x18] sm:$0xff] }
 0x777   : > { %5590 = vmatprep.subr.mxu1 %v5296_v61  ;;  %v3455_v61 = vld [vmem:[%s8850_s11 + $0x90] sm:$0xff] }
 0x778   : > { %5591 = vmatpush3.msra.mxu1 %v5280_v62  ;;  %v3439_v62 = vld [vmem:[%s8850_s11 + $0x10] sm:$0xff] }
 0x779   : > { %5592 = vmatprep.subr.mxu1 %v5295_v63  ;;  %v3454_v63 = vld [vmem:[%s8850_s11 + $0x88] sm:$0xff] }
 0x77a   : > { %5593 = vmatpush3.msra.mxu1 %v5279_v36  ;;  %v3438_v36 = vld [vmem:[%s8850_s11 + $0x8] sm:$0xff] }
 0x77b   : > { %5594 = vmatprep.subr.mxu1 %v5294_v39  ;;  %v3453_v39 = vld [vmem:[%s8850_s11 + $0x80] sm:$0xff] }
 0x77c   : > { %5595 = vmatpush3.msra.mxu1 %v5278_v40  ;;  %v3437_v40 = vld [vmem:[%s8850_s11] sm:$0xff] }
 0x77d   : > { %5596 = vmatprep.subr.mxu1 %v5293_v1  ;;  %v5342_v1 = vld [vmem:[%s8850_s11 + $0x2f8] sm:$0xff] }
 0x77e   : > { %5597 = vmatpush3.msra.mxu1 %v5277_v2 }
 0x81b   : > { %v3114_v41 = vpop.f32.mrf.mxu0 }
 0x81c   : > { %v3119_v9 = vadd.f32 %v3114_v41, %v2903_v6  ;;  %v5341_v41 = vld [vmem:[%s8850_s11 + $0x2f0] sm:$0xff] }
 0x81d   : > { %v3116_v7 = vpop.f32.mrf.mxu0  ;;  %v5325_v6 = vld [vmem:[%s8850_s11 + $0x270] sm:$0xff] }
 0x81e   : > { %v3120_v14 = vadd.f32 %v3116_v7, %v2905_v8  ;;  %v5340_v7 = vld [vmem:[%s8850_s11 + $0x2e8] sm:$0xff] }
 0x81f   : > { %v3328_v12 = vpop.f32.mrf.mxu1 }
 0x820   : > { %v3333_v10 = vadd.f32 %v3328_v12, %v3119_v9  ;;  %v5324_v9 = vld [vmem:[%s8850_s11 + $0x268] sm:$0xff]  ;;  %v5323_v12 = vld [vmem:[%s8850_s11 + $0x260] sm:$0xff] }
 0x821   : > { %v3330_v17 = vpop.f32.mrf.mxu1 }
 0x822   : > { %v3347_v26 = vadd.f32 %v3340_v11, %v3333_v10  ;;  %v3334_v27 = vadd.f32 %v3330_v17, %v3120_v14  ;;  %v5339_v11 = vld [vmem:[%s8850_s11 + $0x2e0] sm:$0xff]  ;;  %v5338_v14 = vld [vmem:[%s8850_s11 + $0x2d8] sm:$0xff]  ;;  %v5337_v17 = vld [vmem:[%s8850_s11 + $0x2d0] sm:$0xff] }
 0x823   : > { %v5309_v10 = vld [vmem:[%s8849_s10 + $0x2] sm:$0x1] }
 0x824   : > { %v3351_v28 = vmin.f32 %v3347_v26, 0.0  ;;  %v3348_v13 = vadd.f32 %v3344_v15, %v3334_v27  ;;  %vm3349_vm0 = vcmp.gt.f32.partialorder %v3347_v26, 0.0  ;;  %v5322_v15 = vld [vmem:[%s8850_s11 + $0x258] sm:$0xff] }
 0x825   : > { %v5376_v27 = vld [vmem:[%s8850_s11 + $0x3f8] sm:$0xff] }
 0x826   : > { %v3353_v29 = vmul.f32 1.442695, %v3351_v28  ;;  %v3352_v30 = vmin.f32 %v3348_v13, 0.0  ;;  %vm3350_vm15 = vcmp.gt.f32.partialorder %v3348_v13, 0.0  ;;  %v5336_v28 = vld [vmem:[%s8850_s11 + $0x2c8] sm:$0xff] }
 0x828   : > { %6080 = vpow2.f32 %v3353_v29  ;;  %v3355_v31 = vmul.f32 1.442695, %v3352_v30  ;;  %v5320_v29 = vld [vmem:[%s8850_s11 + $0x248] sm:$0xff]  ;;  %v5360_v30 = vld [vmem:[%s8850_s11 + $0x378] sm:$0xff] }
 0x82a   : > { %6082 = vpow2.f32 %v3355_v31  ;;  %v5335_v31 = vld [vmem:[%s8850_s11 + $0x2c0] sm:$0xff] }
 0x835   : > { %v6081_v34 = vpop.eup %6080 }
 0x836   : > { %v5272_v37 = vadd.f32 -1.0, %v6081_v34  ;;  %v5375_v34 = vld [vmem:[%s8850_s11 + $0x3f0] sm:$0xff] }
 0x837   : > { %v6083_v21 = vpop.eup %6082 }
 0x838   : > { %v5273_v38 = vadd.f32 -1.0, %v6083_v21  ;;  %v8062_v18 = vsel %vm3349_vm0, %v3347_v26, %v5272_v37  ;;  %v5321_v26 = vld [vmem:[%s8850_s11 + $0x250] sm:$0xff]  ;;  %v5319_v21 = vld [vmem:[%s8850_s11 + $0x240] sm:$0xff] }
 0x839   : > { %v5359_v37 = vld [vmem:[%s8850_s11 + $0x370] sm:$0xff] }
 0x83a   : > { %v8057_v33 = vsel %vm3350_vm15, %v3348_v13, %v5273_v38  ;;  %v5343_v13 = vld [vmem:[%s8849_s10 + $0x3] sm:$0x1]  ;;  %v5334_v38 = vld [vmem:[%s8850_s11 + $0x2b8] sm:$0xff] }
 0x83b   : > { %3396 = vmatprep.subr.mxu0 %v8057_v33  ;;  %3753 = vmatprep.subr.mxu1 %v8057_v33 }
 0x83c   : > { %3397 = vmatpush1.msra.mxu0 %v8062_v18 }
 0x83d   : > { %5274 = vmatmul.mubr.msk.f32.vlgmr.msra.gmra.mxu0 %vm3362_vm1, %v3361_v16  ;;  %3504 = vmatprep.subr.mxu0 %v8057_v33  ;;  %v5374_v16 = vld [vmem:[%s8850_s11 + $0x3e8] sm:$0xff] }
 0x83e   : > { %3505 = vmatpush1.msra.mxu0 %v8062_v18  ;;  %3538 = vmatprep.mubr.f32.mxu0 %v6390_v48 }
 0x83f   : > { %5601 = vmatprep.subr.mxu0 %v3468_v22  ;;  %v5318_v22 = vld [vmem:[%s8850_s11 + $0x238] sm:$0xff] }
 0x841   : > { %5276 = vmatmul.mubr.msk.f32.vlgmr.msra.gmra.mxu0 %vm3362_vm1, %v5275_v42  ;;  %v5358_v42 = vld [vmem:[%s8850_s11 + $0x368] sm:$0xff] }
 0x842   : > { %5602 = vmatpush3.msra.mxu0 %v3452_v43  ;;  %v5333_v43 = vld [vmem:[%s8850_s11 + $0x2b0] sm:$0xff] }
 0x843   : > { %5603 = vmatprep.subr.mxu0 %v3467_v44  ;;  %v5373_v44 = vld [vmem:[%s8850_s11 + $0x3e0] sm:$0xff] }
 0x844   : > { %5604 = vmatpush3.msra.mxu0 %v3451_v45  ;;  %v5317_v45 = vld [vmem:[%s8850_s11 + $0x230] sm:$0xff] }
 0x845   : > { %5605 = vmatprep.subr.mxu0 %v3466_v35  ;;  %v5357_v35 = vld [vmem:[%s8850_s11 + $0x360] sm:$0xff] }
 0x846   : > { %5606 = vmatpush3.msra.mxu0 %v3450_v23  ;;  %v5332_v23 = vld [vmem:[%s8850_s11 + $0x2a8] sm:$0xff] }
 0x847   : > { %5607 = vmatprep.subr.mxu0 %v3465_v20  ;;  %v5372_v20 = vld [vmem:[%s8850_s11 + $0x3d8] sm:$0xff] }
 0x848   : > { %5608 = vmatpush3.msra.mxu0 %v3449_v46  ;;  %v5316_v46 = vld [vmem:[%s8850_s11 + $0x228] sm:$0xff] }
 0x849   : > { %5609 = vmatprep.subr.mxu0 %v3464_v47  ;;  %v5356_v47 = vld [vmem:[%s8850_s11 + $0x358] sm:$0xff] }
 0x84a   : > { %5610 = vmatpush3.msra.mxu0 %v3448_v19  ;;  %v5331_v19 = vld [vmem:[%s8850_s11 + $0x2a0] sm:$0xff] }
 0x84b   : > { %5611 = vmatprep.subr.mxu0 %v3463_v49  ;;  %v5371_v49 = vld [vmem:[%s8850_s11 + $0x3d0] sm:$0xff] }
 0x84c   : > { %5612 = vmatpush3.msra.mxu0 %v3447_v0  ;;  %v5315_v0 = vld [vmem:[%s8850_s11 + $0x220] sm:$0xff] }
 0x84d   : > { %5613 = vmatprep.subr.mxu0 %v3462_v50  ;;  %v5355_v50 = vld [vmem:[%s8850_s11 + $0x350] sm:$0xff] }
 0x84e   : > { %5614 = vmatpush3.msra.mxu0 %v3446_v51  ;;  %v5330_v51 = vld [vmem:[%s8850_s11 + $0x298] sm:$0xff] }
 0x84f   : > { %5615 = vmatprep.subr.mxu0 %v3461_v52  ;;  %v5370_v52 = vld [vmem:[%s8850_s11 + $0x3c8] sm:$0xff] }
 0x850   : > { %5616 = vmatpush3.msra.mxu0 %v3445_v24  ;;  %v5314_v24 = vld [vmem:[%s8850_s11 + $0x218] sm:$0xff] }
 0x851   : > { %5617 = vmatprep.subr.mxu0 %v3460_v53  ;;  %v5354_v53 = vld [vmem:[%s8850_s11 + $0x348] sm:$0xff] }
 0x852   : > { %5618 = vmatpush3.msra.mxu0 %v3444_v54  ;;  %v5329_v54 = vld [vmem:[%s8850_s11 + $0x290] sm:$0xff] }
 0x853   : > { %5619 = vmatprep.subr.mxu0 %v3459_v55  ;;  %v5369_v55 = vld [vmem:[%s8850_s11 + $0x3c0] sm:$0xff] }
 0x854   : > { %5620 = vmatpush3.msra.mxu0 %v3443_v56  ;;  %v5313_v56 = vld [vmem:[%s8850_s11 + $0x210] sm:$0xff] }
 0x855   : > { %5621 = vmatprep.subr.mxu0 %v3458_v57  ;;  %v5353_v57 = vld [vmem:[%s8850_s11 + $0x340] sm:$0xff] }
 0x856   : > { %5622 = vmatpush3.msra.mxu0 %v3442_v58  ;;  %v5328_v58 = vld [vmem:[%s8850_s11 + $0x288] sm:$0xff] }
 0x857   : > { %5623 = vmatprep.subr.mxu0 %v3457_v32  ;;  %v5368_v32 = vld [vmem:[%s8850_s11 + $0x3b8] sm:$0xff] }
 0x858   : > { %5624 = vmatpush3.msra.mxu0 %v3441_v59  ;;  %v5312_v59 = vld [vmem:[%s8850_s11 + $0x208] sm:$0xff] }
 0x859   : > { %5625 = vmatprep.subr.mxu0 %v3456_v60  ;;  %v5352_v60 = vld [vmem:[%s8850_s11 + $0x338] sm:$0xff] }
 0x85a   : > { %5626 = vmatpush3.msra.mxu0 %v3440_v25  ;;  %v5327_v25 = vld [vmem:[%s8850_s11 + $0x280] sm:$0xff] }
 0x85b   : > { %5627 = vmatprep.subr.mxu0 %v3455_v61  ;;  %v5367_v61 = vld [vmem:[%s8850_s11 + $0x3b0] sm:$0xff] }
 0x85c   : > { %5628 = vmatpush3.msra.mxu0 %v3439_v62  ;;  %v5311_v62 = vld [vmem:[%s8850_s11 + $0x200] sm:$0xff] }
 0x85d   : > { %5629 = vmatprep.subr.mxu0 %v3454_v63  ;;  %v5351_v63 = vld [vmem:[%s8850_s11 + $0x330] sm:$0xff] }
 0x85e   : > { %5630 = vmatpush3.msra.mxu0 %v3438_v36  ;;  %v5366_v36 = vld [vmem:[%s8850_s11 + $0x3a8] sm:$0xff] }
 0x85f   : > { %5631 = vmatprep.subr.mxu0 %v3453_v39  ;;  %v5350_v39 = vld [vmem:[%s8850_s11 + $0x328] sm:$0xff] }
 0x860   : > { %5632 = vmatpush3.msra.mxu0 %v3437_v40  ;;  %v5365_v40 = vld [vmem:[%s8850_s11 + $0x3a0] sm:$0xff] }
 0x861   : > { %5636 = vmatprep.subr.mxu0 %v5342_v1  ;;  %v5349_v1 = vld [vmem:[%s8850_s11 + $0x320] sm:$0xff] }
 0x8fd   : > { %v3432_v2 = vpop.f32.mrf.mxu0 }
 0x8ff   : > { %v3434_v3 = vpop.f32.mrf.mxu0 }
 0x900   : > { %3712 = vmatprep.mubr.f32.mxu0 %v3434_v3  ;;  %v5348_v3 = vld [vmem:[%s8850_s11 + $0x318] sm:$0xff] }
 0x901   : > { %v3540_v5 = vpop.f32.mrf.mxu0  ;;  %3713 = vmatmul.mubr.f32.vlgmr.msra.gmra.mxu0 %v3432_v2  ;;  %v5364_v2 = vld [vmem:[%s8850_s11 + $0x398] sm:$0xff] }
 0x902   : > { %5637 = vmatpush3.msra.mxu0 %v5326_v4  ;;  %v5363_v4 = vld [vmem:[%s8850_s11 + $0x390] sm:$0xff] }
 0x903   : > { %5638 = vmatprep.subr.mxu0 %v5341_v41  ;;  %v3542_v8 = vpop.f32.mrf.mxu0  ;;  %v5347_v41 = vld [vmem:[%s8850_s11 + $0x310] sm:$0xff] }
 0x904   : > { %5639 = vmatpush3.msra.mxu0 %v5325_v6  ;;  %3642 = vmatprep.mubr.f32.mxu1 %v3542_v8  ;;  %v5346_v6 = vld [vmem:[%s8850_s11 + $0x308] sm:$0xff]  ;;  %v5345_v8 = vld [vmem:[%s8850_s11 + $0x300] sm:$0xff] }
 0x905   : > { %5640 = vmatprep.subr.mxu0 %v5340_v7  ;;  %3643 = vmatmul.mubr.f32.vlgmr.msra.gmra.mxu1 %v3540_v5  ;;  %v5362_v5 = vld [vmem:[%s8850_s11 + $0x388] sm:$0xff]  ;;  %v5361_v7 = vld [vmem:[%s8850_s11 + $0x380] sm:$0xff] }
 0x906   : > { %3754 = vmatpush1.msra.mxu1 %v8062_v18  ;;  %5641 = vmatpush3.msra.mxu0 %v5324_v9 }
 0x907   : > { %5642 = vmatprep.subr.mxu0 %v5339_v11  ;;  %3933 = vmatprep.subr.mxu1 %v8057_v33 }
 0x908   : > { %5643 = vmatpush3.msra.mxu0 %v5323_v12  ;;  %3787 = vmatprep.mubr.f32.mxu1 %v6390_v48 }
 0x909   : > { %5644 = vmatprep.subr.mxu0 %v5338_v14  ;;  %5310 = vmatmul.mubr.msk.f32.vlgmr.msra.gmra.mxu1 %vm3362_vm1, %v5309_v10 }
 0x90a   : > { %5645 = vmatpush3.msra.mxu0 %v5322_v15  ;;  %3934 = vmatpush1.msra.mxu1 %v8062_v18 }
 0x90b   : > { %5646 = vmatprep.subr.mxu0 %v5337_v17  ;;  %3967 = vmatprep.mubr.f32.mxu1 %v6390_v48 }
 0x90c   : > { %5647 = vmatpush3.msra.mxu0 %v5321_v26  ;;  %5671 = vmatprep.subr.mxu1 %v5376_v27 }
 0x90d   : > { %5648 = vmatprep.subr.mxu0 %v5336_v28  ;;  %5344 = vmatmul.mubr.msk.f32.vlgmr.msra.gmra.mxu1 %vm3362_vm1, %v5343_v13  ;;  %v5410_v28 = vld [vmem:[%s8850_s11 + $0x4f8] sm:$0xff] }
 0x90e   : > { %5649 = vmatpush3.msra.mxu0 %v5320_v29  ;;  %5672 = vmatpush3.msra.mxu1 %v5360_v30  ;;  %v5377_v29 = vld [vmem:[%s8849_s10 + $0x4] sm:$0x1] }
 0x90f   : > { %5650 = vmatprep.subr.mxu0 %v5335_v31  ;;  %5673 = vmatprep.subr.mxu1 %v5375_v34  ;;  %v5394_v31 = vld [vmem:[%s8850_s11 + $0x478] sm:$0xff]  ;;  %v5409_v34 = vld [vmem:[%s8850_s11 + $0x4f0] sm:$0xff] }
 0x910   : > { %5651 = vmatpush3.msra.mxu0 %v5319_v21  ;;  %5674 = vmatpush3.msra.mxu1 %v5359_v37  ;;  %v5393_v21 = vld [vmem:[%s8850_s11 + $0x470] sm:$0xff]  ;;  %v5444_v37 = vld [vmem:[%s8850_s11 + $0x5f8] sm:$0xff] }
 0x911   : > { %5652 = vmatprep.subr.mxu0 %v5334_v38  ;;  %5675 = vmatprep.subr.mxu1 %v5374_v16  ;;  %v5408_v38 = vld [vmem:[%s8850_s11 + $0x4e8] sm:$0xff]  ;;  %v5411_v16 = vld [vmem:[%s8849_s10 + $0x5] sm:$0x1] }
 0x912   : > { %5653 = vmatpush3.msra.mxu0 %v5318_v22  ;;  %5676 = vmatpush3.msra.mxu1 %v5358_v42  ;;  %v5392_v22 = vld [vmem:[%s8850_s11 + $0x468] sm:$0xff]  ;;  %v5428_v42 = vld [vmem:[%s8850_s11 + $0x578] sm:$0xff] }
 0x913   : > { %5654 = vmatprep.subr.mxu0 %v5333_v43  ;;  %5677 = vmatprep.subr.mxu1 %v5373_v44  ;;  %v5407_v43 = vld [vmem:[%s8850_s11 + $0x4e0] sm:$0xff]  ;;  %v5443_v44 = vld [vmem:[%s8850_s11 + $0x5f0] sm:$0xff] }
 0x914   : > { %5655 = vmatpush3.msra.mxu0 %v5317_v45  ;;  %5678 = vmatpush3.msra.mxu1 %v5357_v35  ;;  %v5391_v45 = vld [vmem:[%s8850_s11 + $0x460] sm:$0xff]  ;;  %v5427_v35 = vld [vmem:[%s8850_s11 + $0x570] sm:$0xff] }
 0x915   : > { %5656 = vmatprep.subr.mxu0 %v5332_v23  ;;  %5679 = vmatprep.subr.mxu1 %v5372_v20  ;;  %v5406_v23 = vld [vmem:[%s8850_s11 + $0x4d8] sm:$0xff]  ;;  %v5442_v20 = vld [vmem:[%s8850_s11 + $0x5e8] sm:$0xff] }
 0x916   : > { %5657 = vmatpush3.msra.mxu0 %v5316_v46  ;;  %5680 = vmatpush3.msra.mxu1 %v5356_v47  ;;  %v5390_v46 = vld [vmem:[%s8850_s11 + $0x458] sm:$0xff]  ;;  %v5426_v47 = vld [vmem:[%s8850_s11 + $0x568] sm:$0xff] }
 0x917   : > { %5658 = vmatprep.subr.mxu0 %v5331_v19  ;;  %5681 = vmatprep.subr.mxu1 %v5371_v49  ;;  %v5405_v19 = vld [vmem:[%s8850_s11 + $0x4d0] sm:$0xff]  ;;  %v5441_v49 = vld [vmem:[%s8850_s11 + $0x5e0] sm:$0xff] }
 0x918   : > { %5659 = vmatpush3.msra.mxu0 %v5315_v0  ;;  %5682 = vmatpush3.msra.mxu1 %v5355_v50  ;;  %v5389_v0 = vld [vmem:[%s8850_s11 + $0x450] sm:$0xff]  ;;  %v5425_v50 = vld [vmem:[%s8850_s11 + $0x560] sm:$0xff] }
 0x919   : > { %5660 = vmatprep.subr.mxu0 %v5330_v51  ;;  %5683 = vmatprep.subr.mxu1 %v5370_v52  ;;  %v5404_v51 = vld [vmem:[%s8850_s11 + $0x4c8] sm:$0xff]  ;;  %v5440_v52 = vld [vmem:[%s8850_s11 + $0x5d8] sm:$0xff] }
 0x91a   : > { %5661 = vmatpush3.msra.mxu0 %v5314_v24  ;;  %5684 = vmatpush3.msra.mxu1 %v5354_v53  ;;  %v5388_v24 = vld [vmem:[%s8850_s11 + $0x448] sm:$0xff]  ;;  %v5424_v53 = vld [vmem:[%s8850_s11 + $0x558] sm:$0xff] }
 0x91b   : > { %5662 = vmatprep.subr.mxu0 %v5329_v54  ;;  %5685 = vmatprep.subr.mxu1 %v5369_v55  ;;  %v5403_v54 = vld [vmem:[%s8850_s11 + $0x4c0] sm:$0xff]  ;;  %v5439_v55 = vld [vmem:[%s8850_s11 + $0x5d0] sm:$0xff] }
 0x91c   : > { %5663 = vmatpush3.msra.mxu0 %v5313_v56  ;;  %5686 = vmatpush3.msra.mxu1 %v5353_v57  ;;  %v5387_v56 = vld [vmem:[%s8850_s11 + $0x440] sm:$0xff]  ;;  %v5423_v57 = vld [vmem:[%s8850_s11 + $0x550] sm:$0xff] }
 0x91d   : > { %5664 = vmatprep.subr.mxu0 %v5328_v58  ;;  %5687 = vmatprep.subr.mxu1 %v5368_v32  ;;  %v5402_v58 = vld [vmem:[%s8850_s11 + $0x4b8] sm:$0xff]  ;;  %v5438_v32 = vld [vmem:[%s8850_s11 + $0x5c8] sm:$0xff] }
 0x91e   : > { %5665 = vmatpush3.msra.mxu0 %v5312_v59  ;;  %5688 = vmatpush3.msra.mxu1 %v5352_v60  ;;  %v5386_v59 = vld [vmem:[%s8850_s11 + $0x438] sm:$0xff]  ;;  %v5422_v60 = vld [vmem:[%s8850_s11 + $0x548] sm:$0xff] }
 0x91f   : > { %5666 = vmatprep.subr.mxu0 %v5327_v25  ;;  %5689 = vmatprep.subr.mxu1 %v5367_v61  ;;  %v5401_v25 = vld [vmem:[%s8850_s11 + $0x4b0] sm:$0xff]  ;;  %v5437_v61 = vld [vmem:[%s8850_s11 + $0x5c0] sm:$0xff] }
 0x920   : > { %5667 = vmatpush3.msra.mxu0 %v5311_v62  ;;  %5690 = vmatpush3.msra.mxu1 %v5351_v63  ;;  %v5385_v62 = vld [vmem:[%s8850_s11 + $0x430] sm:$0xff]  ;;  %v5421_v63 = vld [vmem:[%s8850_s11 + $0x540] sm:$0xff] }
 0x921   : > { %5691 = vmatprep.subr.mxu1 %v5366_v36  ;;  %4113 = vmatprep.subr.mxu0 %v8057_v33  ;;  %v5400_v36 = vld [vmem:[%s8850_s11 + $0x4a8] sm:$0xff] }
 0x922   : > { %5692 = vmatpush3.msra.mxu1 %v5350_v39  ;;  %v5436_v39 = vld [vmem:[%s8850_s11 + $0x5b8] sm:$0xff] }
 0x923   : > { %5693 = vmatprep.subr.mxu1 %v5365_v40  ;;  %v5384_v40 = vld [vmem:[%s8850_s11 + $0x428] sm:$0xff] }
 0x924   : > { %5694 = vmatpush3.msra.mxu1 %v5349_v1  ;;  %v5420_v1 = vld [vmem:[%s8850_s11 + $0x538] sm:$0xff] }
 0x925   : > { %5695 = vmatprep.subr.mxu1 %v5364_v2  ;;  %v5399_v2 = vld [vmem:[%s8850_s11 + $0x4a0] sm:$0xff] }
 0x926   : > { %5696 = vmatpush3.msra.mxu1 %v5348_v3  ;;  %v5435_v3 = vld [vmem:[%s8850_s11 + $0x5b0] sm:$0xff] }
 0x927   : > { %5697 = vmatprep.subr.mxu1 %v5363_v4  ;;  %v5383_v4 = vld [vmem:[%s8850_s11 + $0x420] sm:$0xff] }
 0x928   : > { %5698 = vmatpush3.msra.mxu1 %v5347_v41  ;;  %v5419_v41 = vld [vmem:[%s8850_s11 + $0x530] sm:$0xff] }
 0x929   : > { %5699 = vmatprep.subr.mxu1 %v5362_v5  ;;  %v5398_v5 = vld [vmem:[%s8850_s11 + $0x498] sm:$0xff] }
 0x92a   : > { %5700 = vmatpush3.msra.mxu1 %v5346_v6  ;;  %v5434_v6 = vld [vmem:[%s8850_s11 + $0x5a8] sm:$0xff] }
 0x92b   : > { %5701 = vmatprep.subr.mxu1 %v5361_v7  ;;  %v5382_v7 = vld [vmem:[%s8850_s11 + $0x418] sm:$0xff] }
 0x92c   : > { %5702 = vmatpush3.msra.mxu1 %v5345_v8  ;;  %v5418_v8 = vld [vmem:[%s8850_s11 + $0x528] sm:$0xff] }
 0x92d   : > { %4293 = vmatprep.subr.mxu1 %v8057_v33 }
 0x9c1   : > { %v5633_v9 = vpop.f32.mrf.mxu0 }
 0x9c3   : > { %v5634_v11 = vpop.f32.mrf.mxu0 }
 0x9c4   : > { %v5635_v10 = vadd.f32 %v5634_v11, %v5633_v9  ;;  %v5397_v9 = vld [vmem:[%s8850_s11 + $0x490] sm:$0xff]  ;;  %v5433_v11 = vld [vmem:[%s8850_s11 + $0x5a0] sm:$0xff] }
 0x9c5   : > { %v5598_v12 = vpop.f32.mrf.mxu1 }
 0x9c7   : > { %v5599_v14 = vpop.f32.mrf.mxu1 }
 0x9c8   : > { %v5600_v15 = vadd.f32 %v5599_v14, %v5598_v12  ;;  %v5381_v12 = vld [vmem:[%s8850_s11 + $0x410] sm:$0xff]  ;;  %v5417_v14 = vld [vmem:[%s8850_s11 + $0x520] sm:$0xff] }
 0x9c9   : > { %v3789_v17 = vpop.f32.mrf.mxu1 }
 0x9ca   : > { %v8378_v26 = vadd.f32 %v5635_v10, %v5600_v15  ;;  %v5396_v10 = vld [vmem:[%s8850_s11 + $0x488] sm:$0xff]  ;;  %v5432_v15 = vld [vmem:[%s8850_s11 + $0x598] sm:$0xff] }
 0x9cb   : > { %v3791_v27 = vpop.f32.mrf.mxu1 }
 0x9cc   : > { %3891 = vmatprep.mubr.f32.mxu0 %v3791_v27  ;;  %v5416_v27 = vld [vmem:[%s8850_s11 + $0x518] sm:$0xff] }
 0x9cd   : > { %3892 = vmatmul.mubr.f32.vlgmr.msra.gmra.mxu0 %v3789_v17  ;;  %v3969_v13 = vpop.f32.mrf.mxu1  ;;  %v5380_v17 = vld [vmem:[%s8850_s11 + $0x408] sm:$0xff] }
 0x9ce   : > { %4114 = vmatpush1.msra.mxu0 %v8062_v18  ;;  %4147 = vmatprep.mubr.f32.mxu0 %v6390_v48 }
 0x9cf   : > { %v3971_v30 = vpop.f32.mrf.mxu1  ;;  %5706 = vmatprep.subr.mxu0 %v5410_v28  ;;  %v5395_v28 = vld [vmem:[%s8850_s11 + $0x480] sm:$0xff] }
 0x9d0   : > { %4071 = vmatprep.mubr.f32.mxu1 %v3971_v30  ;;  %v5415_v30 = vld [vmem:[%s8850_s11 + $0x510] sm:$0xff] }
 0x9d1   : > { %4072 = vmatmul.mubr.f32.vlgmr.msra.gmra.mxu1 %v3969_v13  ;;  %5378 = vmatmul.mubr.msk.f32.vlgmr.msra.gmra.mxu0 %vm3362_vm1, %v5377_v29  ;;  %v5431_v13 = vld [vmem:[%s8850_s11 + $0x590] sm:$0xff]  ;;  %v5379_v29 = vld [vmem:[%s8850_s11 + $0x400] sm:$0xff] }
 0x9d2   : > { %5707 = vmatpush3.msra.mxu0 %v5394_v31  ;;  %4294 = vmatpush1.msra.mxu1 %v8062_v18  ;;  %v5430_v31 = vld [vmem:[%s8850_s11 + $0x588] sm:$0xff] }
 0x9d3   : > { %5708 = vmatprep.subr.mxu0 %v5409_v34  ;;  %4327 = vmatprep.mubr.f32.mxu1 %v6390_v48  ;;  %v5414_v34 = vld [vmem:[%s8850_s11 + $0x508] sm:$0xff] }
 0x9d4   : > { %5709 = vmatpush3.msra.mxu0 %v5393_v21  ;;  %5741 = vmatprep.subr.mxu1 %v5444_v37  ;;  %v5429_v21 = vld [vmem:[%s8850_s11 + $0x580] sm:$0xff] }
 0x9d5   : > { %5710 = vmatprep.subr.mxu0 %v5408_v38  ;;  %5412 = vmatmul.mubr.msk.f32.vlgmr.msra.gmra.mxu1 %vm3362_vm1, %v5411_v16  ;;  %v5413_v37 = vld [vmem:[%s8850_s11 + $0x500] sm:$0xff] }
 0x9d6   : > { %5711 = vmatpush3.msra.mxu0 %v5392_v22  ;;  %5742 = vmatpush3.msra.mxu1 %v5428_v42 }
 0x9d7   : > { %5712 = vmatprep.subr.mxu0 %v5407_v43  ;;  %5743 = vmatprep.subr.mxu1 %v5443_v44 }
 0x9d8   : > { %5713 = vmatpush3.msra.mxu0 %v5391_v45  ;;  %5744 = vmatpush3.msra.mxu1 %v5427_v35 }
 0x9d9   : > { %5714 = vmatprep.subr.mxu0 %v5406_v23  ;;  %5745 = vmatprep.subr.mxu1 %v5442_v20  ;;  %v5478_v20 = vld [vmem:[%s8850_s11 + $0x6f8] sm:$0xff] }
 0x9da   : > { %5715 = vmatpush3.msra.mxu0 %v5390_v46  ;;  %5746 = vmatpush3.msra.mxu1 %v5426_v47 }
 0x9db   : > { %5716 = vmatprep.subr.mxu0 %v5405_v19  ;;  %5747 = vmatprep.subr.mxu1 %v5441_v49  ;;  %v5462_v19 = vld [vmem:[%s8850_s11 + $0x678] sm:$0xff] }
 0x9dc   : > { %5717 = vmatpush3.msra.mxu0 %v5389_v0  ;;  %5748 = vmatpush3.msra.mxu1 %v5425_v50  ;;  %v5512_v49 = vld [vmem:[%s8850_s11 + $0x7f8] sm:$0xff]  ;;  %v5477_v0 = vld [vmem:[%s8850_s11 + $0x6f0] sm:$0xff]  ;;  %v5479_v50 = vld [vmem:[%s8849_s10 + $0x7] sm:$0x1] }
 0x9dd   : > { %5718 = vmatprep.subr.mxu0 %v5404_v51  ;;  %5749 = vmatprep.subr.mxu1 %v5440_v52  ;;  %v5461_v51 = vld [vmem:[%s8850_s11 + $0x670] sm:$0xff]  ;;  %v5476_v52 = vld [vmem:[%s8850_s11 + $0x6e8] sm:$0xff] }
 0x9de   : > { %5719 = vmatpush3.msra.mxu0 %v5388_v24  ;;  %5750 = vmatpush3.msra.mxu1 %v5424_v53  ;;  %v5511_v24 = vld [vmem:[%s8850_s11 + $0x7f0] sm:$0xff]  ;;  %v5475_v53 = vld [vmem:[%s8850_s11 + $0x6e0] sm:$0xff] }
 0x9df   : > { %5720 = vmatprep.subr.mxu0 %v5403_v54  ;;  %5751 = vmatprep.subr.mxu1 %v5439_v55  ;;  %v5495_v54 = vld [vmem:[%s8850_s11 + $0x770] sm:$0xff]  ;;  %v5459_v55 = vld [vmem:[%s8850_s11 + $0x660] sm:$0xff] }
 0x9e0   : > { %5721 = vmatpush3.msra.mxu0 %v5387_v56  ;;  %5752 = vmatpush3.msra.mxu1 %v5423_v57  ;;  %v5510_v56 = vld [vmem:[%s8850_s11 + $0x7e8] sm:$0xff]  ;;  %v5474_v57 = vld [vmem:[%s8850_s11 + $0x6d8] sm:$0xff] }
 0x9e1   : > { %5722 = vmatprep.subr.mxu0 %v5402_v58  ;;  %5753 = vmatprep.subr.mxu1 %v5438_v32  ;;  %v5494_v58 = vld [vmem:[%s8850_s11 + $0x768] sm:$0xff]  ;;  %v5458_v32 = vld [vmem:[%s8850_s11 + $0x658] sm:$0xff] }
 0x9e2   : > { %5723 = vmatpush3.msra.mxu0 %v5386_v59  ;;  %5754 = vmatpush3.msra.mxu1 %v5422_v60  ;;  %v5509_v59 = vld [vmem:[%s8850_s11 + $0x7e0] sm:$0xff]  ;;  %v5473_v60 = vld [vmem:[%s8850_s11 + $0x6d0] sm:$0xff] }
 0x9e3   : > { %5724 = vmatprep.subr.mxu0 %v5401_v25  ;;  %5755 = vmatprep.subr.mxu1 %v5437_v61  ;;  %v5493_v25 = vld [vmem:[%s8850_s11 + $0x760] sm:$0xff]  ;;  %v5457_v61 = vld [vmem:[%s8850_s11 + $0x650] sm:$0xff] }
 0x9e4   : > { %5725 = vmatpush3.msra.mxu0 %v5385_v62  ;;  %5756 = vmatpush3.msra.mxu1 %v5421_v63  ;;  %v5508_v62 = vld [vmem:[%s8850_s11 + $0x7d8] sm:$0xff]  ;;  %v5472_v63 = vld [vmem:[%s8850_s11 + $0x6c8] sm:$0xff] }
 0x9e5   : > { %5726 = vmatprep.subr.mxu0 %v5400_v36  ;;  %5757 = vmatprep.subr.mxu1 %v5436_v39  ;;  %v5492_v36 = vld [vmem:[%s8850_s11 + $0x758] sm:$0xff]  ;;  %v5456_v39 = vld [vmem:[%s8850_s11 + $0x648] sm:$0xff] }
 0x9e6   : > { %5727 = vmatpush3.msra.mxu0 %v5384_v40  ;;  %5758 = vmatpush3.msra.mxu1 %v5420_v1  ;;  %v5507_v40 = vld [vmem:[%s8850_s11 + $0x7d0] sm:$0xff]  ;;  %v5471_v1 = vld [vmem:[%s8850_s11 + $0x6c0] sm:$0xff] }
 0x9e7   : > { %5728 = vmatprep.subr.mxu0 %v5399_v2  ;;  %5759 = vmatprep.subr.mxu1 %v5435_v3  ;;  %v5491_v2 = vld [vmem:[%s8850_s11 + $0x750] sm:$0xff]  ;;  %v5455_v3 = vld [vmem:[%s8850_s11 + $0x640] sm:$0xff] }
 0x9e8   : > { %5729 = vmatpush3.msra.mxu0 %v5383_v4  ;;  %5760 = vmatpush3.msra.mxu1 %v5419_v41  ;;  %v5506_v4 = vld [vmem:[%s8850_s11 + $0x7c8] sm:$0xff]  ;;  %v5470_v41 = vld [vmem:[%s8850_s11 + $0x6b8] sm:$0xff] }
 0x9e9   : > { %5730 = vmatprep.subr.mxu0 %v5398_v5  ;;  %5761 = vmatprep.subr.mxu1 %v5434_v6  ;;  %v5490_v5 = vld [vmem:[%s8850_s11 + $0x748] sm:$0xff]  ;;  %v5454_v6 = vld [vmem:[%s8850_s11 + $0x638] sm:$0xff] }
 0x9ea   : > { %5731 = vmatpush3.msra.mxu0 %v5382_v7  ;;  %5762 = vmatpush3.msra.mxu1 %v5418_v8  ;;  %v5505_v7 = vld [vmem:[%s8850_s11 + $0x7c0] sm:$0xff]  ;;  %v5469_v8 = vld [vmem:[%s8850_s11 + $0x6b0] sm:$0xff] }
 0x9eb   : > { %5732 = vmatprep.subr.mxu0 %v5397_v9  ;;  %5763 = vmatprep.subr.mxu1 %v5433_v11  ;;  %v5489_v9 = vld [vmem:[%s8850_s11 + $0x740] sm:$0xff]  ;;  %v5453_v11 = vld [vmem:[%s8850_s11 + $0x630] sm:$0xff] }
 0x9ec   : > { %5733 = vmatpush3.msra.mxu0 %v5381_v12  ;;  %5764 = vmatpush3.msra.mxu1 %v5417_v14  ;;  %v5504_v12 = vld [vmem:[%s8850_s11 + $0x7b8] sm:$0xff]  ;;  %v5468_v14 = vld [vmem:[%s8850_s11 + $0x6a8] sm:$0xff] }
 0x9ed   : > { %5734 = vmatprep.subr.mxu0 %v5396_v10  ;;  %5765 = vmatprep.subr.mxu1 %v5432_v15  ;;  %v5488_v10 = vld [vmem:[%s8850_s11 + $0x738] sm:$0xff]  ;;  %v5452_v15 = vld [vmem:[%s8850_s11 + $0x628] sm:$0xff] }
 0x9ee   : > { %5735 = vmatpush3.msra.mxu0 %v5380_v17  ;;  %5766 = vmatpush3.msra.mxu1 %v5416_v27  ;;  %v5503_v17 = vld [vmem:[%s8850_s11 + $0x7b0] sm:$0xff]  ;;  %v5467_v27 = vld [vmem:[%s8850_s11 + $0x6a0] sm:$0xff] }
 0x9ef   : > { %5736 = vmatprep.subr.mxu0 %v5395_v28  ;;  %5767 = vmatprep.subr.mxu1 %v5431_v13  ;;  %v5487_v28 = vld [vmem:[%s8850_s11 + $0x730] sm:$0xff]  ;;  %v5451_v13 = vld [vmem:[%s8850_s11 + $0x620] sm:$0xff] }
 0x9f0   : > { %5737 = vmatpush3.msra.mxu0 %v5379_v29  ;;  %5768 = vmatpush3.msra.mxu1 %v5415_v30  ;;  %v5466_v29 = vld [vmem:[%s8850_s11 + $0x698] sm:$0xff]  ;;  %v5502_v30 = vld [vmem:[%s8850_s11 + $0x7a8] sm:$0xff] }
 0x9f1   : > { %5769 = vmatprep.subr.mxu1 %v5430_v31  ;;  %4473 = vmatprep.subr.mxu0 %v8057_v33  ;;  %v5450_v31 = vld [vmem:[%s8850_s11 + $0x618] sm:$0xff] }
 0x9f2   : > { %5770 = vmatpush3.msra.mxu1 %v5414_v34  ;;  %v5486_v34 = vld [vmem:[%s8850_s11 + $0x728] sm:$0xff] }
 0x9f3   : > { %5771 = vmatprep.subr.mxu1 %v5429_v21  ;;  %v5465_v21 = vld [vmem:[%s8850_s11 + $0x690] sm:$0xff] }
 0x9f4   : > { %5772 = vmatpush3.msra.mxu1 %v5413_v37  ;;  %v5501_v37 = vld [vmem:[%s8850_s11 + $0x7a0] sm:$0xff] }
 0x9f5   : > { %4653 = vmatprep.subr.mxu1 %v8057_v33  ;;  %v5445_v33 = vld [vmem:[%s8849_s10 + $0x6] sm:$0x1] }
 0xa8d   : > { %v5668_v38 = vpop.f32.mrf.mxu0 }
 0xa8f   : > { %v5669_v16 = vpop.f32.mrf.mxu0 }
 0xa90   : > { %v5670_v22 = vadd.f32 %v5669_v16, %v5668_v38  ;;  %v5449_v38 = vld [vmem:[%s8850_s11 + $0x610] sm:$0xff]  ;;  %v5485_v16 = vld [vmem:[%s8850_s11 + $0x720] sm:$0xff] }
 0xa91   : > { %v5703_v42 = vpop.f32.mrf.mxu1  ;;  %v4149_v43 = vpop.f32.mrf.mxu0 }
 0xa92   : > { %v3897_v44 = vadd.f32 %v5670_v22, %v8378_v26  ;;  %v5464_v22 = vld [vmem:[%s8850_s11 + $0x688] sm:$0xff] }
 0xa93   : > { %v5704_v45 = vpop.f32.mrf.mxu1  ;;  %v4151_v35 = vpop.f32.mrf.mxu0 }
 0xa94   : > { %v5705_v23 = vadd.f32 %v5704_v45, %v5703_v42  ;;  %4251 = vmatprep.mubr.f32.mxu0 %v4151_v35  ;;  %v5500_v42 = vld [vmem:[%s8850_s11 + $0x798] sm:$0xff]  ;;  %v5463_v45 = vld [vmem:[%s8850_s11 + $0x680] sm:$0xff]  ;;  %v5499_v35 = vld [vmem:[%s8850_s11 + $0x790] sm:$0xff] }
 0xa95   : > { %4252 = vmatmul.mubr.f32.vlgmr.msra.gmra.mxu0 %v4149_v43  ;;  %v4329_v46 = vpop.f32.mrf.mxu1  ;;  %v5448_v43 = vld [vmem:[%s8850_s11 + $0x608] sm:$0xff] }
 0xa96   : > { %v8590_v47 = vadd.f32 %v5705_v23, %v3897_v44  ;;  %4474 = vmatpush1.msra.mxu0 %v8062_v18  ;;  %4507 = vmatprep.mubr.f32.mxu0 %v6390_v48  ;;  %v5484_v44 = vld [vmem:[%s8850_s11 + $0x718] sm:$0xff]  ;;  %v5447_v23 = vld [vmem:[%s8850_s11 + $0x600] sm:$0xff] }
 0xa97   : > { %v4331_v26 = vpop.f32.mrf.mxu1  ;;  %5776 = vmatprep.subr.mxu0 %v5478_v20  ;;  %v5483_v20 = vld [vmem:[%s8850_s11 + $0x710] sm:$0xff] }
 0xa98   : > { %4431 = vmatprep.mubr.f32.mxu1 %v4331_v26  ;;  %v5497_v26 = vld [vmem:[%s8850_s11 + $0x780] sm:$0xff] }
 0xa99   : > { %4432 = vmatmul.mubr.f32.vlgmr.msra.gmra.mxu1 %v4329_v46  ;;  %5446 = vmatmul.mubr.msk.f32.vlgmr.msra.gmra.mxu0 %vm3362_vm1, %v5445_v33  ;;  %v5498_v46 = vld [vmem:[%s8850_s11 + $0x788] sm:$0xff] }
 0xa9a   : > { %4654 = vmatpush1.msra.mxu1 %v8062_v18  ;;  %4687 = vmatprep.mubr.f32.mxu1 %v6390_v48  ;;  %v5496_v18 = vld [vmem:[%s8850_s11 + $0x778] sm:$0xff]  ;;  %v5460_v48 = vld [vmem:[%s8850_s11 + $0x668] sm:$0xff] }
 0xa9b   : > { %5777 = vmatpush3.msra.mxu0 %v5462_v19  ;;  %5811 = vmatprep.subr.mxu1 %v5512_v49  ;;  %v5482_v33 = vld [vmem:[%s8850_s11 + $0x708] sm:$0xff]  ;;  %v5481_v19 = vld [vmem:[%s8850_s11 + $0x700] sm:$0xff] }
 0xa9c   : > { %5778 = vmatprep.subr.mxu0 %v5477_v0 }
 0xa9d   : > { %5480 = vmatmul.mubr.msk.f32.vlgmr.msra.gmra.mxu1 %vm3362_vm1, %v5479_v50  ;;  %5779 = vmatpush3.msra.mxu0 %v5461_v51 }
 0xa9e   : > { %5780 = vmatprep.subr.mxu0 %v5476_v52  ;;  %5812 = vmatpush3.msra.mxu1 %v5496_v18 }
 0xa9f   : > { %5781 = vmatpush3.msra.mxu0 %v5460_v48  ;;  %5813 = vmatprep.subr.mxu1 %v5511_v24 }
 0xaa0   : > { %5782 = vmatprep.subr.mxu0 %v5475_v53  ;;  %5814 = vmatpush3.msra.mxu1 %v5495_v54 }
 0xaa1   : > { %5783 = vmatpush3.msra.mxu0 %v5459_v55  ;;  %5815 = vmatprep.subr.mxu1 %v5510_v56 }
 0xaa2   : > { %5784 = vmatprep.subr.mxu0 %v5474_v57  ;;  %5816 = vmatpush3.msra.mxu1 %v5494_v58 }
 0xaa3   : > { %5785 = vmatpush3.msra.mxu0 %v5458_v32  ;;  %5817 = vmatprep.subr.mxu1 %v5509_v59 }
 0xaa4   : > { %5786 = vmatprep.subr.mxu0 %v5473_v60  ;;  %5818 = vmatpush3.msra.mxu1 %v5493_v25 }
 0xaa5   : > { %5787 = vmatpush3.msra.mxu0 %v5457_v61  ;;  %5819 = vmatprep.subr.mxu1 %v5508_v62 }
 0xaa6   : > { %5788 = vmatprep.subr.mxu0 %v5472_v63  ;;  %5820 = vmatpush3.msra.mxu1 %v5492_v36 }
 0xaa7   : > { %5789 = vmatpush3.msra.mxu0 %v5456_v39  ;;  %5821 = vmatprep.subr.mxu1 %v5507_v40 }
 0xaa8   : > { %5790 = vmatprep.subr.mxu0 %v5471_v1  ;;  %5822 = vmatpush3.msra.mxu1 %v5491_v2 }
 0xaa9   : > { %5791 = vmatpush3.msra.mxu0 %v5455_v3  ;;  %5823 = vmatprep.subr.mxu1 %v5506_v4 }
 0xaaa   : > { %5792 = vmatprep.subr.mxu0 %v5470_v41  ;;  %5824 = vmatpush3.msra.mxu1 %v5490_v5 }
 0xaab   : > { %5793 = vmatpush3.msra.mxu0 %v5454_v6  ;;  %5825 = vmatprep.subr.mxu1 %v5505_v7 }
 0xaac   : > { %5794 = vmatprep.subr.mxu0 %v5469_v8  ;;  %5826 = vmatpush3.msra.mxu1 %v5489_v9 }
 0xaad   : > { %5795 = vmatpush3.msra.mxu0 %v5453_v11  ;;  %5827 = vmatprep.subr.mxu1 %v5504_v12 }
 0xaae   : > { %5796 = vmatprep.subr.mxu0 %v5468_v14  ;;  %5828 = vmatpush3.msra.mxu1 %v5488_v10 }
 0xaaf   : > { %5797 = vmatpush3.msra.mxu0 %v5452_v15  ;;  %5829 = vmatprep.subr.mxu1 %v5503_v17 }
 0xab0   : > { %5798 = vmatprep.subr.mxu0 %v5467_v27  ;;  %5830 = vmatpush3.msra.mxu1 %v5487_v28 }
 0xab1   : > { %5799 = vmatpush3.msra.mxu0 %v5451_v13  ;;  %5831 = vmatprep.subr.mxu1 %v5502_v30 }
 0xab2   : > { %5800 = vmatprep.subr.mxu0 %v5466_v29  ;;  %5832 = vmatpush3.msra.mxu1 %v5486_v34 }
 0xab3   : > { %5801 = vmatpush3.msra.mxu0 %v5450_v31  ;;  %5833 = vmatprep.subr.mxu1 %v5501_v37 }
 0xab4   : > { %5802 = vmatprep.subr.mxu0 %v5465_v21  ;;  %5834 = vmatpush3.msra.mxu1 %v5485_v16 }
 0xab5   : > { %5803 = vmatpush3.msra.mxu0 %v5449_v38  ;;  %5835 = vmatprep.subr.mxu1 %v5500_v42 }
 0xab6   : > { %5804 = vmatprep.subr.mxu0 %v5464_v22  ;;  %5836 = vmatpush3.msra.mxu1 %v5484_v44 }
 0xab7   : > { %5805 = vmatpush3.msra.mxu0 %v5448_v43  ;;  %5837 = vmatprep.subr.mxu1 %v5499_v35 }
 0xab8   : > { %5806 = vmatprep.subr.mxu0 %v5463_v45  ;;  %5838 = vmatpush3.msra.mxu1 %v5483_v20 }
 0xab9   : > { %5807 = vmatpush3.msra.mxu0 %v5447_v23  ;;  %5839 = vmatprep.subr.mxu1 %v5498_v46 }
 0xaba   : > { %5840 = vmatpush3.msra.mxu1 %v5482_v33 }
 0xabb   : > { %5841 = vmatprep.subr.mxu1 %v5497_v26 }
 0xabc   : > { %5842 = vmatpush3.msra.mxu1 %v5481_v19 }
 0xb55   : > { %v5738_v49 = vpop.f32.mrf.mxu0 }
 0xb57   : > { %v5739_v0 = vpop.f32.mrf.mxu0 }
 0xb58   : > { %v5740_v50 = vadd.f32 %v5739_v0, %v5738_v49 }
 0xb59   : > { %v5773_v51 = vpop.f32.mrf.mxu1  ;;  %v4509_v52 = vpop.f32.mrf.mxu0 }
 0xb5a   : > { %v4257_v18 = vadd.f32 %v5740_v50, %v8590_v47  ;;  %v4798_v47 = vld [vmem:[%s8851_s12] sm:$0x1] }
 0xb5b   : > { %v5774_v48 = vpop.f32.mrf.mxu1  ;;  %v4511_v24 = vpop.f32.mrf.mxu0 }
 0xb5c   : > { %v5775_v53 = vadd.f32 %v5774_v48, %v5773_v51  ;;  %4611 = vmatprep.mubr.f32.mxu0 %v4511_v24 }
 0xb5d   : > { %4612 = vmatmul.mubr.f32.vlgmr.msra.gmra.mxu0 %v4509_v52  ;;  %v4689_v54 = vpop.f32.mrf.mxu1 }
 0xb5e   : > { %v4437_v55 = vadd.f32 %v5775_v53, %v4257_v18 }
 0xb5f   : > { %v4691_v56 = vpop.f32.mrf.mxu1 }
 0xb60   : > { %4791 = vmatprep.mubr.f32.mxu1 %v4691_v56 }
 0xb61   : > { %4792 = vmatmul.mubr.f32.vlgmr.msra.gmra.mxu1 %v4689_v54 }
 0xc1d   : > { %v5808_v57 = vpop.f32.mrf.mxu0 }
 0xc1f   : > { %v5809_v58 = vpop.f32.mrf.mxu0 }
 0xc20   : > { %v5810_v32 = vadd.f32 %v5809_v58, %v5808_v57 }
 0xc21   : > { %v5843_v59 = vpop.f32.mrf.mxu1 }
 0xc22   : > { %v4617_v25 = vadd.f32 %v5810_v32, %v4437_v55 }
 0xc23   : > { %v5844_v60 = vpop.f32.mrf.mxu1 }
 0xc24   : > { %v5845_v61 = vadd.f32 %v5844_v60, %v5843_v59 }
 0xc26   : > { %v4797_v62 = vadd.f32 %v5845_v61, %v4617_v25 }
 0xc28   : > { %v4799_v63 = vadd.f32 %v4798_v47, %v4797_v62 }
 0xc2a   : > { %v4801_v36 = vmin.f32 %v4799_v63, 0.0  ;;  %vm4800_vm3 = vcmp.gt.f32.partialorder %v4799_v63, 0.0 }
 0xc2c   : > { %v4802_v39 = vmul.f32 1.442695, %v4801_v36 }
 0xc2e   : > { %6084 = vpow2.f32 %v4802_v39 }
 0xc3b   : > { %v6085_v40 = vpop.eup %6084 }
 0xc3c   : > { %v5513_v1 = vadd.f32 -1.0, %v6085_v40 }
 0xc3e   : > { %v4805_v2 = vsel %vm4800_vm3, %v4799_v63, %v5513_v1 }
 0xc3f   : > { %4807 = vst.msk [vmem:[%s553_s7] sm:$0x1] %vm4806_vm2, %v4805_v2 }
 0xc40   : > { %6309 = shalt.err (!%p6306_p12)
}
 0xc41   : > { %s6310_s24 = scalar_lea.hbm %s8802_s3, 16  ;;  %s6314_s23 = scalar_lea.hbm %s8852_s13, 32 }
 0xc42   : > { %p6311_p13 = scmp.ne.s32.totalorder %s8802_s3, %s6310_s24  ;;  %p6315_p9 = scmp.lt.s32.totalorder %s8802_s3, %s8852_s13 }
 0xc43   : > { %p6316_p1 = scmp.lt.s32.totalorder %s6314_s23, %s6310_s24 }
 0xc44   : > { %p6312_p5 = pnand %p6311_p13, %p8893_p11 }
 0xc45   : > { %p6317_p3 = por %p6316_p1, %p6315_p9 }
 0xc46   : > { %p6313_p8 = pneg %p6312_p5 }
 0xc48   : > { %p6318_p10 = pnand %p6317_p3, %p6313_p8 }
 0xc4a   : > { %6321 = shalt.err (!%p6318_p10)
}
 0xc4b   : > { %5964 = dma.vmem_to_hbm [thread:$0]  (%p8893_p11), %s4822_s16, 16, %s8802_s3, %s4809_s4  }
 0xc4c PF: > { %s4833_s7 = sand.u32 1, %s6364_s25   ;;  %p8894_p0 = scmp.ne.s32.totalorder %s8879_s1, 0 }
 0xc4d   : > { %p8895_p2 = scmp.ge.s32.totalorder %s6376_s28, 2  ;;  %s4834_s9 = scalar_lea.sflag [#allocation4], %s4833_s7 }
 0xc4f   : > { %p5993_p7 = pnand %p8895_p2, %p8894_p0 }
 0xc51   : > { %p5994_p4 = pneg %p5993_p7 }
 0xc53   : > { %6359 = dma.done.wait (%p5994_p4), %s4834_s9, 16  }
 0xc54   : > { %6361 = vsyncadd (%p5994_p4), %s4834_s9, 4294967280  ;;  %p30_p6 = scmp.ge.s32.totalorder %s6581_s18, 4   ;;  %s8896_s25 = smov %s6368_s26 }
 0xc55   : > { %s8897_s26 = smov %s6372_s27  ;;  %s8898_s27 = smov %s6593_s22 }
 0xc56   : > { %s8899_s28 = smov %s6581_s18  ;;  %32 = sbr.rel (!%p30_p6) target bundleno = 17 (0x11), region = 177 }
 0xc5b   :  { %4838 = vsyncpa [#allocation3], 1 }
 0xc5c   :  { %4840 = vsyncpa [#allocation3 + $0x1], 1 }
 0xc5d   :  { %4841 = vsyncpa [#allocation6], 1 }
 0xc5e   :  { %4842 = vsyncpa [#allocation9], 1 }
 0xc5f   :  { %4843 = vsyncpa [#allocation12], 1 }
 0xc60   :  { %4844 = vsyncpa [#allocation15], 1 }
 0xc61   :  { %4845 = vsyncpa [#allocation4], 1 }
 0xc62   :  { %4847 = vsyncpa [#allocation4 + $0x1], 1 }

</bundles_post_ra>
